<compile_context>
chip_gen: v7x
topology: tpu7x:2x2x1
jax: 0.10.0
libtpu: 0.0.40
codegen_flags: <defaults>
</compile_context>

<pallas_src>
import math

import jax
import jax.numpy as jnp
from jax.experimental import pallas as pl
from jax.experimental.pallas import tpu as pltpu


def _make_fused_kernel(H, W, C):
    HW = H * W
    S = HW                       # output span: all H*W centers, row-major, compact
    Q0 = W + 1                   # flat index of center (h=0, w=0) inside the scratch
    P = (H + 2) * W + 2          # guard lane + top halo row + data + bottom halo row + guard lane
    PL = 9 * C + 1               # per-layer weight-tile columns: 9*Cin weights + 1 bias

    def kernel(x_ref, w_ref, o_ref, buf):
        # x_ref : (1, C, HW)   unpadded input plane (lane-dense, contiguous NCHW reshape)
        # w_ref : (C, 2*PL)    [w1 | b1 | w2 | b2]; weight column j = (kh*3+kw)*C + ci
        # o_ref : (1, C, HW)   output (lane-dense, compact)
        # buf   : (C, P)       VMEM scratch: zero-guarded plane, reused by both layers

        # Left/right "same"-padding masks, built once and shared by both layers.
        col = jax.lax.broadcasted_iota(jnp.int32, (C, S), 1)
        if (W & (W - 1)) == 0:
            col = jnp.bitwise_and(col, W - 1)
        else:
            col = col % W
        m_left = (col != 0).astype(jnp.float32)        # kills the w==0 wrap for kw=0 taps
        m_right = (col != W - 1).astype(jnp.float32)   # kills the w==W-1 wrap for kw=2 taps

        # Zero only the halo/guard lanes; the data span is always fully overwritten.
        buf[:, 0:Q0] = jnp.zeros((C, Q0), jnp.float32)
        buf[:, Q0 + S:P] = jnp.zeros((C, P - Q0 - S), jnp.float32)

        def conv_layer(layer):
            base = layer * PL
            bias_col = w_ref[:, base + 9 * C:base + 9 * C + 1]       # (C, 1)
            acc = jnp.broadcast_to(bias_col, (C, S))                 # bias folded into init
            for kh in range(3):
                for kw in range(3):
                    start = Q0 + (kh - 1) * W + (kw - 1)
                    tap = buf[:, start:start + S]                    # (C_in, S) shifted rows
                    if kw == 0:
                        tap = tap * m_left
                    elif kw == 2:
                        tap = tap * m_right
                    for ci in range(C):
                        j = base + (kh * 3 + kw) * C + ci
                        wcol = w_ref[:, j:j + 1]                     # (C_out, 1) vector operand
                        acc = acc + wcol * tap[ci:ci + 1, :]         # (C_out, S) broadcast FMA
            return acc

        # conv1: stage the raw input into the zero-guarded plane, then convolve.
        buf[:, Q0:Q0 + S] = x_ref[0]
        y1 = conv_layer(0)

        # conv2 (= test_conv.conv1): restage conv1's activation in the SAME scratch
        # (halo lanes are still zero) -- no HBM round trip for the intermediate.
        buf[:, Q0:Q0 + S] = y1
        o_ref[0] = conv_layer(1)

    return kernel, P, PL


def test_fpn_forward(x_nchw, params):
    """Forward of test_fpn: x = conv1(x); x = conv2.conv1(x); return x.

    x_nchw : (N, C, H, W) float32
    params : ((w1, b1), (w2, b2)) with PyTorch Conv2d layout
             w: (Cout, Cin, 3, 3), b: (Cout,)
    """
    (w1, b1), (w2, b2) = params
    N, C, H, W = x_nchw.shape
    HW = H * W
    kernel, P, PL = _make_fused_kernel(H, W, C)

    # Contiguous reshape only (no pad / transpose): lane-dense (N, C, H*W).
    x_flat = x_nchw.reshape(N, C, HW).astype(jnp.float32)

    # One tiny VMEM weight tile: per layer (Cout, 9*Cin) weights in (kh, kw, ci)
    # column order plus a bias column; the two layers concatenated on lanes.
    def pack(w, b):
        wt = jnp.transpose(w, (0, 2, 3, 1)).reshape(C, 9 * C)
        return jnp.concatenate([wt, b.reshape(C, 1)], axis=1)
    w_tile = jnp.concatenate([pack(w1, b1), pack(w2, b2)], axis=1).astype(jnp.float32)

    out = pl.pallas_call(
        kernel,
        out_shape=jax.ShapeDtypeStruct((N, C, HW), jnp.float32),
        grid_spec=pltpu.PrefetchScalarGridSpec(
            num_scalar_prefetch=0,
            grid=(N,),
            in_specs=[
                pl.BlockSpec((1, C, HW), lambda n: (n, 0, 0)),
                pl.BlockSpec((C, 2 * PL), lambda n: (0, 0)),
            ],
            out_specs=pl.BlockSpec((1, C, HW), lambda n: (n, 0, 0)),
            scratch_shapes=[pltpu.VMEM((C, P), jnp.float32)],
        ),
        # NOTE: on v7x, pltpu.CORE_PARALLEL on this axis would put one image on
        # each TensorCore; plain "parallel" keeps it a cheap 2-step pipeline
        # that is correct on every generation.
        compiler_params=pltpu.CompilerParams(
            dimension_semantics=("parallel",)),
    )(x_flat, w_tile)

    # Free (contiguous) reshape back to NCHW.
    # conv3 (SubRegions) is constructed in __init__ but unused in test_fpn.forward.
    return out.reshape(N, C, H, W)


def init_conv_params(key, cin, cout, k=3):
    """Deterministic Conv2d-style init, PyTorch layout (Cout, Cin, k, k)."""
    kw_, kb_ = jax.random.split(key)
    fan_in = cin * k * k
    bound = 1.0 / math.sqrt(fan_in)
    w = jax.random.uniform(kw_, (cout, cin, k, k), jnp.float32, -bound, bound)
    b = jax.random.uniform(kb_, (cout,), jnp.float32, -bound, bound)
    return w, b


def _ref_forward(x, params):
    """Pure-JAX reference (XLA conv) for correctness checking."""
    def conv(x, w, b):
        y = jax.lax.conv_general_dilated(
            x, w, window_strides=(1, 1), padding=((1, 1), (1, 1)),
            dimension_numbers=("NCHW", "OIHW", "NCHW"))
        return y + b.reshape(1, -1, 1, 1)
    (w1, b1), (w2, b2) = params
    return conv(conv(x, w1, b1), w2, b2)


if __name__ == "__main__":
    N, C, H, W = 2, 4, 16, 16
    key = jax.random.PRNGKey(0)
    kx, k1, k2 = jax.random.split(key, 3)

    x = jax.random.normal(kx, (N, C, H, W), jnp.float32)
    params = (
        init_conv_params(k1, C, C),  # conv1
        init_conv_params(k2, C, C),  # conv2.conv1
    )

    out = test_fpn_forward(x, params)
    jax.block_until_ready(out)
    assert out.shape == (N, C, H, W), out.shape

    ref = _ref_forward(x, params)
    assert jnp.allclose(out, ref, atol=1e-4, rtol=1e-4), \
        float(jnp.max(jnp.abs(out - ref)))

    print("KERNEL_OK")
</pallas_src>

<mosaic_0001>
module attributes {stable_mosaic.version = 11 : i64} {
  func.func @kernel(%arg0: i32, %arg1: memref<1x4x256xf32, #tpu.memory_space<vmem>>, %arg2: memref<4x74xf32, #tpu.memory_space<vmem>>, %arg3: memref<1x4x256xf32, #tpu.memory_space<vmem>>, %arg4: memref<4x290xf32, #tpu.memory_space<vmem>>) attributes {dimension_semantics = [#tpu.dimension_semantics<parallel>], iteration_bounds = array<i64: 2>, scalar_prefetch = 0 : i64, scratch_operands = 1 : i64, tpu.core_type = #tpu.core_type<tc>, window_params = [{transform_indices = @transform_0, window_bounds = array<i64: 1, 4, 256>}, {pipeline_mode = #tpu.pipeline_mode<synchronous>, transform_indices = @transform_1, window_bounds = array<i64: 4, 74>}, {transform_indices = @transform_2, window_bounds = array<i64: 1, 4, 256>}]} {
    %0 = tpu.iota {dimensions = array<i32: 1>} : vector<4x256xi32>
    %c15_i32 = arith.constant 15 : i32
    %1 = vector.broadcast %c15_i32 : i32 to vector<4x256xi32>
    %2 = arith.andi %0, %1 : vector<4x256xi32>
    %c0_i32 = arith.constant 0 : i32
    %3 = vector.broadcast %c0_i32 : i32 to vector<4x256xi32>
    %4 = arith.cmpi ne, %2, %3 : vector<4x256xi32>
    %5 = arith.extui %4 : vector<4x256xi1> to vector<4x256xi32>
    %6 = arith.sitofp %5 : vector<4x256xi32> to vector<4x256xf32>
    %c15_i32_0 = arith.constant 15 : i32
    %7 = vector.broadcast %c15_i32_0 : i32 to vector<4x256xi32>
    %8 = arith.cmpi ne, %2, %7 : vector<4x256xi32>
    %9 = arith.extui %8 : vector<4x256xi1> to vector<4x256xi32>
    %10 = arith.sitofp %9 : vector<4x256xi32> to vector<4x256xf32>
    %cst = arith.constant 0.000000e+00 : f32
    %11 = vector.broadcast %cst : f32 to vector<4x17xf32>
    %c0 = arith.constant 0 : index
    %c0_1 = arith.constant 0 : index
    %12 = vector.load %arg4[%c0, %c0_1] : memref<4x290xf32, #tpu.memory_space<vmem>>, vector<4x17xf32>
    tpu.vector_store %arg4[%c0, %c0_1], %11 {strides = array<i32>} : memref<4x290xf32, #tpu.memory_space<vmem>>, vector<4x17xf32>,
    %cst_2 = arith.constant 0.000000e+00 : f32
    %13 = vector.broadcast %cst_2 : f32 to vector<4x17xf32>
    %c0_3 = arith.constant 0 : index
    %c273 = arith.constant 273 : index
    %14 = vector.load %arg4[%c0_3, %c273] : memref<4x290xf32, #tpu.memory_space<vmem>>, vector<4x17xf32>
    tpu.vector_store %arg4[%c0_3, %c273], %13 {strides = array<i32>} : memref<4x290xf32, #tpu.memory_space<vmem>>, vector<4x17xf32>,
    %c0_4 = arith.constant 0 : index
    %c0_5 = arith.constant 0 : index
    %c0_6 = arith.constant 0 : index
    %15 = vector.load %arg1[%c0_4, %c0_5, %c0_6] : memref<1x4x256xf32, #tpu.memory_space<vmem>>, vector<1x4x256xf32>
    %16 = vector.shape_cast %15 : vector<1x4x256xf32> to vector<4x256xf32>
    %c0_7 = arith.constant 0 : index
    %c17 = arith.constant 17 : index
    %17 = vector.load %arg4[%c0_7, %c17] : memref<4x290xf32, #tpu.memory_space<vmem>>, vector<4x256xf32>
    tpu.vector_store %arg4[%c0_7, %c17], %16 {strides = array<i32>} : memref<4x290xf32, #tpu.memory_space<vmem>>, vector<4x256xf32>,
    %c0_8 = arith.constant 0 : index
    %c36 = arith.constant 36 : index
    %18 = vector.load %arg2[%c0_8, %c36] : memref<4x74xf32, #tpu.memory_space<vmem>>, vector<4x1xf32>
    %19 = vector.shape_cast %18 : vector<4x1xf32> to vector<4x1xf32>
    %20 = vector.broadcast %19 : vector<4x1xf32> to vector<4x256xf32>
    %c0_9 = arith.constant 0 : index
    %c0_10 = arith.constant 0 : index
    %21 = vector.load %arg4[%c0_9, %c0_10] : memref<4x290xf32, #tpu.memory_space<vmem>>, vector<4x256xf32>
    %22 = arith.mulf %21, %6 : vector<4x256xf32>
    %c0_11 = arith.constant 0 : index
    %c0_12 = arith.constant 0 : index
    %23 = vector.load %arg2[%c0_11, %c0_12] : memref<4x74xf32, #tpu.memory_space<vmem>>, vector<4x1xf32>
    %24 = vector.extract_strided_slice %22 {offsets = [0, 0], sizes = [1, 256], strides = [1, 1]} : vector<4x256xf32> to vector<1x256xf32>
    %25 = vector.broadcast %23 : vector<4x1xf32> to vector<4x256xf32>
    %26 = vector.broadcast %24 : vector<1x256xf32> to vector<4x256xf32>
    %27 = arith.mulf %25, %26 : vector<4x256xf32>
    %28 = arith.addf %20, %27 : vector<4x256xf32>
    %c0_13 = arith.constant 0 : index
    %c1 = arith.constant 1 : index
    %29 = vector.load %arg2[%c0_13, %c1] : memref<4x74xf32, #tpu.memory_space<vmem>>, vector<4x1xf32>
    %30 = vector.extract_strided_slice %22 {offsets = [1, 0], sizes = [1, 256], strides = [1, 1]} : vector<4x256xf32> to vector<1x256xf32>
    %31 = vector.broadcast %29 : vector<4x1xf32> to vector<4x256xf32>
    %32 = vector.broadcast %30 : vector<1x256xf32> to vector<4x256xf32>
    %33 = arith.mulf %31, %32 : vector<4x256xf32>
    %34 = arith.addf %28, %33 : vector<4x256xf32>
    %c0_14 = arith.constant 0 : index
    %c2 = arith.constant 2 : index
    %35 = vector.load %arg2[%c0_14, %c2] : memref<4x74xf32, #tpu.memory_space<vmem>>, vector<4x1xf32>
    %36 = vector.extract_strided_slice %22 {offsets = [2, 0], sizes = [1, 256], strides = [1, 1]} : vector<4x256xf32> to vector<1x256xf32>
    %37 = vector.broadcast %35 : vector<4x1xf32> to vector<4x256xf32>
    %38 = vector.broadcast %36 : vector<1x256xf32> to vector<4x256xf32>
    %39 = arith.mulf %37, %38 : vector<4x256xf32>
    %40 = arith.addf %34, %39 : vector<4x256xf32>
    %c0_15 = arith.constant 0 : index
    %c3 = arith.constant 3 : index
    %41 = vector.load %arg2[%c0_15, %c3] : memref<4x74xf32, #tpu.memory_space<vmem>>, vector<4x1xf32>
    %42 = vector.extract_strided_slice %22 {offsets = [3, 0], sizes = [1, 256], strides = [1, 1]} : vector<4x256xf32> to vector<1x256xf32>
    %43 = vector.broadcast %41 : vector<4x1xf32> to vector<4x256xf32>
    %44 = vector.broadcast %42 : vector<1x256xf32> to vector<4x256xf32>
    %45 = arith.mulf %43, %44 : vector<4x256xf32>
    %46 = arith.addf %40, %45 : vector<4x256xf32>
    %c0_16 = arith.constant 0 : index
    %c1_17 = arith.constant 1 : index
    %47 = vector.load %arg4[%c0_16, %c1_17] : memref<4x290xf32, #tpu.memory_space<vmem>>, vector<4x256xf32>
    %c0_18 = arith.constant 0 : index
    %c4 = arith.constant 4 : index
    %48 = vector.load %arg2[%c0_18, %c4] : memref<4x74xf32, #tpu.memory_space<vmem>>, vector<4x1xf32>
    %49 = vector.extract_strided_slice %47 {offsets = [0, 0], sizes = [1, 256], strides = [1, 1]} : vector<4x256xf32> to vector<1x256xf32>
    %50 = vector.broadcast %48 : vector<4x1xf32> to vector<4x256xf32>
    %51 = vector.broadcast %49 : vector<1x256xf32> to vector<4x256xf32>
    %52 = arith.mulf %50, %51 : vector<4x256xf32>
    %53 = arith.addf %46, %52 : vector<4x256xf32>
    %c0_19 = arith.constant 0 : index
    %c5 = arith.constant 5 : index
    %54 = vector.load %arg2[%c0_19, %c5] : memref<4x74xf32, #tpu.memory_space<vmem>>, vector<4x1xf32>
    %55 = vector.extract_strided_slice %47 {offsets = [1, 0], sizes = [1, 256], strides = [1, 1]} : vector<4x256xf32> to vector<1x256xf32>
    %56 = vector.broadcast %54 : vector<4x1xf32> to vector<4x256xf32>
    %57 = vector.broadcast %55 : vector<1x256xf32> to vector<4x256xf32>
    %58 = arith.mulf %56, %57 : vector<4x256xf32>
    %59 = arith.addf %53, %58 : vector<4x256xf32>
    %c0_20 = arith.constant 0 : index
    %c6 = arith.constant 6 : index
    %60 = vector.load %arg2[%c0_20, %c6] : memref<4x74xf32, #tpu.memory_space<vmem>>, vector<4x1xf32>
    %61 = vector.extract_strided_slice %47 {offsets = [2, 0], sizes = [1, 256], strides = [1, 1]} : vector<4x256xf32> to vector<1x256xf32>
    %62 = vector.broadcast %60 : vector<4x1xf32> to vector<4x256xf32>
    %63 = vector.broadcast %61 : vector<1x256xf32> to vector<4x256xf32>
    %64 = arith.mulf %62, %63 : vector<4x256xf32>
    %65 = arith.addf %59, %64 : vector<4x256xf32>
    %c0_21 = arith.constant 0 : index
    %c7 = arith.constant 7 : index
    %66 = vector.load %arg2[%c0_21, %c7] : memref<4x74xf32, #tpu.memory_space<vmem>>, vector<4x1xf32>
    %67 = vector.extract_strided_slice %47 {offsets = [3, 0], sizes = [1, 256], strides = [1, 1]} : vector<4x256xf32> to vector<1x256xf32>
    %68 = vector.broadcast %66 : vector<4x1xf32> to vector<4x256xf32>
    %69 = vector.broadcast %67 : vector<1x256xf32> to vector<4x256xf32>
    %70 = arith.mulf %68, %69 : vector<4x256xf32>
    %71 = arith.addf %65, %70 : vector<4x256xf32>
    %c0_22 = arith.constant 0 : index
    %c2_23 = arith.constant 2 : index
    %72 = vector.load %arg4[%c0_22, %c2_23] : memref<4x290xf32, #tpu.memory_space<vmem>>, vector<4x256xf32>
    %73 = arith.mulf %72, %10 : vector<4x256xf32>
    %c0_24 = arith.constant 0 : index
    %c8 = arith.constant 8 : index
    %74 = vector.load %arg2[%c0_24, %c8] : memref<4x74xf32, #tpu.memory_space<vmem>>, vector<4x1xf32>
    %75 = vector.extract_strided_slice %73 {offsets = [0, 0], sizes = [1, 256], strides = [1, 1]} : vector<4x256xf32> to vector<1x256xf32>
    %76 = vector.broadcast %74 : vector<4x1xf32> to vector<4x256xf32>
    %77 = vector.broadcast %75 : vector<1x256xf32> to vector<4x256xf32>
    %78 = arith.mulf %76, %77 : vector<4x256xf32>
    %79 = arith.addf %71, %78 : vector<4x256xf32>
    %c0_25 = arith.constant 0 : index
    %c9 = arith.constant 9 : index
    %80 = vector.load %arg2[%c0_25, %c9] : memref<4x74xf32, #tpu.memory_space<vmem>>, vector<4x1xf32>
    %81 = vector.extract_strided_slice %73 {offsets = [1, 0], sizes = [1, 256], strides = [1, 1]} : vector<4x256xf32> to vector<1x256xf32>
    %82 = vector.broadcast %80 : vector<4x1xf32> to vector<4x256xf32>
    %83 = vector.broadcast %81 : vector<1x256xf32> to vector<4x256xf32>
    %84 = arith.mulf %82, %83 : vector<4x256xf32>
    %85 = arith.addf %79, %84 : vector<4x256xf32>
    %c0_26 = arith.constant 0 : index
    %c10 = arith.constant 10 : index
    %86 = vector.load %arg2[%c0_26, %c10] : memref<4x74xf32, #tpu.memory_space<vmem>>, vector<4x1xf32>
    %87 = vector.extract_strided_slice %73 {offsets = [2, 0], sizes = [1, 256], strides = [1, 1]} : vector<4x256xf32> to vector<1x256xf32>
    %88 = vector.broadcast %86 : vector<4x1xf32> to vector<4x256xf32>
    %89 = vector.broadcast %87 : vector<1x256xf32> to vector<4x256xf32>
    %90 = arith.mulf %88, %89 : vector<4x256xf32>
    %91 = arith.addf %85, %90 : vector<4x256xf32>
    %c0_27 = arith.constant 0 : index
    %c11 = arith.constant 11 : index
    %92 = vector.load %arg2[%c0_27, %c11] : memref<4x74xf32, #tpu.memory_space<vmem>>, vector<4x1xf32>
    %93 = vector.extract_strided_slice %73 {offsets = [3, 0], sizes = [1, 256], strides = [1, 1]} : vector<4x256xf32> to vector<1x256xf32>
    %94 = vector.broadcast %92 : vector<4x1xf32> to vector<4x256xf32>
    %95 = vector.broadcast %93 : vector<1x256xf32> to vector<4x256xf32>
    %96 = arith.mulf %94, %95 : vector<4x256xf32>
    %97 = arith.addf %91, %96 : vector<4x256xf32>
    %c0_28 = arith.constant 0 : index
    %c16 = arith.constant 16 : index
    %98 = vector.load %arg4[%c0_28, %c16] : memref<4x290xf32, #tpu.memory_space<vmem>>, vector<4x256xf32>
    %99 = arith.mulf %98, %6 : vector<4x256xf32>
    %c0_29 = arith.constant 0 : index
    %c12 = arith.constant 12 : index
    %100 = vector.load %arg2[%c0_29, %c12] : memref<4x74xf32, #tpu.memory_space<vmem>>, vector<4x1xf32>
    %101 = vector.extract_strided_slice %99 {offsets = [0, 0], sizes = [1, 256], strides = [1, 1]} : vector<4x256xf32> to vector<1x256xf32>
    %102 = vector.broadcast %100 : vector<4x1xf32> to vector<4x256xf32>
    %103 = vector.broadcast %101 : vector<1x256xf32> to vector<4x256xf32>
    %104 = arith.mulf %102, %103 : vector<4x256xf32>
    %105 = arith.addf %97, %104 : vector<4x256xf32>
    %c0_30 = arith.constant 0 : index
    %c13 = arith.constant 13 : index
    %106 = vector.load %arg2[%c0_30, %c13] : memref<4x74xf32, #tpu.memory_space<vmem>>, vector<4x1xf32>
    %107 = vector.extract_strided_slice %99 {offsets = [1, 0], sizes = [1, 256], strides = [1, 1]} : vector<4x256xf32> to vector<1x256xf32>
    %108 = vector.broadcast %106 : vector<4x1xf32> to vector<4x256xf32>
    %109 = vector.broadcast %107 : vector<1x256xf32> to vector<4x256xf32>
    %110 = arith.mulf %108, %109 : vector<4x256xf32>
    %111 = arith.addf %105, %110 : vector<4x256xf32>
    %c0_31 = arith.constant 0 : index
    %c14 = arith.constant 14 : index
    %112 = vector.load %arg2[%c0_31, %c14] : memref<4x74xf32, #tpu.memory_space<vmem>>, vector<4x1xf32>
    %113 = vector.extract_strided_slice %99 {offsets = [2, 0], sizes = [1, 256], strides = [1, 1]} : vector<4x256xf32> to vector<1x256xf32>
    %114 = vector.broadcast %112 : vector<4x1xf32> to vector<4x256xf32>
    %115 = vector.broadcast %113 : vector<1x256xf32> to vector<4x256xf32>
    %116 = arith.mulf %114, %115 : vector<4x256xf32>
    %117 = arith.addf %111, %116 : vector<4x256xf32>
    %c0_32 = arith.constant 0 : index
    %c15 = arith.constant 15 : index
    %118 = vector.load %arg2[%c0_32, %c15] : memref<4x74xf32, #tpu.memory_space<vmem>>, vector<4x1xf32>
    %119 = vector.extract_strided_slice %99 {offsets = [3, 0], sizes = [1, 256], strides = [1, 1]} : vector<4x256xf32> to vector<1x256xf32>
    %120 = vector.broadcast %118 : vector<4x1xf32> to vector<4x256xf32>
    %121 = vector.broadcast %119 : vector<1x256xf32> to vector<4x256xf32>
    %122 = arith.mulf %120, %121 : vector<4x256xf32>
    %123 = arith.addf %117, %122 : vector<4x256xf32>
    %c0_33 = arith.constant 0 : index
    %c17_34 = arith.constant 17 : index
    %124 = vector.load %arg4[%c0_33, %c17_34] : memref<4x290xf32, #tpu.memory_space<vmem>>, vector<4x256xf32>
    %c0_35 = arith.constant 0 : index
    %c16_36 = arith.constant 16 : index
    %125 = vector.load %arg2[%c0_35, %c16_36] : memref<4x74xf32, #tpu.memory_space<vmem>>, vector<4x1xf32>
    %126 = vector.extract_strided_slice %124 {offsets = [0, 0], sizes = [1, 256], strides = [1, 1]} : vector<4x256xf32> to vector<1x256xf32>
    %127 = vector.broadcast %125 : vector<4x1xf32> to vector<4x256xf32>
    %128 = vector.broadcast %126 : vector<1x256xf32> to vector<4x256xf32>
    %129 = arith.mulf %127, %128 : vector<4x256xf32>
    %130 = arith.addf %123, %129 : vector<4x256xf32>
    %c0_37 = arith.constant 0 : index
    %c17_38 = arith.constant 17 : index
    %131 = vector.load %arg2[%c0_37, %c17_38] : memref<4x74xf32, #tpu.memory_space<vmem>>, vector<4x1xf32>
    %132 = vector.extract_strided_slice %124 {offsets = [1, 0], sizes = [1, 256], strides = [1, 1]} : vector<4x256xf32> to vector<1x256xf32>
    %133 = vector.broadcast %131 : vector<4x1xf32> to vector<4x256xf32>
    %134 = vector.broadcast %132 : vector<1x256xf32> to vector<4x256xf32>
    %135 = arith.mulf %133, %134 : vector<4x256xf32>
    %136 = arith.addf %130, %135 : vector<4x256xf32>
    %c0_39 = arith.constant 0 : index
    %c18 = arith.constant 18 : index
    %137 = vector.load %arg2[%c0_39, %c18] : memref<4x74xf32, #tpu.memory_space<vmem>>, vector<4x1xf32>
    %138 = vector.extract_strided_slice %124 {offsets = [2, 0], sizes = [1, 256], strides = [1, 1]} : vector<4x256xf32> to vector<1x256xf32>
    %139 = vector.broadcast %137 : vector<4x1xf32> to vector<4x256xf32>
    %140 = vector.broadcast %138 : vector<1x256xf32> to vector<4x256xf32>
    %141 = arith.mulf %139, %140 : vector<4x256xf32>
    %142 = arith.addf %136, %141 : vector<4x256xf32>
    %c0_40 = arith.constant 0 : index
    %c19 = arith.constant 19 : index
    %143 = vector.load %arg2[%c0_40, %c19] : memref<4x74xf32, #tpu.memory_space<vmem>>, vector<4x1xf32>
    %144 = vector.extract_strided_slice %124 {offsets = [3, 0], sizes = [1, 256], strides = [1, 1]} : vector<4x256xf32> to vector<1x256xf32>
    %145 = vector.broadcast %143 : vector<4x1xf32> to vector<4x256xf32>
    %146 = vector.broadcast %144 : vector<1x256xf32> to vector<4x256xf32>
    %147 = arith.mulf %145, %146 : vector<4x256xf32>
    %148 = arith.addf %142, %147 : vector<4x256xf32>
    %c0_41 = arith.constant 0 : index
    %c18_42 = arith.constant 18 : index
    %149 = vector.load %arg4[%c0_41, %c18_42] : memref<4x290xf32, #tpu.memory_space<vmem>>, vector<4x256xf32>
    %150 = arith.mulf %149, %10 : vector<4x256xf32>
    %c0_43 = arith.constant 0 : index
    %c20 = arith.constant 20 : index
    %151 = vector.load %arg2[%c0_43, %c20] : memref<4x74xf32, #tpu.memory_space<vmem>>, vector<4x1xf32>
    %152 = vector.extract_strided_slice %150 {offsets = [0, 0], sizes = [1, 256], strides = [1, 1]} : vector<4x256xf32> to vector<1x256xf32>
    %153 = vector.broadcast %151 : vector<4x1xf32> to vector<4x256xf32>
    %154 = vector.broadcast %152 : vector<1x256xf32> to vector<4x256xf32>
    %155 = arith.mulf %153, %154 : vector<4x256xf32>
    %156 = arith.addf %148, %155 : vector<4x256xf32>
    %c0_44 = arith.constant 0 : index
    %c21 = arith.constant 21 : index
    %157 = vector.load %arg2[%c0_44, %c21] : memref<4x74xf32, #tpu.memory_space<vmem>>, vector<4x1xf32>
    %158 = vector.extract_strided_slice %150 {offsets = [1, 0], sizes = [1, 256], strides = [1, 1]} : vector<4x256xf32> to vector<1x256xf32>
    %159 = vector.broadcast %157 : vector<4x1xf32> to vector<4x256xf32>
    %160 = vector.broadcast %158 : vector<1x256xf32> to vector<4x256xf32>
    %161 = arith.mulf %159, %160 : vector<4x256xf32>
    %162 = arith.addf %156, %161 : vector<4x256xf32>
    %c0_45 = arith.constant 0 : index
    %c22 = arith.constant 22 : index
    %163 = vector.load %arg2[%c0_45, %c22] : memref<4x74xf32, #tpu.memory_space<vmem>>, vector<4x1xf32>
    %164 = vector.extract_strided_slice %150 {offsets = [2, 0], sizes = [1, 256], strides = [1, 1]} : vector<4x256xf32> to vector<1x256xf32>
    %165 = vector.broadcast %163 : vector<4x1xf32> to vector<4x256xf32>
    %166 = vector.broadcast %164 : vector<1x256xf32> to vector<4x256xf32>
    %167 = arith.mulf %165, %166 : vector<4x256xf32>
    %168 = arith.addf %162, %167 : vector<4x256xf32>
    %c0_46 = arith.constant 0 : index
    %c23 = arith.constant 23 : index
    %169 = vector.load %arg2[%c0_46, %c23] : memref<4x74xf32, #tpu.memory_space<vmem>>, vector<4x1xf32>
    %170 = vector.extract_strided_slice %150 {offsets = [3, 0], sizes = [1, 256], strides = [1, 1]} : vector<4x256xf32> to vector<1x256xf32>
    %171 = vector.broadcast %169 : vector<4x1xf32> to vector<4x256xf32>
    %172 = vector.broadcast %170 : vector<1x256xf32> to vector<4x256xf32>
    %173 = arith.mulf %171, %172 : vector<4x256xf32>
    %174 = arith.addf %168, %173 : vector<4x256xf32>
    %c0_47 = arith.constant 0 : index
    %c32 = arith.constant 32 : index
    %175 = vector.load %arg4[%c0_47, %c32] : memref<4x290xf32, #tpu.memory_space<vmem>>, vector<4x256xf32>
    %176 = arith.mulf %175, %6 : vector<4x256xf32>
    %c0_48 = arith.constant 0 : index
    %c24 = arith.constant 24 : index
    %177 = vector.load %arg2[%c0_48, %c24] : memref<4x74xf32, #tpu.memory_space<vmem>>, vector<4x1xf32>
    %178 = vector.extract_strided_slice %176 {offsets = [0, 0], sizes = [1, 256], strides = [1, 1]} : vector<4x256xf32> to vector<1x256xf32>
    %179 = vector.broadcast %177 : vector<4x1xf32> to vector<4x256xf32>
    %180 = vector.broadcast %178 : vector<1x256xf32> to vector<4x256xf32>
    %181 = arith.mulf %179, %180 : vector<4x256xf32>
    %182 = arith.addf %174, %181 : vector<4x256xf32>
    %c0_49 = arith.constant 0 : index
    %c25 = arith.constant 25 : index
    %183 = vector.load %arg2[%c0_49, %c25] : memref<4x74xf32, #tpu.memory_space<vmem>>, vector<4x1xf32>
    %184 = vector.extract_strided_slice %176 {offsets = [1, 0], sizes = [1, 256], strides = [1, 1]} : vector<4x256xf32> to vector<1x256xf32>
    %185 = vector.broadcast %183 : vector<4x1xf32> to vector<4x256xf32>
    %186 = vector.broadcast %184 : vector<1x256xf32> to vector<4x256xf32>
    %187 = arith.mulf %185, %186 : vector<4x256xf32>
    %188 = arith.addf %182, %187 : vector<4x256xf32>
    %c0_50 = arith.constant 0 : index
    %c26 = arith.constant 26 : index
    %189 = vector.load %arg2[%c0_50, %c26] : memref<4x74xf32, #tpu.memory_space<vmem>>, vector<4x1xf32>
    %190 = vector.extract_strided_slice %176 {offsets = [2, 0], sizes = [1, 256], strides = [1, 1]} : vector<4x256xf32> to vector<1x256xf32>
    %191 = vector.broadcast %189 : vector<4x1xf32> to vector<4x256xf32>
    %192 = vector.broadcast %190 : vector<1x256xf32> to vector<4x256xf32>
    %193 = arith.mulf %191, %192 : vector<4x256xf32>
    %194 = arith.addf %188, %193 : vector<4x256xf32>
    %c0_51 = arith.constant 0 : index
    %c27 = arith.constant 27 : index
    %195 = vector.load %arg2[%c0_51, %c27] : memref<4x74xf32, #tpu.memory_space<vmem>>, vector<4x1xf32>
    %196 = vector.extract_strided_slice %176 {offsets = [3, 0], sizes = [1, 256], strides = [1, 1]} : vector<4x256xf32> to vector<1x256xf32>
    %197 = vector.broadcast %195 : vector<4x1xf32> to vector<4x256xf32>
    %198 = vector.broadcast %196 : vector<1x256xf32> to vector<4x256xf32>
    %199 = arith.mulf %197, %198 : vector<4x256xf32>
    %200 = arith.addf %194, %199 : vector<4x256xf32>
    %c0_52 = arith.constant 0 : index
    %c33 = arith.constant 33 : index
    %201 = vector.load %arg4[%c0_52, %c33] : memref<4x290xf32, #tpu.memory_space<vmem>>, vector<4x256xf32>
    %c0_53 = arith.constant 0 : index
    %c28 = arith.constant 28 : index
    %202 = vector.load %arg2[%c0_53, %c28] : memref<4x74xf32, #tpu.memory_space<vmem>>, vector<4x1xf32>
    %203 = vector.extract_strided_slice %201 {offsets = [0, 0], sizes = [1, 256], strides = [1, 1]} : vector<4x256xf32> to vector<1x256xf32>
    %204 = vector.broadcast %202 : vector<4x1xf32> to vector<4x256xf32>
    %205 = vector.broadcast %203 : vector<1x256xf32> to vector<4x256xf32>
    %206 = arith.mulf %204, %205 : vector<4x256xf32>
    %207 = arith.addf %200, %206 : vector<4x256xf32>
    %c0_54 = arith.constant 0 : index
    %c29 = arith.constant 29 : index
    %208 = vector.load %arg2[%c0_54, %c29] : memref<4x74xf32, #tpu.memory_space<vmem>>, vector<4x1xf32>
    %209 = vector.extract_strided_slice %201 {offsets = [1, 0], sizes = [1, 256], strides = [1, 1]} : vector<4x256xf32> to vector<1x256xf32>
    %210 = vector.broadcast %208 : vector<4x1xf32> to vector<4x256xf32>
    %211 = vector.broadcast %209 : vector<1x256xf32> to vector<4x256xf32>
    %212 = arith.mulf %210, %211 : vector<4x256xf32>
    %213 = arith.addf %207, %212 : vector<4x256xf32>
    %c0_55 = arith.constant 0 : index
    %c30 = arith.constant 30 : index
    %214 = vector.load %arg2[%c0_55, %c30] : memref<4x74xf32, #tpu.memory_space<vmem>>, vector<4x1xf32>
    %215 = vector.extract_strided_slice %201 {offsets = [2, 0], sizes = [1, 256], strides = [1, 1]} : vector<4x256xf32> to vector<1x256xf32>
    %216 = vector.broadcast %214 : vector<4x1xf32> to vector<4x256xf32>
    %217 = vector.broadcast %215 : vector<1x256xf32> to vector<4x256xf32>
    %218 = arith.mulf %216, %217 : vector<4x256xf32>
    %219 = arith.addf %213, %218 : vector<4x256xf32>
    %c0_56 = arith.constant 0 : index
    %c31 = arith.constant 31 : index
    %220 = vector.load %arg2[%c0_56, %c31] : memref<4x74xf32, #tpu.memory_space<vmem>>, vector<4x1xf32>
    %221 = vector.extract_strided_slice %201 {offsets = [3, 0], sizes = [1, 256], strides = [1, 1]} : vector<4x256xf32> to vector<1x256xf32>
    %222 = vector.broadcast %220 : vector<4x1xf32> to vector<4x256xf32>
    %223 = vector.broadcast %221 : vector<1x256xf32> to vector<4x256xf32>
    %224 = arith.mulf %222, %223 : vector<4x256xf32>
    %225 = arith.addf %219, %224 : vector<4x256xf32>
    %c0_57 = arith.constant 0 : index
    %c34 = arith.constant 34 : index
    %226 = vector.load %arg4[%c0_57, %c34] : memref<4x290xf32, #tpu.memory_space<vmem>>, vector<4x256xf32>
    %227 = arith.mulf %226, %10 : vector<4x256xf32>
    %c0_58 = arith.constant 0 : index
    %c32_59 = arith.constant 32 : index
    %228 = vector.load %arg2[%c0_58, %c32_59] : memref<4x74xf32, #tpu.memory_space<vmem>>, vector<4x1xf32>
    %229 = vector.extract_strided_slice %227 {offsets = [0, 0], sizes = [1, 256], strides = [1, 1]} : vector<4x256xf32> to vector<1x256xf32>
    %230 = vector.broadcast %228 : vector<4x1xf32> to vector<4x256xf32>
    %231 = vector.broadcast %229 : vector<1x256xf32> to vector<4x256xf32>
    %232 = arith.mulf %230, %231 : vector<4x256xf32>
    %233 = arith.addf %225, %232 : vector<4x256xf32>
    %c0_60 = arith.constant 0 : index
    %c33_61 = arith.constant 33 : index
    %234 = vector.load %arg2[%c0_60, %c33_61] : memref<4x74xf32, #tpu.memory_space<vmem>>, vector<4x1xf32>
    %235 = vector.extract_strided_slice %227 {offsets = [1, 0], sizes = [1, 256], strides = [1, 1]} : vector<4x256xf32> to vector<1x256xf32>
    %236 = vector.broadcast %234 : vector<4x1xf32> to vector<4x256xf32>
    %237 = vector.broadcast %235 : vector<1x256xf32> to vector<4x256xf32>
    %238 = arith.mulf %236, %237 : vector<4x256xf32>
    %239 = arith.addf %233, %238 : vector<4x256xf32>
    %c0_62 = arith.constant 0 : index
    %c34_63 = arith.constant 34 : index
    %240 = vector.load %arg2[%c0_62, %c34_63] : memref<4x74xf32, #tpu.memory_space<vmem>>, vector<4x1xf32>
    %241 = vector.extract_strided_slice %227 {offsets = [2, 0], sizes = [1, 256], strides = [1, 1]} : vector<4x256xf32> to vector<1x256xf32>
    %242 = vector.broadcast %240 : vector<4x1xf32> to vector<4x256xf32>
    %243 = vector.broadcast %241 : vector<1x256xf32> to vector<4x256xf32>
    %244 = arith.mulf %242, %243 : vector<4x256xf32>
    %245 = arith.addf %239, %244 : vector<4x256xf32>
    %c0_64 = arith.constant 0 : index
    %c35 = arith.constant 35 : index
    %246 = vector.load %arg2[%c0_64, %c35] : memref<4x74xf32, #tpu.memory_space<vmem>>, vector<4x1xf32>
    %247 = vector.extract_strided_slice %227 {offsets = [3, 0], sizes = [1, 256], strides = [1, 1]} : vector<4x256xf32> to vector<1x256xf32>
    %248 = vector.broadcast %246 : vector<4x1xf32> to vector<4x256xf32>
    %249 = vector.broadcast %247 : vector<1x256xf32> to vector<4x256xf32>
    %250 = arith.mulf %248, %249 : vector<4x256xf32>
    %251 = arith.addf %245, %250 : vector<4x256xf32>
    %c0_65 = arith.constant 0 : index
    %c17_66 = arith.constant 17 : index
    %252 = vector.load %arg4[%c0_65, %c17_66] : memref<4x290xf32, #tpu.memory_space<vmem>>, vector<4x256xf32>
    tpu.vector_store %arg4[%c0_65, %c17_66], %251 {strides = array<i32>} : memref<4x290xf32, #tpu.memory_space<vmem>>, vector<4x256xf32>,
    %c0_67 = arith.constant 0 : index
    %c73 = arith.constant 73 : index
    %253 = vector.load %arg2[%c0_67, %c73] : memref<4x74xf32, #tpu.memory_space<vmem>>, vector<4x1xf32>
    %254 = vector.shape_cast %253 : vector<4x1xf32> to vector<4x1xf32>
    %255 = vector.broadcast %254 : vector<4x1xf32> to vector<4x256xf32>
    %c0_68 = arith.constant 0 : index
    %c0_69 = arith.constant 0 : index
    %256 = vector.load %arg4[%c0_68, %c0_69] : memref<4x290xf32, #tpu.memory_space<vmem>>, vector<4x256xf32>
    %257 = arith.mulf %256, %6 : vector<4x256xf32>
    %c0_70 = arith.constant 0 : index
    %c37 = arith.constant 37 : index
    %258 = vector.load %arg2[%c0_70, %c37] : memref<4x74xf32, #tpu.memory_space<vmem>>, vector<4x1xf32>
    %259 = vector.extract_strided_slice %257 {offsets = [0, 0], sizes = [1, 256], strides = [1, 1]} : vector<4x256xf32> to vector<1x256xf32>
    %260 = vector.broadcast %258 : vector<4x1xf32> to vector<4x256xf32>
    %261 = vector.broadcast %259 : vector<1x256xf32> to vector<4x256xf32>
    %262 = arith.mulf %260, %261 : vector<4x256xf32>
    %263 = arith.addf %255, %262 : vector<4x256xf32>
    %c0_71 = arith.constant 0 : index
    %c38 = arith.constant 38 : index
    %264 = vector.load %arg2[%c0_71, %c38] : memref<4x74xf32, #tpu.memory_space<vmem>>, vector<4x1xf32>
    %265 = vector.extract_strided_slice %257 {offsets = [1, 0], sizes = [1, 256], strides = [1, 1]} : vector<4x256xf32> to vector<1x256xf32>
    %266 = vector.broadcast %264 : vector<4x1xf32> to vector<4x256xf32>
    %267 = vector.broadcast %265 : vector<1x256xf32> to vector<4x256xf32>
    %268 = arith.mulf %266, %267 : vector<4x256xf32>
    %269 = arith.addf %263, %268 : vector<4x256xf32>
    %c0_72 = arith.constant 0 : index
    %c39 = arith.constant 39 : index
    %270 = vector.load %arg2[%c0_72, %c39] : memref<4x74xf32, #tpu.memory_space<vmem>>, vector<4x1xf32>
    %271 = vector.extract_strided_slice %257 {offsets = [2, 0], sizes = [1, 256], strides = [1, 1]} : vector<4x256xf32> to vector<1x256xf32>
    %272 = vector.broadcast %270 : vector<4x1xf32> to vector<4x256xf32>
    %273 = vector.broadcast %271 : vector<1x256xf32> to vector<4x256xf32>
    %274 = arith.mulf %272, %273 : vector<4x256xf32>
    %275 = arith.addf %269, %274 : vector<4x256xf32>
    %c0_73 = arith.constant 0 : index
    %c40 = arith.constant 40 : index
    %276 = vector.load %arg2[%c0_73, %c40] : memref<4x74xf32, #tpu.memory_space<vmem>>, vector<4x1xf32>
    %277 = vector.extract_strided_slice %257 {offsets = [3, 0], sizes = [1, 256], strides = [1, 1]} : vector<4x256xf32> to vector<1x256xf32>
    %278 = vector.broadcast %276 : vector<4x1xf32> to vector<4x256xf32>
    %279 = vector.broadcast %277 : vector<1x256xf32> to vector<4x256xf32>
    %280 = arith.mulf %278, %279 : vector<4x256xf32>
    %281 = arith.addf %275, %280 : vector<4x256xf32>
    %c0_74 = arith.constant 0 : index
    %c1_75 = arith.constant 1 : index
    %282 = vector.load %arg4[%c0_74, %c1_75] : memref<4x290xf32, #tpu.memory_space<vmem>>, vector<4x256xf32>
    %c0_76 = arith.constant 0 : index
    %c41 = arith.constant 41 : index
    %283 = vector.load %arg2[%c0_76, %c41] : memref<4x74xf32, #tpu.memory_space<vmem>>, vector<4x1xf32>
    %284 = vector.extract_strided_slice %282 {offsets = [0, 0], sizes = [1, 256], strides = [1, 1]} : vector<4x256xf32> to vector<1x256xf32>
    %285 = vector.broadcast %283 : vector<4x1xf32> to vector<4x256xf32>
    %286 = vector.broadcast %284 : vector<1x256xf32> to vector<4x256xf32>
    %287 = arith.mulf %285, %286 : vector<4x256xf32>
    %288 = arith.addf %281, %287 : vector<4x256xf32>
    %c0_77 = arith.constant 0 : index
    %c42 = arith.constant 42 : index
    %289 = vector.load %arg2[%c0_77, %c42] : memref<4x74xf32, #tpu.memory_space<vmem>>, vector<4x1xf32>
    %290 = vector.extract_strided_slice %282 {offsets = [1, 0], sizes = [1, 256], strides = [1, 1]} : vector<4x256xf32> to vector<1x256xf32>
    %291 = vector.broadcast %289 : vector<4x1xf32> to vector<4x256xf32>
    %292 = vector.broadcast %290 : vector<1x256xf32> to vector<4x256xf32>
    %293 = arith.mulf %291, %292 : vector<4x256xf32>
    %294 = arith.addf %288, %293 : vector<4x256xf32>
    %c0_78 = arith.constant 0 : index
    %c43 = arith.constant 43 : index
    %295 = vector.load %arg2[%c0_78, %c43] : memref<4x74xf32, #tpu.memory_space<vmem>>, vector<4x1xf32>
    %296 = vector.extract_strided_slice %282 {offsets = [2, 0], sizes = [1, 256], strides = [1, 1]} : vector<4x256xf32> to vector<1x256xf32>
    %297 = vector.broadcast %295 : vector<4x1xf32> to vector<4x256xf32>
    %298 = vector.broadcast %296 : vector<1x256xf32> to vector<4x256xf32>
    %299 = arith.mulf %297, %298 : vector<4x256xf32>
    %300 = arith.addf %294, %299 : vector<4x256xf32>
    %c0_79 = arith.constant 0 : index
    %c44 = arith.constant 44 : index
    %301 = vector.load %arg2[%c0_79, %c44] : memref<4x74xf32, #tpu.memory_space<vmem>>, vector<4x1xf32>
    %302 = vector.extract_strided_slice %282 {offsets = [3, 0], sizes = [1, 256], strides = [1, 1]} : vector<4x256xf32> to vector<1x256xf32>
    %303 = vector.broadcast %301 : vector<4x1xf32> to vector<4x256xf32>
    %304 = vector.broadcast %302 : vector<1x256xf32> to vector<4x256xf32>
    %305 = arith.mulf %303, %304 : vector<4x256xf32>
    %306 = arith.addf %300, %305 : vector<4x256xf32>
    %c0_80 = arith.constant 0 : index
    %c2_81 = arith.constant 2 : index
    %307 = vector.load %arg4[%c0_80, %c2_81] : memref<4x290xf32, #tpu.memory_space<vmem>>, vector<4x256xf32>
    %308 = arith.mulf %307, %10 : vector<4x256xf32>
    %c0_82 = arith.constant 0 : index
    %c45 = arith.constant 45 : index
    %309 = vector.load %arg2[%c0_82, %c45] : memref<4x74xf32, #tpu.memory_space<vmem>>, vector<4x1xf32>
    %310 = vector.extract_strided_slice %308 {offsets = [0, 0], sizes = [1, 256], strides = [1, 1]} : vector<4x256xf32> to vector<1x256xf32>
    %311 = vector.broadcast %309 : vector<4x1xf32> to vector<4x256xf32>
    %312 = vector.broadcast %310 : vector<1x256xf32> to vector<4x256xf32>
    %313 = arith.mulf %311, %312 : vector<4x256xf32>
    %314 = arith.addf %306, %313 : vector<4x256xf32>
    %c0_83 = arith.constant 0 : index
    %c46 = arith.constant 46 : index
    %315 = vector.load %arg2[%c0_83, %c46] : memref<4x74xf32, #tpu.memory_space<vmem>>, vector<4x1xf32>
    %316 = vector.extract_strided_slice %308 {offsets = [1, 0], sizes = [1, 256], strides = [1, 1]} : vector<4x256xf32> to vector<1x256xf32>
    %317 = vector.broadcast %315 : vector<4x1xf32> to vector<4x256xf32>
    %318 = vector.broadcast %316 : vector<1x256xf32> to vector<4x256xf32>
    %319 = arith.mulf %317, %318 : vector<4x256xf32>
    %320 = arith.addf %314, %319 : vector<4x256xf32>
    %c0_84 = arith.constant 0 : index
    %c47 = arith.constant 47 : index
    %321 = vector.load %arg2[%c0_84, %c47] : memref<4x74xf32, #tpu.memory_space<vmem>>, vector<4x1xf32>
    %322 = vector.extract_strided_slice %308 {offsets = [2, 0], sizes = [1, 256], strides = [1, 1]} : vector<4x256xf32> to vector<1x256xf32>
    %323 = vector.broadcast %321 : vector<4x1xf32> to vector<4x256xf32>
    %324 = vector.broadcast %322 : vector<1x256xf32> to vector<4x256xf32>
    %325 = arith.mulf %323, %324 : vector<4x256xf32>
    %326 = arith.addf %320, %325 : vector<4x256xf32>
    %c0_85 = arith.constant 0 : index
    %c48 = arith.constant 48 : index
    %327 = vector.load %arg2[%c0_85, %c48] : memref<4x74xf32, #tpu.memory_space<vmem>>, vector<4x1xf32>
    %328 = vector.extract_strided_slice %308 {offsets = [3, 0], sizes = [1, 256], strides = [1, 1]} : vector<4x256xf32> to vector<1x256xf32>
    %329 = vector.broadcast %327 : vector<4x1xf32> to vector<4x256xf32>
    %330 = vector.broadcast %328 : vector<1x256xf32> to vector<4x256xf32>
    %331 = arith.mulf %329, %330 : vector<4x256xf32>
    %332 = arith.addf %326, %331 : vector<4x256xf32>
    %c0_86 = arith.constant 0 : index
    %c16_87 = arith.constant 16 : index
    %333 = vector.load %arg4[%c0_86, %c16_87] : memref<4x290xf32, #tpu.memory_space<vmem>>, vector<4x256xf32>
    %334 = arith.mulf %333, %6 : vector<4x256xf32>
    %c0_88 = arith.constant 0 : index
    %c49 = arith.constant 49 : index
    %335 = vector.load %arg2[%c0_88, %c49] : memref<4x74xf32, #tpu.memory_space<vmem>>, vector<4x1xf32>
    %336 = vector.extract_strided_slice %334 {offsets = [0, 0], sizes = [1, 256], strides = [1, 1]} : vector<4x256xf32> to vector<1x256xf32>
    %337 = vector.broadcast %335 : vector<4x1xf32> to vector<4x256xf32>
    %338 = vector.broadcast %336 : vector<1x256xf32> to vector<4x256xf32>
    %339 = arith.mulf %337, %338 : vector<4x256xf32>
    %340 = arith.addf %332, %339 : vector<4x256xf32>
    %c0_89 = arith.constant 0 : index
    %c50 = arith.constant 50 : index
    %341 = vector.load %arg2[%c0_89, %c50] : memref<4x74xf32, #tpu.memory_space<vmem>>, vector<4x1xf32>
    %342 = vector.extract_strided_slice %334 {offsets = [1, 0], sizes = [1, 256], strides = [1, 1]} : vector<4x256xf32> to vector<1x256xf32>
    %343 = vector.broadcast %341 : vector<4x1xf32> to vector<4x256xf32>
    %344 = vector.broadcast %342 : vector<1x256xf32> to vector<4x256xf32>
    %345 = arith.mulf %343, %344 : vector<4x256xf32>
    %346 = arith.addf %340, %345 : vector<4x256xf32>
    %c0_90 = arith.constant 0 : index
    %c51 = arith.constant 51 : index
    %347 = vector.load %arg2[%c0_90, %c51] : memref<4x74xf32, #tpu.memory_space<vmem>>, vector<4x1xf32>
    %348 = vector.extract_strided_slice %334 {offsets = [2, 0], sizes = [1, 256], strides = [1, 1]} : vector<4x256xf32> to vector<1x256xf32>
    %349 = vector.broadcast %347 : vector<4x1xf32> to vector<4x256xf32>
    %350 = vector.broadcast %348 : vector<1x256xf32> to vector<4x256xf32>
    %351 = arith.mulf %349, %350 : vector<4x256xf32>
    %352 = arith.addf %346, %351 : vector<4x256xf32>
    %c0_91 = arith.constant 0 : index
    %c52 = arith.constant 52 : index
    %353 = vector.load %arg2[%c0_91, %c52] : memref<4x74xf32, #tpu.memory_space<vmem>>, vector<4x1xf32>
    %354 = vector.extract_strided_slice %334 {offsets = [3, 0], sizes = [1, 256], strides = [1, 1]} : vector<4x256xf32> to vector<1x256xf32>
    %355 = vector.broadcast %353 : vector<4x1xf32> to vector<4x256xf32>
    %356 = vector.broadcast %354 : vector<1x256xf32> to vector<4x256xf32>
    %357 = arith.mulf %355, %356 : vector<4x256xf32>
    %358 = arith.addf %352, %357 : vector<4x256xf32>
    %c0_92 = arith.constant 0 : index
    %c17_93 = arith.constant 17 : index
    %359 = vector.load %arg4[%c0_92, %c17_93] : memref<4x290xf32, #tpu.memory_space<vmem>>, vector<4x256xf32>
    %c0_94 = arith.constant 0 : index
    %c53 = arith.constant 53 : index
    %360 = vector.load %arg2[%c0_94, %c53] : memref<4x74xf32, #tpu.memory_space<vmem>>, vector<4x1xf32>
    %361 = vector.extract_strided_slice %359 {offsets = [0, 0], sizes = [1, 256], strides = [1, 1]} : vector<4x256xf32> to vector<1x256xf32>
    %362 = vector.broadcast %360 : vector<4x1xf32> to vector<4x256xf32>
    %363 = vector.broadcast %361 : vector<1x256xf32> to vector<4x256xf32>
    %364 = arith.mulf %362, %363 : vector<4x256xf32>
    %365 = arith.addf %358, %364 : vector<4x256xf32>
    %c0_95 = arith.constant 0 : index
    %c54 = arith.constant 54 : index
    %366 = vector.load %arg2[%c0_95, %c54] : memref<4x74xf32, #tpu.memory_space<vmem>>, vector<4x1xf32>
    %367 = vector.extract_strided_slice %359 {offsets = [1, 0], sizes = [1, 256], strides = [1, 1]} : vector<4x256xf32> to vector<1x256xf32>
    %368 = vector.broadcast %366 : vector<4x1xf32> to vector<4x256xf32>
    %369 = vector.broadcast %367 : vector<1x256xf32> to vector<4x256xf32>
    %370 = arith.mulf %368, %369 : vector<4x256xf32>
    %371 = arith.addf %365, %370 : vector<4x256xf32>
    %c0_96 = arith.constant 0 : index
    %c55 = arith.constant 55 : index
    %372 = vector.load %arg2[%c0_96, %c55] : memref<4x74xf32, #tpu.memory_space<vmem>>, vector<4x1xf32>
    %373 = vector.extract_strided_slice %359 {offsets = [2, 0], sizes = [1, 256], strides = [1, 1]} : vector<4x256xf32> to vector<1x256xf32>
    %374 = vector.broadcast %372 : vector<4x1xf32> to vector<4x256xf32>
    %375 = vector.broadcast %373 : vector<1x256xf32> to vector<4x256xf32>
    %376 = arith.mulf %374, %375 : vector<4x256xf32>
    %377 = arith.addf %371, %376 : vector<4x256xf32>
    %c0_97 = arith.constant 0 : index
    %c56 = arith.constant 56 : index
    %378 = vector.load %arg2[%c0_97, %c56] : memref<4x74xf32, #tpu.memory_space<vmem>>, vector<4x1xf32>
    %379 = vector.extract_strided_slice %359 {offsets = [3, 0], sizes = [1, 256], strides = [1, 1]} : vector<4x256xf32> to vector<1x256xf32>
    %380 = vector.broadcast %378 : vector<4x1xf32> to vector<4x256xf32>
    %381 = vector.broadcast %379 : vector<1x256xf32> to vector<4x256xf32>
    %382 = arith.mulf %380, %381 : vector<4x256xf32>
    %383 = arith.addf %377, %382 : vector<4x256xf32>
    %c0_98 = arith.constant 0 : index
    %c18_99 = arith.constant 18 : index
    %384 = vector.load %arg4[%c0_98, %c18_99] : memref<4x290xf32, #tpu.memory_space<vmem>>, vector<4x256xf32>
    %385 = arith.mulf %384, %10 : vector<4x256xf32>
    %c0_100 = arith.constant 0 : index
    %c57 = arith.constant 57 : index
    %386 = vector.load %arg2[%c0_100, %c57] : memref<4x74xf32, #tpu.memory_space<vmem>>, vector<4x1xf32>
    %387 = vector.extract_strided_slice %385 {offsets = [0, 0], sizes = [1, 256], strides = [1, 1]} : vector<4x256xf32> to vector<1x256xf32>
    %388 = vector.broadcast %386 : vector<4x1xf32> to vector<4x256xf32>
    %389 = vector.broadcast %387 : vector<1x256xf32> to vector<4x256xf32>
    %390 = arith.mulf %388, %389 : vector<4x256xf32>
    %391 = arith.addf %383, %390 : vector<4x256xf32>
    %c0_101 = arith.constant 0 : index
    %c58 = arith.constant 58 : index
    %392 = vector.load %arg2[%c0_101, %c58] : memref<4x74xf32, #tpu.memory_space<vmem>>, vector<4x1xf32>
    %393 = vector.extract_strided_slice %385 {offsets = [1, 0], sizes = [1, 256], strides = [1, 1]} : vector<4x256xf32> to vector<1x256xf32>
    %394 = vector.broadcast %392 : vector<4x1xf32> to vector<4x256xf32>
    %395 = vector.broadcast %393 : vector<1x256xf32> to vector<4x256xf32>
    %396 = arith.mulf %394, %395 : vector<4x256xf32>
    %397 = arith.addf %391, %396 : vector<4x256xf32>
    %c0_102 = arith.constant 0 : index
    %c59 = arith.constant 59 : index
    %398 = vector.load %arg2[%c0_102, %c59] : memref<4x74xf32, #tpu.memory_space<vmem>>, vector<4x1xf32>
    %399 = vector.extract_strided_slice %385 {offsets = [2, 0], sizes = [1, 256], strides = [1, 1]} : vector<4x256xf32> to vector<1x256xf32>
    %400 = vector.broadcast %398 : vector<4x1xf32> to vector<4x256xf32>
    %401 = vector.broadcast %399 : vector<1x256xf32> to vector<4x256xf32>
    %402 = arith.mulf %400, %401 : vector<4x256xf32>
    %403 = arith.addf %397, %402 : vector<4x256xf32>
    %c0_103 = arith.constant 0 : index
    %c60 = arith.constant 60 : index
    %404 = vector.load %arg2[%c0_103, %c60] : memref<4x74xf32, #tpu.memory_space<vmem>>, vector<4x1xf32>
    %405 = vector.extract_strided_slice %385 {offsets = [3, 0], sizes = [1, 256], strides = [1, 1]} : vector<4x256xf32> to vector<1x256xf32>
    %406 = vector.broadcast %404 : vector<4x1xf32> to vector<4x256xf32>
    %407 = vector.broadcast %405 : vector<1x256xf32> to vector<4x256xf32>
    %408 = arith.mulf %406, %407 : vector<4x256xf32>
    %409 = arith.addf %403, %408 : vector<4x256xf32>
    %c0_104 = arith.constant 0 : index
    %c32_105 = arith.constant 32 : index
    %410 = vector.load %arg4[%c0_104, %c32_105] : memref<4x290xf32, #tpu.memory_space<vmem>>, vector<4x256xf32>
    %411 = arith.mulf %410, %6 : vector<4x256xf32>
    %c0_106 = arith.constant 0 : index
    %c61 = arith.constant 61 : index
    %412 = vector.load %arg2[%c0_106, %c61] : memref<4x74xf32, #tpu.memory_space<vmem>>, vector<4x1xf32>
    %413 = vector.extract_strided_slice %411 {offsets = [0, 0], sizes = [1, 256], strides = [1, 1]} : vector<4x256xf32> to vector<1x256xf32>
    %414 = vector.broadcast %412 : vector<4x1xf32> to vector<4x256xf32>
    %415 = vector.broadcast %413 : vector<1x256xf32> to vector<4x256xf32>
    %416 = arith.mulf %414, %415 : vector<4x256xf32>
    %417 = arith.addf %409, %416 : vector<4x256xf32>
    %c0_107 = arith.constant 0 : index
    %c62 = arith.constant 62 : index
    %418 = vector.load %arg2[%c0_107, %c62] : memref<4x74xf32, #tpu.memory_space<vmem>>, vector<4x1xf32>
    %419 = vector.extract_strided_slice %411 {offsets = [1, 0], sizes = [1, 256], strides = [1, 1]} : vector<4x256xf32> to vector<1x256xf32>
    %420 = vector.broadcast %418 : vector<4x1xf32> to vector<4x256xf32>
    %421 = vector.broadcast %419 : vector<1x256xf32> to vector<4x256xf32>
    %422 = arith.mulf %420, %421 : vector<4x256xf32>
    %423 = arith.addf %417, %422 : vector<4x256xf32>
    %c0_108 = arith.constant 0 : index
    %c63 = arith.constant 63 : index
    %424 = vector.load %arg2[%c0_108, %c63] : memref<4x74xf32, #tpu.memory_space<vmem>>, vector<4x1xf32>
    %425 = vector.extract_strided_slice %411 {offsets = [2, 0], sizes = [1, 256], strides = [1, 1]} : vector<4x256xf32> to vector<1x256xf32>
    %426 = vector.broadcast %424 : vector<4x1xf32> to vector<4x256xf32>
    %427 = vector.broadcast %425 : vector<1x256xf32> to vector<4x256xf32>
    %428 = arith.mulf %426, %427 : vector<4x256xf32>
    %429 = arith.addf %423, %428 : vector<4x256xf32>
    %c0_109 = arith.constant 0 : index
    %c64 = arith.constant 64 : index
    %430 = vector.load %arg2[%c0_109, %c64] : memref<4x74xf32, #tpu.memory_space<vmem>>, vector<4x1xf32>
    %431 = vector.extract_strided_slice %411 {offsets = [3, 0], sizes = [1, 256], strides = [1, 1]} : vector<4x256xf32> to vector<1x256xf32>
    %432 = vector.broadcast %430 : vector<4x1xf32> to vector<4x256xf32>
    %433 = vector.broadcast %431 : vector<1x256xf32> to vector<4x256xf32>
    %434 = arith.mulf %432, %433 : vector<4x256xf32>
    %435 = arith.addf %429, %434 : vector<4x256xf32>
    %c0_110 = arith.constant 0 : index
    %c33_111 = arith.constant 33 : index
    %436 = vector.load %arg4[%c0_110, %c33_111] : memref<4x290xf32, #tpu.memory_space<vmem>>, vector<4x256xf32>
    %c0_112 = arith.constant 0 : index
    %c65 = arith.constant 65 : index
    %437 = vector.load %arg2[%c0_112, %c65] : memref<4x74xf32, #tpu.memory_space<vmem>>, vector<4x1xf32>
    %438 = vector.extract_strided_slice %436 {offsets = [0, 0], sizes = [1, 256], strides = [1, 1]} : vector<4x256xf32> to vector<1x256xf32>
    %439 = vector.broadcast %437 : vector<4x1xf32> to vector<4x256xf32>
    %440 = vector.broadcast %438 : vector<1x256xf32> to vector<4x256xf32>
    %441 = arith.mulf %439, %440 : vector<4x256xf32>
    %442 = arith.addf %435, %441 : vector<4x256xf32>
    %c0_113 = arith.constant 0 : index
    %c66 = arith.constant 66 : index
    %443 = vector.load %arg2[%c0_113, %c66] : memref<4x74xf32, #tpu.memory_space<vmem>>, vector<4x1xf32>
    %444 = vector.extract_strided_slice %436 {offsets = [1, 0], sizes = [1, 256], strides = [1, 1]} : vector<4x256xf32> to vector<1x256xf32>
    %445 = vector.broadcast %443 : vector<4x1xf32> to vector<4x256xf32>
    %446 = vector.broadcast %444 : vector<1x256xf32> to vector<4x256xf32>
    %447 = arith.mulf %445, %446 : vector<4x256xf32>
    %448 = arith.addf %442, %447 : vector<4x256xf32>
    %c0_114 = arith.constant 0 : index
    %c67 = arith.constant 67 : index
    %449 = vector.load %arg2[%c0_114, %c67] : memref<4x74xf32, #tpu.memory_space<vmem>>, vector<4x1xf32>
    %450 = vector.extract_strided_slice %436 {offsets = [2, 0], sizes = [1, 256], strides = [1, 1]} : vector<4x256xf32> to vector<1x256xf32>
    %451 = vector.broadcast %449 : vector<4x1xf32> to vector<4x256xf32>
    %452 = vector.broadcast %450 : vector<1x256xf32> to vector<4x256xf32>
    %453 = arith.mulf %451, %452 : vector<4x256xf32>
    %454 = arith.addf %448, %453 : vector<4x256xf32>
    %c0_115 = arith.constant 0 : index
    %c68 = arith.constant 68 : index
    %455 = vector.load %arg2[%c0_115, %c68] : memref<4x74xf32, #tpu.memory_space<vmem>>, vector<4x1xf32>
    %456 = vector.extract_strided_slice %436 {offsets = [3, 0], sizes = [1, 256], strides = [1, 1]} : vector<4x256xf32> to vector<1x256xf32>
    %457 = vector.broadcast %455 : vector<4x1xf32> to vector<4x256xf32>
    %458 = vector.broadcast %456 : vector<1x256xf32> to vector<4x256xf32>
    %459 = arith.mulf %457, %458 : vector<4x256xf32>
    %460 = arith.addf %454, %459 : vector<4x256xf32>
    %c0_116 = arith.constant 0 : index
    %c34_117 = arith.constant 34 : index
    %461 = vector.load %arg4[%c0_116, %c34_117] : memref<4x290xf32, #tpu.memory_space<vmem>>, vector<4x256xf32>
    %462 = arith.mulf %461, %10 : vector<4x256xf32>
    %c0_118 = arith.constant 0 : index
    %c69 = arith.constant 69 : index
    %463 = vector.load %arg2[%c0_118, %c69] : memref<4x74xf32, #tpu.memory_space<vmem>>, vector<4x1xf32>
    %464 = vector.extract_strided_slice %462 {offsets = [0, 0], sizes = [1, 256], strides = [1, 1]} : vector<4x256xf32> to vector<1x256xf32>
    %465 = vector.broadcast %463 : vector<4x1xf32> to vector<4x256xf32>
    %466 = vector.broadcast %464 : vector<1x256xf32> to vector<4x256xf32>
    %467 = arith.mulf %465, %466 : vector<4x256xf32>
    %468 = arith.addf %460, %467 : vector<4x256xf32>
    %c0_119 = arith.constant 0 : index
    %c70 = arith.constant 70 : index
    %469 = vector.load %arg2[%c0_119, %c70] : memref<4x74xf32, #tpu.memory_space<vmem>>, vector<4x1xf32>
    %470 = vector.extract_strided_slice %462 {offsets = [1, 0], sizes = [1, 256], strides = [1, 1]} : vector<4x256xf32> to vector<1x256xf32>
    %471 = vector.broadcast %469 : vector<4x1xf32> to vector<4x256xf32>
    %472 = vector.broadcast %470 : vector<1x256xf32> to vector<4x256xf32>
    %473 = arith.mulf %471, %472 : vector<4x256xf32>
    %474 = arith.addf %468, %473 : vector<4x256xf32>
    %c0_120 = arith.constant 0 : index
    %c71 = arith.constant 71 : index
    %475 = vector.load %arg2[%c0_120, %c71] : memref<4x74xf32, #tpu.memory_space<vmem>>, vector<4x1xf32>
    %476 = vector.extract_strided_slice %462 {offsets = [2, 0], sizes = [1, 256], strides = [1, 1]} : vector<4x256xf32> to vector<1x256xf32>
    %477 = vector.broadcast %475 : vector<4x1xf32> to vector<4x256xf32>
    %478 = vector.broadcast %476 : vector<1x256xf32> to vector<4x256xf32>
    %479 = arith.mulf %477, %478 : vector<4x256xf32>
    %480 = arith.addf %474, %479 : vector<4x256xf32>
    %c0_121 = arith.constant 0 : index
    %c72 = arith.constant 72 : index
    %481 = vector.load %arg2[%c0_121, %c72] : memref<4x74xf32, #tpu.memory_space<vmem>>, vector<4x1xf32>
    %482 = vector.extract_strided_slice %462 {offsets = [3, 0], sizes = [1, 256], strides = [1, 1]} : vector<4x256xf32> to vector<1x256xf32>
    %483 = vector.broadcast %481 : vector<4x1xf32> to vector<4x256xf32>
    %484 = vector.broadcast %482 : vector<1x256xf32> to vector<4x256xf32>
    %485 = arith.mulf %483, %484 : vector<4x256xf32>
    %486 = arith.addf %480, %485 : vector<4x256xf32>
    %c0_122 = arith.constant 0 : index
    %c0_123 = arith.constant 0 : index
    %c0_124 = arith.constant 0 : index
    %487 = vector.load %arg3[%c0_122, %c0_123, %c0_124] : memref<1x4x256xf32, #tpu.memory_space<vmem>>, vector<1x4x256xf32>
    %488 = vector.shape_cast %487 : vector<1x4x256xf32> to vector<4x256xf32>
    %489 = vector.shape_cast %486 : vector<4x256xf32> to vector<1x4x256xf32>
    tpu.vector_store %arg3[%c0_122, %c0_123, %c0_124], %489 {strides = array<i32>} : memref<1x4x256xf32, #tpu.memory_space<vmem>>, vector<1x4x256xf32>,
    return
  }
  func.func @transform_0(%arg0: i32) -> (i32, i32, i32) {
    %c0_i32 = arith.constant 0 : i32
    %c0_i32_0 = arith.constant 0 : i32
    %c0_i32_1 = arith.constant 0 : i32
    return %arg0, %c0_i32, %c0_i32_0 : i32, i32, i32
  }
  func.func @transform_1(%arg0: i32) -> (i32, i32) {
    %c0_i32 = arith.constant 0 : i32
    %c0_i32_0 = arith.constant 0 : i32
    %c0_i32_1 = arith.constant 0 : i32
    return %c0_i32, %c0_i32_0 : i32, i32
  }
  func.func @transform_2(%arg0: i32) -> (i32, i32, i32) {
    %c0_i32 = arith.constant 0 : i32
    %c0_i32_0 = arith.constant 0 : i32
    %c0_i32_1 = arith.constant 0 : i32
    return %arg0, %c0_i32, %c0_i32_0 : i32, i32, i32
  }
}

</mosaic_0001>

<bundles_post_ra>
// kernel: tpu_custom_call.1
= control target key start
LH: loop header
LB: loop body
LE: loop exit
PB: predicated region body
PF: predicated region fallthrough
CT: control target
= control target key end

     0   :  { %7 = vsyncpa [#allocation4], 0  ;;  %s6158_s0 = inlined_call_operand.hbm [shape: f32[2,4,256], index: 0, kind: input, shape index: {}]   ;;  %s6159_s1 = inlined_call_operand.hbm [shape: f32[4,74], index: 1, kind: input, shape index: {}]   ;;  %s6160_s2 = inlined_call_operand.hbm [shape: f32[2,4,256], index: 2, kind: output, shape index: {}]  }
   0x1   :  { %9 = vsyncpa [#allocation4 + $0x1], 0 }
   0x2   :  { %10 = vsyncpa [#allocation7], 0 }
   0x3   :  { %11 = vsyncpa [#allocation5], 0 }
   0x4   :  { %13 = vsyncpa [#allocation5 + $0x1], 0  ;;  %s4309_s9 = smov 0   ;;  %s4311_s10 = smov 0  }
   0x5   :  { %s4313_s11 = smov 0   ;;  %s4315_s12 = smov 0  }
   0x6 LB: > { %s4330_s13 = sadd.s32 4294967295, %s4200_s12   ;;  %s3827_s14 = sadd.s32 4294967294, %s4200_s12   ;;  %s4200_s12 = sphi %s4315_s12, %s6372_s12   ;;  %s4196_s11 = sphi %s4313_s11, %s6371_s11   ;;  %s4192_s10 = sphi %s4311_s10, %s6370_s10   ;;  %s4188_s9 = sphi %s4309_s9, %s6369_s9  }
   0x7   : > { %p39_p0 = scmp.ne.s32.totalorder %s4192_s10, %s4188_s9  ;;  %p6161_p1 = scmp.eq.s32.totalorder %s4330_s13, 0 }
   0x8   : > { %p90_p3 = scmp.eq.s32.totalorder %s3827_s14, 1  ;;  %p3828_p5 = scmp.ge.s32.totalorder %s4200_s12, 1 }
   0x9   : > { %p4339_p4 = por %p6161_p1, %p39_p0  ;;  %p97_p7 = scmp.lt.s32.totalorder %s4200_s12, 3 }
   0xa   : > { %p4344_p6 = por %p90_p3, %p39_p0  ;;  %s4202_s18 = smov [#allocation6]  }
   0xb   : > { %s6208_s15 = scalar_select %p4339_p4, 1, 0 }
   0xc   : > { %s6209_s16 = scalar_select %p4344_p6, 1, 0 }
   0xd   : > { %p4349_p8 = pnand %p3828_p5, %p97_p7  ;;  %s110_s19 = sshll.u32 %s4202_s18, 4  ;;  %s111_s19 = int_to_ptr.vmem [resolvable:$true] %s110_s19 }
   0xe   : > { %s4357_s20 = sadd.s32 1, %s4200_s12   ;;  %s26_s24 = sadd.s32 1, %s4196_s11 }
   0xf   : > { %s6210_s17 = scalar_select %p4349_p8, 1, 0 }
  0x10   : > { %p3857_p10 = pneg %p4349_p8  ;;  %s23_s22 = ssub.s32 %s4200_s12, %s4357_s20 }
  0x11   : > { %p4367_p12 = scmp.eq.s32.totalorder %s23_s22, 0  ;;  %s4072_s27 = scalar_lea.hbm %s6159_s1, 64 }
  0x12   : > { %p4361_p11 = pnand %p3857_p10, %p6161_p1  ;;  %p4073_p0 = scmp.ne.s32.totalorder %s6159_s1, %s4072_s27 }
  0x13   : > { %s6212_s23 = scalar_select %p4367_p12, 1, 0 }
  0x14   : > { %p4074_p3 = pneg %p4361_p11  ;;  %p4079_p10 = scmp.lt.u32.totalorder %s4072_s27, %s6159_s1 }
  0x16   : > { %p4075_p5 = pnand %p4074_p3, %p4073_p0 }
  0x18   : > { %p4076_p7 = pneg %p4075_p5 }
  0x1a   : > { %p4081_p9 = pnand %p4079_p10, %p4076_p7 }
  0x1c   : > { %4084 = shalt.err (!%p4081_p9)
}
  0x1d   : > { %s4085_s4 = scalar_lea.vmem %s111_s19, 64  ;;  %p4093_p6 = scmp.lt.s32.totalorder %s111_s19, %s111_s19 }
  0x1e   : > { %p4086_p1 = scmp.ne.s32.totalorder %s111_s19, %s4085_s4  ;;  %p4094_p4 = scmp.lt.s32.totalorder %s4085_s4, %s4085_s4 }
  0x20   : > { %p4088_p2 = pnand %p4086_p1, %p4074_p3  ;;  %p4095_p8 = por %p4094_p4, %p4093_p6 }
  0x22   : > { %p4089_p13 = pneg %p4088_p2 }
  0x24   : > { %p4096_p12 = pnand %p4095_p8, %p4089_p13 }
  0x26   : > { %4099 = shalt.err (!%p4096_p12)
}
  0x27   : > { %3860 = dma.hbm_to_vmem [thread:$0]  (!%p4361_p11), %s6159_s1, 64, %s111_s19, [#allocation7]  }
  0x28   : > { %p6213_p1 = scmp.ne.s32.totalorder %s6212_s23, 0  ;;  %p34_p2 = scmp.eq.s32.totalorder %s4200_s12, 0 }
  0x29   : > { %p6214_p4 = scmp.ne.s32.totalorder %s4196_s11, %s4192_s10  ;;  %p6215_p6 = scmp.eq.s32.totalorder %s4330_s13, 1 }
  0x2a   : > { %s4393_s7 = scalar_select %p6213_p1, %s4196_s11, %s26_s24  }
  0x2b   : > { %p4401_p8 = por %p6215_p6, %p6214_p4  ;;  %p3870_p9 = scmp.lt.s32.totalorder %s4200_s12, 2 }
  0x2c   : > { %s121_s14 = sand.u32 1, %s4196_s11   ;;  %p6217_p12 = pmov %p6214_p4 }
  0x2d   : > { %s3831_s18 = sshll.u32 %s121_s14, 3  ;;  %s3847_s21 = sshll.u32 %s4200_s12, 7 }
  0x2e   : > { %p35_p13 = por %p34_p2, %p6217_p12  ;;  %s4414_s19 = scalar_lea.hbm %s6158_s0, %s3847_s21 }
  0x2f   : > { %s125_s23 = scalar_lea.vmem [#allocation3], %s3831_s18  ;;  %s122_s27 = scalar_lea.sflag [#allocation4], %s121_s14 }
  0x30   : > { %s133_s24 = sshll.u32 %s125_s23, 4  ;;  %p4416_p11 = pnand %p3870_p9, %p35_p13  ;;  %s4420_s24 = int_to_ptr.vmem [resolvable:$true] %s133_s24 }
  0x31   : > { %s4100_s28 = scalar_lea.hbm %s4414_s19, 128  ;;  %s4105_s3 = scalar_lea.hbm %s6158_s0, 256 }
  0x32   : > { %p4101_p0 = scmp.ne.s32.totalorder %s4414_s19, %s4100_s28  ;;  %p4102_p3 = pneg %p4416_p11 }
  0x33   : > { %p4106_p10 = scmp.lt.u32.totalorder %s4414_s19, %s6158_s0  ;;  %p4107_p1 = scmp.lt.u32.totalorder %s4105_s3, %s4100_s28 }
  0x34   : > { %p4103_p5 = pnand %p4102_p3, %p4101_p0  ;;  %p4109_p4 = scmp.lt.u32.totalorder %s4100_s28, %s4414_s19 }
  0x35   : > { %p4108_p2 = por %p4107_p1, %p4106_p10 }
  0x36   : > { %p4104_p7 = pneg %p4103_p5 }
  0x37   : > { %p4110_p6 = por %p4109_p4, %p4108_p2 }
  0x39   : > { %p4111_p9 = pnand %p4110_p6, %p4104_p7 }
  0x3b   : > { %4114 = shalt.err (!%p4111_p9)
}
  0x3c   : > { %s4115_s6 = scalar_lea.vmem %s4420_s24, 128  ;;  %s4203_s14 = smov [#allocation3]  }
  0x3d   : > { %p4116_p12 = scmp.ne.s32.totalorder %s4420_s24, %s4115_s6  ;;  %s4120_s18 = sshll.u32 %s4203_s14, 4  ;;  %s4121_s18 = int_to_ptr.vmem [resolvable:$false] %s4120_s18 }
  0x3e   : > { %s4122_s21 = scalar_lea.vmem %s4121_s18, 256  ;;  %p4123_p5 = scmp.lt.s32.totalorder %s4420_s24, %s4121_s18 }
  0x3f   : > { %p4118_p13 = pnand %p4116_p12, %p4102_p3  ;;  %p4124_p10 = scmp.lt.s32.totalorder %s4122_s21, %s4115_s6 }
  0x41   : > { %p4119_p0 = pneg %p4118_p13  ;;  %p4125_p1 = por %p4124_p10, %p4123_p5 }
  0x43   : > { %p4126_p2 = pnand %p4125_p1, %p4119_p0 }
  0x45   : > { %4129 = shalt.err (!%p4126_p2)
}
  0x46   : > { %3864 = dma.hbm_to_vmem [thread:$0]  (!%p4416_p11), %s4414_s19, 128, %s4420_s24, %s122_s27  }
  0x47   : > { %p6219_p7 = scmp.ne.s32.totalorder %s6210_s17, 0 }
  0x49   : > { %142 = sbr.rel (%p6219_p7) target bundleno = 3366 (0xd26), region = 28 }
  0x50   : > { %s4450_s22 = sand.u32 1, %s4192_s10   ;;  %p6220_p3 = scmp.ne.s32.totalorder %s6208_s15, 0 }
  0x51   : > { %s3835_s25 = sshll.u32 %s4450_s22, 3  ;;  %s145_s23 = scalar_lea.sflag [#allocation4], %s4450_s22 }
  0x52   : > { %s148_s28 = scalar_lea.vmem [#allocation3], %s3835_s25 }
  0x53   : > { %4175 = dma.done.wait (%p6220_p3), %s145_s23, 128  }
  0x54   : > { %4177 = vsyncadd (%p6220_p3), %s145_s23, 4294967168  ;;  %p6221_p11 = scmp.eq.s32.totalorder %s4330_s13, 0 }
  0x56   : > { %4179 = dma.done.wait (%p6221_p11), [#allocation7], 64   ;;  %p6222_p4 = pmov %p6221_p11 }
  0x57   : > { %v4204_v0 = vmov 0   ;;  %v4205_v1 = vmov 36   ;;  %v220_v2 = vld [vmem:[#allocation6] sm:$0xf]  ;;  %v194_v3 = vld [vmem:[%s148_s28] sm:$0xff]  ;;  %s4206_s17 = smov 17   ;;  %v173_v5 = vlaneseq }
  0x58   : > { %4181 = vsyncadd (%p6222_p4), [#allocation7], 4294967232  ;;  %3996 = vset.pattern.permute.xlu1 %v4204_v0  ;;  %3995 = vset.pattern.permute.xlu0 %v4205_v1  ;;  %v208_v4 = vld [vmem:[#allocation6] sm:$0xf]  ;;  %v4207_v6 = vmov 1   ;;  %vm190_vm0 = vcmask 134144  }
  0x59   : > { %223 = vperm.xlu1 %3996, %v220_v2   ;;  %196 = vrot.lane.b32.xlu0 %v194_v3, %s4206_s17  ;;  %vm192_vm1 = vcmask 273544   ;;  %v4208_v7 = vmov 0.0   ;;  %v174_v8 = vand.u32 127, %v173_v5  ;;  %v4209_v9 = vmov 3   ;;  %v540_v16 = vld [vmem:[#allocation6] sm:$0xf] }
  0x5a   : > { %191 = vst.msk [vmem:[#allocation2] sm:$0xf] %vm190_vm0, %v4208_v7  ;;  %v4210_v10 = vmov 2   ;;  %v4211_v12 = vmov 5   ;;  %v4212_v13 = vmov 4   ;;  %v4213_v17 = vmov 8  }
  0x5b   : > { %193 = vst.msk [vmem:[#allocation2 + $0x8] sm:$0xf] %vm192_vm1, %v4208_v7  ;;  %v175_v11 = vadd.s32 128, %v174_v8  ;;  %v176_v14 = vand.u32 15, %v174_v8  ;;  %v4214_v18 = vmov 6   ;;  %v4215_v22 = vmov 12  }
  0x5c   : > { %v4467_v21 = vld [vmem:[#allocation6] sm:$0xf]  ;;  %v4216_v23 = vmov 7   ;;  %s4217_s15 = smov 2   ;;  %v4218_v25 = vmov 9   ;;  %v4219_v26 = vmov 10  }
  0x5d   : > { %3997 = vset.pattern.permute.xlu1 %v4207_v6  ;;  %211 = vperm.xlu0 %3995, %v208_v4   ;;  %v177_v15 = vand.u32 15, %v175_v11  ;;  %vm184_vm2 = vcmp.ne.s32.totalorder %v176_v14, 15  ;;  %vm178_vm4 = vcmp.ne.s32.totalorder %v176_v14, 0  ;;  %v4220_v29 = vmov 11   ;;  %s4221_s19 = smov 16   ;;  %s4229_s24 = smov 127  }
  0x5e   : > { %250 = vperm.xlu1 %3997, %v220_v2   ;;  %v3840_v19 = vsel %vm184_vm2, 1.0, %v4208_v7  ;;  %v3838_v27 = vsel %vm178_vm4, 1.0, %v4208_v7  ;;  %v4222_v31 = vmov 13   ;;  %v4223_v32 = vmov 14   ;;  %s4230_s26 = smov 111   ;;  %s4231_s27 = smov 126  }
  0x5f   : > { %vm185_vm3 = vcmp.ne.s32.totalorder %v177_v15, 15  ;;  %vm179_vm5 = vcmp.ne.s32.totalorder %v177_v15, 0  ;;  %v4224_v33 = vmov 15   ;;  %v4225_v34 = vmov 16   ;;  %s4232_s29 = smov 112   ;;  %s4234_s30 = smov 18  }
  0x60   : > { %v3841_v20 = vsel %vm185_vm3, 1.0, %v4208_v7  ;;  %v3839_v28 = vsel %vm179_vm5, 1.0, %v4208_v7  ;;  %v4226_v35 = vmov 17   ;;  %v4227_v36 = vmov 18   ;;  %s4236_s3 = smov 110   ;;  %s4240_s4 = smov 32  }
  0x61   : > { %3999 = vset.pattern.permute.xlu0 %v4209_v9  ;;  %v4470_v24 = vcombine.low %v3840_v19, %v3841_v20  ;;  %v4473_v30 = vcombine.low %v3838_v27, %v3839_v28  ;;  %vm203_vm6 = vcmask 1043592   ;;  %vm204_vm7 = vcmask 1047556   ;;  %s4242_s5 = smov 96   ;;  %s4247_s6 = smov 95  }
  0x62   : > { %3998 = vset.pattern.permute.xlu1 %v4210_v10  ;;  %302 = vperm.xlu0 %3999, %v220_v2   ;;  %vm199_vm8 = vcmask 138240   ;;  %vm4482_vm9 = vmor %vm204_vm7, %vm203_vm6  ;;  %v6224_v38 = vmov 0  ;;  %v4228_v41 = vmov 19   ;;  %v228_v43 = vshrl.u32 %v173_v5, 7  ;;  %s4251_s14 = smov 34   ;;  %s4253_s18 = smov 94  }
  0x63   : > { %276 = vperm.xlu1 %3998, %v220_v2   ;;  %6223 = vst [vmem:[#allocation12_spill] sm:$0xff] %v4473_v30  ;;  %v6225_v38 = vsel %vm4482_vm9, 4294967295, %v6224_v38  ;;  %vm534_vm10 = vcmask 15360   ;;  %vm746_vm11 = vcmask 130048   ;;  %vm1157_vm12 = vcmask 146432   ;;  %s3848_s21 = sshll.u32 %s4330_s13, 7 }
  0x64   : > { %6226 = vst [vmem:[#allocation13_spill] sm:$0xff] %v6225_v38  ;;  %v4495_v45 = vsub.s32 1, %v228_v43  ;;  %v4501_v48 = vsub.s32 0, %v228_v43  ;;  %v4511_v53 = vsub.s32 2, %v228_v43  ;;  %v4525_v63 = vsub.s32 5, %v228_v43  ;;  %s172_s23 = scalar_lea.vmem [#allocation8], %s3835_s25 }
  0x65   : > { %v4527_v0 = vsub.s32 3, %v228_v43  ;;  %v4548_v10 = vsub.s32 6, %v228_v43  ;;  %vm1369_vm13 = vcmask 261120   ;;  %vm1780_vm14 = vcmask 277504   ;;  %s3747_s28 = sshll.u32 %s172_s23, 4  ;;  %s4293_s13 = smov [#allocation8]   ;;  %s6116_s28 = int_to_ptr.vmem [resolvable:$true] %s3747_s28 }
  0x66   : > { %4001 = vset.pattern.permute.xlu0 %v4211_v12  ;;  %6227 = vst [vmem:[#allocation14_spill] sm:$0xff] %v4501_v48  ;;  %6228 = vst [vmem:[#allocation15_spill] sm:$0xff] %v4525_v63  ;;  %vm374_vm15 = vcmask 1039360   ;;  %vm587_vm1 = vcmask 1031168   ;;  %vm799_vm2 = vcmask 916480   ;;  %vm1000_vm3 = vcmask 908288  }
  0x67   : > { %4000 = vset.pattern.permute.xlu1 %v4212_v13  ;;  %382 = vperm.xlu0 %4001, %v220_v2   ;;  %6229 = vst [vmem:[#allocation16_spill] sm:$0xff] %v4548_v10  ;;  %vm1210_vm4 = vcmask 900096   ;;  %vm1422_vm5 = vcmask 785408   ;;  %vm1623_vm6 = vcmask 777216   ;;  %vm1833_vm7 = vcmask 769024   ;;  %s4134_s25 = sshll.u32 %s4293_s13, 4  ;;  %s4135_s25 = int_to_ptr.vmem [resolvable:$false] %s4134_s25 }
  0x68   : > { %330 = vperm.xlu1 %4000, %v220_v2   ;;  %p4137_p13 = scmp.lt.s32.totalorder %s6116_s28, %s4135_s25 }
  0x6b   : > { %4004 = vset.pattern.permute.xlu0 %v4213_v17 }
  0x6c   : > { %4002 = vset.pattern.permute.xlu1 %v4214_v18  ;;  %543 = vperm.xlu0 %4004, %v540_v16  }
  0x6d   : > { %431 = vperm.xlu1 %4002, %v220_v2  }
  0x70   : > { %4008 = vset.pattern.permute.xlu0 %v4215_v22 }
  0x71   : > { %4003 = vset.pattern.permute.xlu1 %v4216_v23  ;;  %755 = vperm.xlu0 %4008, %v4467_v21  }
  0x72   : > { %480 = vperm.xlu1 %4003, %v220_v2  }
  0x76   : > { %531 = vrot.lane.b32.xlu1 %v4470_v24, %s4217_s15 }
  0x77   : > { %4005 = vset.pattern.permute.xlu1 %v4218_v25 }
  0x7a   : > { %595 = vperm.xlu1 %4005, %v540_v16  }
  0x7e   : > { %4006 = vset.pattern.permute.xlu1 %v4219_v26 }
  0x7f   : > { %644 = vperm.xlu1 %4006, %v540_v16  }
  0x83   : > { %4007 = vset.pattern.permute.xlu1 %v4220_v29 }
  0x84   : > { %693 = vperm.xlu1 %4007, %v540_v16   ;;  %v4559_v16 = vsub.s32 7, %v228_v43 }
  0x88   : > { %743 = vrot.lane.b32.xlu1 %v4473_v30, %s4221_s19  ;;  %s6114_s19 = scalar_lea.hbm %s6160_s2, %s3848_s21 }
  0x89   : > { %4009 = vset.pattern.permute.xlu1 %v4222_v31 }
  0x8c   : > { %807 = vperm.xlu1 %4009, %v4467_v21  }
  0x90   : > { %4010 = vset.pattern.permute.xlu1 %v4223_v32 }
  0x91   : > { %856 = vperm.xlu1 %4010, %v4467_v21  }
  0x95   : > { %4011 = vset.pattern.permute.xlu1 %v4224_v33 }
  0x96   : > { %905 = vperm.xlu1 %4011, %v4467_v21  }
  0x9a   : > { %4012 = vset.pattern.permute.xlu1 %v4225_v34 }
  0x9b   : > { %956 = vperm.xlu1 %4012, %v4467_v21  }
  0x9f   : > { %4013 = vset.pattern.permute.xlu1 %v4226_v35  ;;  %v4588_v35 = vsub.s32 4, %v228_v43 }
  0xa0   : > { %1008 = vperm.xlu1 %4013, %v4467_v21  }
  0xa1   : > { %6230 = vst [vmem:[#allocation17_spill] sm:$0xff] %v4588_v35 }
  0xa4   : > { %4014 = vset.pattern.permute.xlu1 %v4227_v36 }
  0xa5   : > { %1057 = vperm.xlu1 %4014, %v4467_v21  }
  0xa9   : > { %4015 = vset.pattern.permute.xlu1 %v4228_v41 }
  0xcb   : > { %v197_v37 = vpop.permute.xlu0 %196 }
  0xcc   : > { %v198_v39 = vrot.slane %v197_v37, 4 }
  0xce   : > { %v200_v40 = vsel %vm199_vm8, %v198_v39, %v197_v37  ;;  %207 = vst.msk [vmem:[#allocation2 + $0x8] sm:$0xf] %vm190_vm0, %v198_v39 }
  0xcf   : > { %206 = vst.msk [vmem:[#allocation2] sm:$0xff] %vm4482_vm9, %v200_v40 }
  0xd5   : > { %v4493_v44 = vld [vmem:[#allocation2 + $0x8] sm:$0xf] }
  0xd6   : > { %v396_v49 = vrot.slane %v4493_v44, %v4495_v45  ;;  %v346_v50 = vrot.slane %v4493_v44, %v4501_v48  ;;  %v4513_v54 = vld [vmem:[#allocation2] sm:$0xff]  ;;  %v445_v58 = vrot.slane %v4493_v44, %v4511_v53  ;;  %v494_v5 = vrot.slane %v4493_v44, %v4527_v0  ;;  %v4586_v34 = vld [vmem:[#allocation2 + $0x8] sm:$0xf] }
  0xd7   : > { %v338_v57 = vrot.slane %v4513_v54, %v4501_v48  ;;  %v388_v60 = vrot.slane %v4513_v54, %v4495_v45  ;;  %v392_v6 = vrot.slane %v4513_v54, %v4525_v63  ;;  %v441_v14 = vrot.slane %v4513_v54, %v4548_v10 }
  0xd8   : > { %v4490_v42 = vpop.permute.xlu1 %223  ;;  %v411_v55 = vrot.slane %v396_v49, %v4495_v45  ;;  %v361_v56 = vrot.slane %v346_v50, %v4501_v48  ;;  %v460_v3 = vrot.slane %v445_v58, %v4511_v53  ;;  %v509_v12 = vrot.slane %v494_v5, %v4527_v0 }
  0xd9   : > { %v4531_v2 = vrot.slane %v338_v57, %v4501_v48  ;;  %v4537_v4 = vrot.slane %v388_v60, %v4495_v45  ;;  %v407_v13 = vrot.slane %v392_v6, %v4495_v45  ;;  %v456_v19 = vrot.slane %v441_v14, %v4511_v53 }
  0xda   : > { %v490_v20 = vrot.slane %v4513_v54, %v4559_v16  ;;  %v972_v37 = vrot.slane %v4586_v34, %v4501_v48  ;;  %v968_v39 = vrot.slane %v4513_v54, %v4588_v35 }
  0xdc   : > { %v4499_v47 = vpop.permute.xlu0 %211  ;;  %v4570_v25 = vrot.slane %v490_v20, %v4527_v0  ;;  %v987_v41 = vrot.slane %v972_v37, %v4501_v48  ;;  %v983_v49 = vrot.slane %v968_v39, %v4501_v48 }
  0xdd   : > { %v4497_v46 = vpop.permute.xlu1 %250 }
  0xe1   : > { %v4507_v51 = vpop.permute.xlu0 %302 }
  0xe2   : > { %v4509_v52 = vpop.permute.xlu1 %276 }
  0xe6   : > { %v383_v59 = vpop.permute.xlu0 %382 }
  0xe7   : > { %v4523_v61 = vpop.permute.xlu1 %330  ;;  %v414_v62 = vmul.f32 %v411_v55, %v383_v59  ;;  %v412_v11 = vmul.f32 %v4537_v4, %v383_v59  ;;  %v413_v18 = vmul.f32 %v407_v13, %v383_v59  ;;  %v1022_v55 = vrot.slane %v4586_v34, %v4495_v45 }
  0xe8   : > { %v364_v1 = vmul.f32 %v361_v56, %v4523_v61  ;;  %v362_v8 = vmul.f32 %v4531_v2, %v4523_v61 }
  0xe9   : > { %422 = vrot.lane.b32.xlu0 %v414_v62, %s4229_s24  ;;  %v1037_v59 = vrot.slane %v1022_v55, %v4495_v45 }
  0xea   : > { %372 = vrot.lane.b32.xlu1 %v364_v1, %s4229_s24 }
  0xec   : > { %v4543_v7 = vpop.permute.xlu1 %431 }
  0xed   : > { %v463_v9 = vmul.f32 %v460_v3, %v4543_v7  ;;  %v462_v23 = vmul.f32 %v456_v19, %v4543_v7  ;;  %v437_v3 = vrot.slane %v4513_v54, %v4511_v53 }
  0xee   : > { %368 = vrot.lane.b32.xlu1 %v362_v8, %s4229_s24  ;;  %v363_v8 = vmul.f32 %v983_v49, %v4523_v61 }
  0xef   : > { %471 = vrot.lane.b32.xlu0 %v463_v9, %s4229_s24  ;;  %v452_v9 = vrot.slane %v437_v3, %v4511_v53 }
  0xf1   : > { %v4557_v15 = vpop.permute.xlu1 %480 }
  0xf2   : > { %418 = vrot.lane.b32.xlu1 %v412_v11, %s4229_s24  ;;  %v512_v17 = vmul.f32 %v509_v12, %v4557_v15  ;;  %v511_v27 = vmul.f32 %v4570_v25, %v4557_v15  ;;  %v486_v11 = vrot.slane %v4513_v54, %v4527_v0 }
  0xf4   : > { %520 = vrot.lane.b32.xlu0 %v512_v17, %s4229_s24  ;;  %v544_v17 = vpop.permute.xlu0 %543  ;;  %v4632_v61 = vrot.slane %v486_v11, %v4527_v0 }
  0xf5   : > { %v532_v22 = vpop.permute.xlu1 %531 }
  0xf6   : > { %420 = vrot.lane.b32.xlu1 %v413_v18, %s4229_s24  ;;  %v4596_v40 = vrot.slane %v532_v22, 4  ;;  %v461_v18 = vmul.f32 %v452_v9, %v4543_v7  ;;  %v510_v7 = vmul.f32 %v4632_v61, %v4557_v15 }
  0xf8   : > { %6231 = vst [vmem:[#allocation18_spill] sm:$0xff] %v4596_v40  ;;  %v4601_v50 = vsel %vm534_vm10, %v4596_v40, %v532_v22  ;;  %v756_v11 = vpop.permute.xlu0 %755 }
  0xf9   : > { %v4572_v26 = vpop.permute.xlu1 %595  ;;  %6232 = vst [vmem:[#allocation19_spill] sm:$0xff] %v4601_v50  ;;  %v4607_v58 = vmul.f32 %v4601_v50, %v4513_v54 }
  0xfa   : > { %469 = vrot.lane.b32.xlu1 %v462_v23, %s4229_s24 }
  0xfb   : > { %v551_v5 = vrot.slane %v4607_v58, %v4501_v48  ;;  %v555_v14 = vrot.slane %v4607_v58, %v4588_v35  ;;  %v654_v39 = vrot.slane %v4607_v58, %v4548_v10 }
  0xfd   : > { %v570_v22 = vrot.slane %v555_v14, %v4501_v48 }
  0xfe   : > { %v4577_v28 = vpop.permute.xlu1 %644  ;;  %518 = vrot.lane.b32.xlu1 %v511_v27, %s4229_s24 }
  0xff   : > { %v576_v27 = vmul.f32 %v570_v22, %v544_v17  ;;  %v742_v22 = vld [vmem:[#allocation2 + $0x8] sm:$0xf] }
 0x103   : > { %v4580_v29 = vpop.permute.xlu1 %693 }
 0x107   : > { %v744_v31 = vpop.permute.xlu1 %743 }
 0x108   : > { %v4637_v23 = vrot.slane %v744_v31, 4 }
 0x10a   : > { %6233 = vst [vmem:[#allocation20_spill] sm:$0xff] %v4637_v23 }
 0x10b   : > { %v4582_v32 = vpop.permute.xlu1 %807 }
 0x110   : > { %v4584_v33 = vpop.permute.xlu1 %856 }
 0x115   : > { %v4590_v36 = vpop.permute.xlu1 %905 }
 0x11a   : > { %v957_v43 = vpop.permute.xlu1 %956 }
 0x11b   : > { %v990_v56 = vmul.f32 %v987_v41, %v957_v43  ;;  %v989_v57 = vmul.f32 %v983_v49, %v957_v43  ;;  %v4647_v41 = vsel %vm746_vm11, %v4637_v23, %v744_v31  ;;  %v539_v49 = vmul.f32 %v4596_v40, %v4493_v44 }
 0x11c   : > { %6234 = vst [vmem:[#allocation21_spill] sm:$0xff] %v4647_v41  ;;  %v988_v55 = vmul.f32 %v957_v43, %v4531_v2  ;;  %v4656_v15 = vmul.f32 %v4647_v41, %v4513_v54  ;;  %v703_v31 = vrot.slane %v4607_v58, %v4559_v16 }
 0x11d   : > { %998 = vrot.lane.b32.xlu0 %v990_v56, %s4230_s26  ;;  %996 = vrot.lane.b32.xlu1 %v989_v57, %s4230_s26  ;;  %v669_v57 = vrot.slane %v654_v39, %v4511_v53  ;;  %v559_v44 = vrot.slane %v539_v49, %v4501_v48 }
 0x11e   : > { %v763_v43 = vrot.slane %v4656_v15, %v4501_v48  ;;  %v866_v39 = vrot.slane %v4656_v15, %v4548_v10 }
 0x11f   : > { %v1009_v60 = vpop.permute.xlu1 %1008  ;;  %v675_v2 = vmul.f32 %v669_v57, %v4577_v28  ;;  %v574_v3 = vrot.slane %v559_v44, %v4501_v48 }
 0x120   : > { %v1040_v62 = vmul.f32 %v1037_v59, %v1009_v60  ;;  %v1039_v1 = vmul.f32 %v1009_v60, %v407_v13  ;;  %v566_v13 = vrot.slane %v551_v5, %v4501_v48  ;;  %v1038_v59 = vmul.f32 %v1009_v60, %v4537_v4 }
 0x121   : > { %v609_v5 = vrot.slane %v539_v49, %v4495_v45  ;;  %v778_v60 = vrot.slane %v763_v43, %v4501_v48 }
 0x122   : > { %1048 = vrot.lane.b32.xlu0 %v1040_v62, %s4230_s26  ;;  %1046 = vrot.lane.b32.xlu1 %v1039_v1, %s4230_s26  ;;  %v575_v20 = vmul.f32 %v566_v13, %v544_v17  ;;  %v718_v62 = vrot.slane %v703_v31, %v4527_v0 }
 0x123   : > { %v624_v13 = vrot.slane %v609_v5, %v4495_v45  ;;  %v787_v14 = vmul.f32 %v778_v60, %v756_v11 }
 0x124   : > { %v4618_v6 = vpop.permute.xlu1 %1057  ;;  %v724_v4 = vmul.f32 %v718_v62, %v4580_v29 }
 0x125   : > { %v1088_v12 = vmul.f32 %v4618_v6, %v456_v19  ;;  %v605_v19 = vrot.slane %v4607_v58, %v4525_v63  ;;  %v1087_v1 = vmul.f32 %v4618_v6, %v452_v9  ;;  %v658_v9 = vrot.slane %v539_v49, %v4511_v53 }
 0x126   : > { %370 = vrot.lane.b32.xlu0 %v363_v8, %s4229_s24  ;;  %v767_v8 = vrot.slane %v4656_v15, %v4588_v35 }
 0x127   : > { %1095 = vrot.lane.b32.xlu1 %v1088_v12, %s4230_s26  ;;  %v620_v37 = vrot.slane %v605_v19, %v4495_v45  ;;  %v577_v12 = vmul.f32 %v574_v3, %v544_v17  ;;  %v751_v19 = vmul.f32 %v4637_v23, %v742_v22  ;;  %v627_v17 = vmul.f32 %v624_v13, %v4572_v26 }
 0x129   : > { %v626_v56 = vmul.f32 %v620_v37, %v4572_v26  ;;  %v771_v57 = vrot.slane %v751_v19, %v4501_v48  ;;  %v821_v62 = vrot.slane %v751_v19, %v4495_v45  ;;  %v870_v60 = vrot.slane %v751_v19, %v4511_v53 }
 0x12a   : > { %467 = vrot.lane.b32.xlu0 %v461_v18, %s4229_s24  ;;  %v782_v18 = vrot.slane %v767_v8, %v4501_v48 }
 0x12b   : > { %581 = vrot.lane.b32.xlu1 %v575_v20, %s4231_s27  ;;  %v817_v20 = vrot.slane %v4656_v15, %v4525_v63  ;;  %v786_v43 = vrot.slane %v771_v57, %v4501_v48  ;;  %v885_v13 = vrot.slane %v870_v60, %v4511_v53  ;;  %v862_v57 = vrot.slane %v4656_v15, %v4511_v53 }
 0x12d   : > { %v832_v37 = vrot.slane %v817_v20, %v4495_v45  ;;  %v789_v5 = vmul.f32 %v786_v43, %v756_v11 }
 0x12e   : > { %516 = vrot.lane.b32.xlu0 %v510_v7, %s4229_s24  ;;  %v673_v7 = vrot.slane %v658_v9, %v4511_v53  ;;  %v919_v9 = vrot.slane %v751_v19, %v4527_v0  ;;  %v4233_v19 = vmov 20  }
 0x12f   : > { %583 = vrot.lane.b32.xlu1 %v576_v27, %s4231_s27  ;;  %v788_v27 = vmul.f32 %v782_v18, %v756_v11  ;;  %v838_v31 = vmul.f32 %v832_v37, %v4582_v32  ;;  %v888_v11 = vmul.f32 %v885_v13, %v4584_v33  ;;  %4016 = vset.pattern.permute.xlu0 %v4233_v19 }
 0x130   : > { %v934_v18 = vrot.slane %v919_v9, %v4527_v0 }
 0x132   : > { %994 = vrot.lane.b32.xlu0 %v988_v55, %s4230_s26  ;;  %v707_v55 = vrot.slane %v539_v49, %v4527_v0  ;;  %v937_v20 = vmul.f32 %v934_v18, %v4590_v36 }
 0x133   : > { %633 = vrot.lane.b32.xlu1 %v626_v56, %s4231_s27  ;;  %v676_v56 = vmul.f32 %v673_v7, %v4577_v28 }
 0x134   : > { %v722_v44 = vrot.slane %v707_v55, %v4527_v0 }
 0x136   : > { %1044 = vrot.lane.b32.xlu0 %v1038_v59, %s4230_s26  ;;  %v881_v59 = vrot.slane %v866_v39, %v4511_v53  ;;  %v725_v49 = vmul.f32 %v722_v44, %v4580_v29  ;;  %v813_v39 = vrot.slane %v4656_v15, %v4495_v45 }
 0x137   : > { %682 = vrot.lane.b32.xlu1 %v675_v2, %s4231_s27  ;;  %v915_v2 = vrot.slane %v4656_v15, %v4559_v16 }
 0x139   : > { %v930_v3 = vrot.slane %v915_v2, %v4527_v0  ;;  %v1071_v2 = vrot.slane %v4586_v34, %v4511_v53 }
 0x13a   : > { %1093 = vrot.lane.b32.xlu0 %v1087_v1, %s4230_s26  ;;  %v887_v1 = vmul.f32 %v881_v59, %v4584_v33 }
 0x13b   : > { %731 = vrot.lane.b32.xlu1 %v724_v4, %s4231_s27  ;;  %v836_v4 = vrot.slane %v821_v62, %v4495_v45  ;;  %v936_v8 = vmul.f32 %v930_v3, %v4590_v36 }
 0x13e   : > { %585 = vrot.lane.b32.xlu0 %v577_v12, %s4231_s27  ;;  %v839_v12 = vmul.f32 %v836_v4, %v4582_v32 }
 0x13f   : > { %793 = vrot.lane.b32.xlu1 %v787_v14, %s4232_s29  ;;  %v601_v14 = vrot.slane %v4607_v58, %v4495_v45 }
 0x141   : > { %v616_v22 = vrot.slane %v601_v14, %v4495_v45 }
 0x142   : > { %635 = vrot.lane.b32.xlu0 %v627_v17, %s4231_s27  ;;  %v650_v17 = vrot.slane %v4607_v58, %v4511_v53 }
 0x143   : > { %795 = vrot.lane.b32.xlu1 %v788_v27, %s4232_s29  ;;  %v699_v27 = vrot.slane %v4607_v58, %v4527_v0 }
 0x144   : > { %v665_v7 = vrot.slane %v650_v17, %v4511_v53 }
 0x145   : > { %v714_v55 = vrot.slane %v699_v27, %v4527_v0  ;;  %v1120_v27 = vrot.slane %v4586_v34, %v4527_v0 }
 0x146   : > { %684 = vrot.lane.b32.xlu0 %v676_v56, %s4231_s27  ;;  %v674_v37 = vmul.f32 %v665_v7, %v4577_v28  ;;  %v877_v28 = vrot.slane %v862_v57, %v4511_v53 }
 0x147   : > { %845 = vrot.lane.b32.xlu1 %v838_v31, %s4232_s29  ;;  %v723_v56 = vmul.f32 %v714_v55, %v4580_v29  ;;  %v911_v31 = vrot.slane %v4656_v15, %v4527_v0 }
 0x148   : > { %v886_v59 = vmul.f32 %v877_v28, %v4584_v33 }
 0x149   : > { %v926_v29 = vrot.slane %v911_v31, %v4527_v0 }
 0x14a   : > { %733 = vrot.lane.b32.xlu0 %v725_v49, %s4231_s27  ;;  %v1086_v49 = vrot.slane %v1071_v2, %v4511_v53 }
 0x14b   : > { %894 = vrot.lane.b32.xlu1 %v887_v1, %s4232_s29 }
 0x14c   : > { %v1089_v15 = vmul.f32 %v1086_v49, %v4618_v6 }
 0x14e   : > { %797 = vrot.lane.b32.xlu0 %v789_v5, %s4232_s29 }
 0x14f   : > { %943 = vrot.lane.b32.xlu1 %v936_v8, %s4232_s29 }
 0x152   : > { %847 = vrot.lane.b32.xlu0 %v839_v12, %s4232_s29 }
 0x153   : > { %1106 = vperm.xlu1 %4015, %v4467_v21   ;;  %v625_v21 = vmul.f32 %v616_v22, %v4572_v26  ;;  %v828_v26 = vrot.slane %v813_v39, %v4495_v45 }
 0x155   : > { %v837_v58 = vmul.f32 %v828_v26, %v4582_v32  ;;  %v935_v32 = vmul.f32 %v926_v29, %v4590_v36 }
 0x156   : > { %896 = vrot.lane.b32.xlu0 %v888_v11, %s4232_s29 }
 0x15a   : > { %945 = vrot.lane.b32.xlu0 %v937_v20, %s4232_s29 }
 0x15b   : > { %v4793_v11 = vpop.permute.xlu0 %422 }
 0x15c   : > { %v4754_v44 = vpop.permute.xlu1 %372 }
 0x15e   : > { %631 = vrot.lane.b32.xlu0 %v625_v21, %s4231_s27 }
 0x160   : > { %v4763_v43 = vpop.permute.xlu1 %368 }
 0x161   : > { %v4797_v18 = vpop.permute.xlu0 %471 }
 0x162   : > { %680 = vrot.lane.b32.xlu0 %v674_v37, %s4231_s27 }
 0x164   : > { %v4767_v33 = vpop.permute.xlu1 %418 }
 0x166   : > { %729 = vrot.lane.b32.xlu0 %v723_v56, %s4231_s27  ;;  %v4801_v22 = vpop.permute.xlu0 %520  ;;  %v1135_v56 = vrot.slane %v1120_v27, %v4527_v0 }
 0x168   : > { %v4769_v62 = vpop.permute.xlu1 %420 }
 0x16a   : > { %843 = vrot.lane.b32.xlu0 %v837_v58, %s4232_s29  ;;  %v4822_v58 = vld [vmem:[#allocation6] sm:$0xf] }
 0x16c   : > { %v4771_v1 = vpop.permute.xlu1 %469 }
 0x16e   : > { %892 = vrot.lane.b32.xlu0 %v886_v59, %s4232_s29 }
 0x170   : > { %v4773_v3 = vpop.permute.xlu1 %518 }
 0x172   : > { %941 = vrot.lane.b32.xlu0 %v935_v32, %s4232_s29 }
 0x176   : > { %1097 = vrot.lane.b32.xlu0 %v1089_v15, %s4230_s26 }
 0x18f   : > { %v4775_v5 = vpop.permute.xlu1 %996  ;;  %v4805_v19 = vpop.permute.xlu0 %998 }
 0x190   : > { %6235 = vst [vmem:[#allocation22_spill] sm:$0xff] %v4775_v5  ;;  %6238 = vst [vmem:[#allocation25_spill] sm:$0xff] %v4805_v19 }
 0x194   : > { %v4777_v36 = vpop.permute.xlu1 %1046  ;;  %v4809_v7 = vpop.permute.xlu0 %1048 }
 0x195   : > { %6236 = vst [vmem:[#allocation23_spill] sm:$0xff] %v4777_v36  ;;  %6240 = vst [vmem:[#allocation27_spill] sm:$0xff] %v4809_v7 }
 0x198   : > { %v4818_v26 = vpop.permute.xlu0 %370 }
 0x199   : > { %v4779_v4 = vpop.permute.xlu1 %1095 }
 0x19a   : > { %6237 = vst [vmem:[#allocation24_spill] sm:$0xff] %v4779_v4 }
 0x19c   : > { %v4824_v28 = vpop.permute.xlu0 %467 }
 0x19d   : > { %v4781_v60 = vpop.permute.xlu1 %581 }
 0x1a1   : > { %v4783_v8 = vpop.permute.xlu1 %583 }
 0x1a5   : > { %v4785_v6 = vpop.permute.xlu1 %633 }
 0x1a9   : > { %v4787_v12 = vpop.permute.xlu1 %682 }
 0x1ad   : > { %v4789_v13 = vpop.permute.xlu1 %731 }
 0x1b1   : > { %v4791_v9 = vpop.permute.xlu1 %793 }
 0x1b5   : > { %v4795_v14 = vpop.permute.xlu1 %795 }
 0x1b9   : > { %v4799_v20 = vpop.permute.xlu1 %845 }
 0x1bd   : > { %v4803_v17 = vpop.permute.xlu1 %894 }
 0x1c1   : > { %v4807_v21 = vpop.permute.xlu1 %943 }
 0x1c2   : > { %6239 = vst [vmem:[#allocation26_spill] sm:$0xff] %v4807_v21 }
 0x1d2   : > { %v1107_v37 = vpop.permute.xlu1 %1106 }
 0x1d3   : > { %v1137_v39 = vmul.f32 %v1107_v37, %v4570_v25  ;;  %v1136_v55 = vmul.f32 %v1107_v37, %v4632_v61  ;;  %v1138_v57 = vmul.f32 %v1135_v56, %v1107_v37  ;;  %v4827_v25 = vpop.permute.xlu0 %516  ;;  %v4235_v61 = vmov 21  }
 0x1d4   : > { %4017 = vset.pattern.permute.xlu1 %v4235_v61 }
 0x1d5   : > { %1144 = vrot.lane.b32.xlu1 %v1137_v39, %s4230_s26  ;;  %1142 = vrot.lane.b32.xlu0 %v1136_v55, %s4230_s26 }
 0x1d7   : > { %v4829_v31 = vpop.permute.xlu0 %994 }
 0x1d8   : > { %6241 = vst [vmem:[#allocation28_spill] sm:$0xff] %v4829_v31 }
 0x1d9   : > { %1154 = vrot.lane.b32.xlu1 %v4470_v24, %s4234_s30  ;;  %1146 = vrot.lane.b32.xlu0 %v1138_v57, %s4230_s26 }
 0x1db   : > { %v4831_v59 = vpop.permute.xlu0 %1044 }
 0x1dc   : > { %6242 = vst [vmem:[#allocation29_spill] sm:$0xff] %v4831_v59 }
 0x1dd   : > { %1166 = vperm.xlu0 %4016, %v4822_v58  }
 0x1df   : > { %v4833_v29 = vpop.permute.xlu0 %1093 }
 0x1e0   : > { %6243 = vst [vmem:[#allocation30_spill] sm:$0xff] %v4833_v29 }
 0x1e3   : > { %v4835_v2 = vpop.permute.xlu0 %585 }
 0x1e7   : > { %v4837_v32 = vpop.permute.xlu0 %635 }
 0x1eb   : > { %v4839_v49 = vpop.permute.xlu0 %684 }
 0x1ef   : > { %v4841_v15 = vpop.permute.xlu0 %733 }
 0x1f3   : > { %v4843_v27 = vpop.permute.xlu0 %797 }
 0x1f7   : > { %v4845_v37 = vpop.permute.xlu0 %847 }
 0x1fb   : > { %v4847_v39 = vpop.permute.xlu0 %896 }
 0x1ff   : > { %v4849_v55 = vpop.permute.xlu0 %945 }
 0x200   : > { %6244 = vst [vmem:[#allocation31_spill] sm:$0xff] %v4849_v55 }
 0x203   : > { %v4851_v56 = vpop.permute.xlu0 %631 }
 0x207   : > { %v4853_v57 = vpop.permute.xlu0 %680 }
 0x20b   : > { %v4855_v61 = vpop.permute.xlu0 %729 }
 0x20f   : > { %v4857_v23 = vpop.permute.xlu0 %843 }
 0x213   : > { %v4859_v40 = vpop.permute.xlu0 %892 }
 0x217   : > { %v4863_v50 = vpop.permute.xlu0 %941 }
 0x218   : > { %6246 = vst [vmem:[#allocation33_spill] sm:$0xff] %v4863_v50 }
 0x21b   : > { %v4867_v4 = vpop.permute.xlu0 %1097 }
 0x21c   : > { %6248 = vst [vmem:[#allocation35_spill] sm:$0xff] %v4867_v4 }
 0x247   : > { %v4861_v41 = vpop.permute.xlu1 %1144  ;;  %v4872_v59 = vpop.permute.xlu0 %1142 }
 0x248   : > { %6245 = vst [vmem:[#allocation32_spill] sm:$0xff] %v4861_v41  ;;  %6250 = vst [vmem:[#allocation37_spill] sm:$0xff] %v4872_v59 }
 0x24b   : > { %v1155_v38 = vpop.permute.xlu1 %1154  ;;  %v4883_v5 = vpop.permute.xlu0 %1146 }
 0x24c   : > { %v4865_v29 = vrot.slane %v1155_v38, 4  ;;  %6251 = vst [vmem:[#allocation38_spill] sm:$0xff] %v4883_v5 }
 0x24e   : > { %6247 = vst [vmem:[#allocation34_spill] sm:$0xff] %v4865_v29  ;;  %v4870_v7 = vsel %vm1157_vm12, %v4865_v29, %v1155_v38  ;;  %v4878_v19 = vmul.f32 %v4865_v29, %v4586_v34 }
 0x24f   : > { %6249 = vst [vmem:[#allocation36_spill] sm:$0xff] %v4870_v7  ;;  %v1161_v36 = vmul.f32 %v4870_v7, %v4513_v54 }
 0x250   : > { %v1182_v41 = vrot.slane %v4878_v19, %v4501_v48 }
 0x251   : > { %v1174_v31 = vrot.slane %v1161_v36, %v4501_v48  ;;  %v1178_v59 = vrot.slane %v1161_v36, %v4588_v35  ;;  %v1228_v5 = vrot.slane %v1161_v36, %v4525_v63 }
 0x252   : > { %v1197_v4 = vrot.slane %v1182_v41, %v4501_v48  ;;  %v4237_v41 = vmov 22  }
 0x253   : > { %v1189_v38 = vrot.slane %v1174_v31, %v4501_v48  ;;  %v1193_v34 = vrot.slane %v1178_v59, %v4501_v48  ;;  %v1232_v59 = vrot.slane %v4878_v19, %v4495_v45 }
 0x25c   : > { %v1167_v55 = vpop.permute.xlu0 %1166 }
 0x25d   : > { %v1200_v50 = vmul.f32 %v1197_v4, %v1167_v55  ;;  %v1198_v7 = vmul.f32 %v1189_v38, %v1167_v55  ;;  %v1199_v29 = vmul.f32 %v1193_v34, %v1167_v55  ;;  %v1224_v4 = vrot.slane %v1161_v36, %v4495_v45 }
 0x25f   : > { %1208 = vrot.lane.b32.xlu0 %v1200_v50, %s4236_s3  ;;  %1204 = vrot.lane.b32.xlu1 %v1198_v7, %s4236_s3  ;;  %v1243_v50 = vrot.slane %v1228_v5, %v4495_v45  ;;  %v1239_v7 = vrot.slane %v1224_v4, %v4495_v45  ;;  %v4238_v5 = vmov 23   ;;  %v1277_v4 = vrot.slane %v1161_v36, %v4548_v10 }
 0x263   : > { %1206 = vrot.lane.b32.xlu1 %v1199_v29, %s4236_s3 }
 0x267   : > { %1218 = vperm.xlu1 %4017, %v4822_v58  }
 0x26b   : > { %4018 = vset.pattern.permute.xlu1 %v4237_v41  ;;  %v1247_v41 = vrot.slane %v1232_v59, %v4495_v45  ;;  %v1281_v59 = vrot.slane %v4878_v19, %v4511_v53 }
 0x2d1   : > { %v4893_v31 = vpop.permute.xlu1 %1204 }
 0x2d2   : > { %6252 = vst [vmem:[#allocation39_spill] sm:$0xff] %v4893_v31 }
 0x2d5   : > { %v4897_v38 = vpop.permute.xlu1 %1206 }
 0x2d6   : > { %6253 = vst [vmem:[#allocation40_spill] sm:$0xff] %v4897_v38  ;;  %v1273_v38 = vrot.slane %v1161_v36, %v4511_v53 }
 0x2e6   : > { %v1219_v29 = vpop.permute.xlu1 %1218 }
 0x2e7   : > { %v1249_v55 = vmul.f32 %v1243_v50, %v1219_v29  ;;  %v1248_v34 = vmul.f32 %v1239_v7, %v1219_v29  ;;  %v1250_v31 = vmul.f32 %v1247_v41, %v1219_v29  ;;  %v1292_v50 = vrot.slane %v1277_v4, %v4511_v53 }
 0x2e8   : > { %v1288_v7 = vrot.slane %v1273_v38, %v4511_v53  ;;  %v1326_v38 = vrot.slane %v1161_v36, %v4559_v16  ;;  %v1322_v4 = vrot.slane %v1161_v36, %v4527_v0  ;;  %v4934_v36 = vld [vmem:[#allocation6] sm:$0xf] }
 0x2e9   : > { %1256 = vrot.lane.b32.xlu1 %v1249_v55, %s4236_s3  ;;  %1254 = vrot.lane.b32.xlu0 %v1248_v34, %s4236_s3 }
 0x2ed   : > { %1267 = vperm.xlu1 %4018, %v4822_v58   ;;  %1258 = vrot.lane.b32.xlu0 %v1250_v31, %s4236_s3  ;;  %v1296_v31 = vrot.slane %v1281_v59, %v4511_v53  ;;  %v1330_v59 = vrot.slane %v4878_v19, %v4527_v0  ;;  %v4241_v19 = vmov 25  }
 0x2f1   : > { %4019 = vset.pattern.permute.xlu1 %v4238_v5  ;;  %v4239_v5 = vmov 24  }
 0x2f2   : > { %4020 = vset.pattern.permute.xlu0 %v4239_v5 }
 0x35b   : > { %v4910_v21 = vpop.permute.xlu1 %1256 }
 0x35c   : > { %6254 = vst [vmem:[#allocation41_spill] sm:$0xff] %v4910_v21 }
 0x36c   : > { %v1268_v29 = vpop.permute.xlu1 %1267 }
 0x36d   : > { %v1298_v55 = vmul.f32 %v1292_v50, %v1268_v29  ;;  %v1297_v34 = vmul.f32 %v1288_v7, %v1268_v29  ;;  %v1299_v41 = vmul.f32 %v1296_v31, %v1268_v29  ;;  %v1341_v50 = vrot.slane %v1326_v38, %v4527_v0 }
 0x36e   : > { %v1337_v7 = vrot.slane %v1322_v4, %v4527_v0 }
 0x36f   : > { %1305 = vrot.lane.b32.xlu1 %v1298_v55, %s4236_s3  ;;  %1303 = vrot.lane.b32.xlu0 %v1297_v34, %s4236_s3  ;;  %v1345_v34 = vrot.slane %v1330_v59, %v4527_v0 }
 0x373   : > { %1316 = vperm.xlu1 %4019, %v4822_v58   ;;  %1307 = vrot.lane.b32.xlu0 %v1299_v41, %s4236_s3  ;;  %v4937_v41 = vpop.permute.xlu0 %1208 }
 0x374   : > { %6256 = vst [vmem:[#allocation43_spill] sm:$0xff] %v4937_v41 }
 0x377   : > { %4021 = vset.pattern.permute.xlu1 %v4241_v19  ;;  %v4939_v5 = vpop.permute.xlu0 %1254 }
 0x378   : > { %6257 = vst [vmem:[#allocation44_spill] sm:$0xff] %v4939_v5 }
 0x37b   : > { %v4941_v38 = vpop.permute.xlu0 %1258 }
 0x37c   : > { %6258 = vst [vmem:[#allocation45_spill] sm:$0xff] %v4941_v38 }
 0x3e1   : > { %v4923_v21 = vpop.permute.xlu1 %1305 }
 0x3e2   : > { %6255 = vst [vmem:[#allocation42_spill] sm:$0xff] %v4923_v21 }
 0x3f2   : > { %v1317_v29 = vpop.permute.xlu1 %1316 }
 0x3f3   : > { %v1347_v55 = vmul.f32 %v1341_v50, %v1317_v29  ;;  %v1346_v58 = vmul.f32 %v1337_v7, %v1317_v29  ;;  %v1348_v31 = vmul.f32 %v1345_v34, %v1317_v29  ;;  %v4945_v50 = vpop.permute.xlu0 %1303  ;;  %v1365_v34 = vld [vmem:[#allocation2 + $0x8] sm:$0xf] }
 0x3f4   : > { %6260 = vst [vmem:[#allocation47_spill] sm:$0xff] %v4945_v50 }
 0x3f5   : > { %1354 = vrot.lane.b32.xlu1 %v1347_v55, %s4236_s3  ;;  %1352 = vrot.lane.b32.xlu0 %v1346_v58, %s4236_s3 }
 0x3f7   : > { %v4949_v29 = vpop.permute.xlu0 %1307 }
 0x3f8   : > { %6262 = vst [vmem:[#allocation49_spill] sm:$0xff] %v4949_v29 }
 0x3f9   : > { %1366 = vrot.lane.b32.xlu1 %v4473_v30, %s4240_s4  ;;  %1356 = vrot.lane.b32.xlu0 %v1348_v31, %s4236_s3 }
 0x3fd   : > { %1378 = vperm.xlu0 %4020, %v4934_v36  }
 0x467   : > { %v4943_v4 = vpop.permute.xlu1 %1354  ;;  %v4954_v58 = vpop.permute.xlu0 %1352 }
 0x468   : > { %6259 = vst [vmem:[#allocation46_spill] sm:$0xff] %v4943_v4  ;;  %6264 = vst [vmem:[#allocation51_spill] sm:$0xff] %v4954_v58 }
 0x46b   : > { %v1367_v7 = vpop.permute.xlu1 %1366  ;;  %v4964_v21 = vpop.permute.xlu0 %1356 }
 0x46c   : > { %v4947_v59 = vrot.slane %v1367_v7, 4 }
 0x46e   : > { %6261 = vst [vmem:[#allocation48_spill] sm:$0xff] %v4947_v59  ;;  %v4952_v55 = vsel %vm1369_vm13, %v4947_v59, %v1367_v7  ;;  %v4959_v19 = vmul.f32 %v4947_v59, %v1365_v34  ;;  %v4243_v59 = vmov 26  }
 0x46f   : > { %6263 = vst [vmem:[#allocation50_spill] sm:$0xff] %v4952_v55  ;;  %v1373_v31 = vmul.f32 %v4952_v55, %v4513_v54 }
 0x470   : > { %v1394_v4 = vrot.slane %v4959_v19, %v4501_v48 }
 0x471   : > { %v1386_v50 = vrot.slane %v1373_v31, %v4501_v48  ;;  %v1390_v29 = vrot.slane %v1373_v31, %v4588_v35 }
 0x472   : > { %v1409_v7 = vrot.slane %v1394_v4, %v4501_v48 }
 0x473   : > { %v1401_v58 = vrot.slane %v1386_v50, %v4501_v48  ;;  %v1405_v54 = vrot.slane %v1390_v29, %v4501_v48  ;;  %v1440_v50 = vrot.slane %v1373_v31, %v4525_v63 }
 0x475   : > { %v1455_v29 = vrot.slane %v1440_v50, %v4495_v45  ;;  %v4244_v50 = vmov 27  }
 0x47c   : > { %v1379_v38 = vpop.permute.xlu0 %1378 }
 0x47d   : > { %v1412_v5 = vmul.f32 %v1409_v7, %v1379_v38  ;;  %v1410_v41 = vmul.f32 %v1401_v58, %v1379_v38  ;;  %v1411_v34 = vmul.f32 %v1405_v54, %v1379_v38  ;;  %v1436_v58 = vrot.slane %v1373_v31, %v4495_v45 }
 0x47f   : > { %1420 = vrot.lane.b32.xlu0 %v1412_v5, %s4242_s5  ;;  %1416 = vrot.lane.b32.xlu1 %v1410_v41, %s4242_s5  ;;  %v1451_v5 = vrot.slane %v1436_v58, %v4495_v45  ;;  %v1444_v41 = vrot.slane %v4959_v19, %v4495_v45  ;;  %v1489_v58 = vrot.slane %v1373_v31, %v4548_v10 }
 0x483   : > { %1418 = vrot.lane.b32.xlu1 %v1411_v34, %s4242_s5 }
 0x487   : > { %1430 = vperm.xlu1 %4021, %v4934_v36  }
 0x48b   : > { %4022 = vset.pattern.permute.xlu1 %v4243_v59  ;;  %v1459_v59 = vrot.slane %v1444_v41, %v4495_v45  ;;  %v1493_v41 = vrot.slane %v4959_v19, %v4511_v53 }
 0x4f1   : > { %v4974_v4 = vpop.permute.xlu1 %1416 }
 0x4f2   : > { %6265 = vst [vmem:[#allocation52_spill] sm:$0xff] %v4974_v4  ;;  %v1485_v4 = vrot.slane %v1373_v31, %v4511_v53 }
 0x4f5   : > { %v4978_v7 = vpop.permute.xlu1 %1418 }
 0x4f6   : > { %6266 = vst [vmem:[#allocation53_spill] sm:$0xff] %v4978_v7 }
 0x506   : > { %v1431_v38 = vpop.permute.xlu1 %1430 }
 0x507   : > { %v1461_v54 = vmul.f32 %v1455_v29, %v1431_v38  ;;  %v1460_v34 = vmul.f32 %v1451_v5, %v1431_v38  ;;  %v1462_v55 = vmul.f32 %v1459_v59, %v1431_v38  ;;  %v1504_v29 = vrot.slane %v1489_v58, %v4511_v53 }
 0x508   : > { %v1500_v5 = vrot.slane %v1485_v4, %v4511_v53  ;;  %v1538_v4 = vrot.slane %v1373_v31, %v4559_v16  ;;  %v1534_v58 = vrot.slane %v1373_v31, %v4527_v0  ;;  %v4246_v31 = vmov 29  }
 0x509   : > { %1468 = vrot.lane.b32.xlu1 %v1461_v54, %s4242_s5  ;;  %1466 = vrot.lane.b32.xlu0 %v1460_v34, %s4242_s5 }
 0x50d   : > { %1479 = vperm.xlu1 %4022, %v4934_v36   ;;  %1470 = vrot.lane.b32.xlu0 %v1462_v55, %s4242_s5  ;;  %v1508_v55 = vrot.slane %v1493_v41, %v4511_v53  ;;  %v1549_v41 = vrot.slane %v1534_v58, %v4527_v0 }
 0x511   : > { %4023 = vset.pattern.permute.xlu1 %v4244_v50  ;;  %v4245_v50 = vmov 28  }
 0x57b   : > { %v4991_v7 = vpop.permute.xlu1 %1468 }
 0x57c   : > { %6267 = vst [vmem:[#allocation54_spill] sm:$0xff] %v4991_v7 }
 0x58c   : > { %v1480_v38 = vpop.permute.xlu1 %1479 }
 0x58d   : > { %v1510_v54 = vmul.f32 %v1504_v29, %v1480_v38  ;;  %v1509_v34 = vmul.f32 %v1500_v5, %v1480_v38  ;;  %v1511_v59 = vmul.f32 %v1508_v55, %v1480_v38  ;;  %v1542_v29 = vrot.slane %v4959_v19, %v4527_v0  ;;  %v5015_v19 = vld [vmem:[#allocation2] sm:$0xff] }
 0x58e   : > { %v1553_v5 = vrot.slane %v1538_v4, %v4527_v0  ;;  %v1591_v4 = vrot.slane %v5015_v19, %v4588_v35 }
 0x58f   : > { %1517 = vrot.lane.b32.xlu1 %v1510_v54, %s4242_s5  ;;  %1515 = vrot.lane.b32.xlu0 %v1509_v34, %s4242_s5  ;;  %v1557_v55 = vrot.slane %v1542_v29, %v4527_v0  ;;  %v5023_v29 = vld [vmem:[#allocation2 + $0x8] sm:$0xf] }
 0x593   : > { %1528 = vperm.xlu1 %4023, %v4934_v36   ;;  %1519 = vrot.lane.b32.xlu0 %v1511_v59, %s4242_s5 }
 0x597   : > { %4024 = vset.pattern.permute.xlu1 %v4245_v50  ;;  %v1587_v50 = vrot.slane %v5015_v19, %v4501_v48 }
 0x601   : > { %v5004_v7 = vpop.permute.xlu1 %1517 }
 0x602   : > { %6268 = vst [vmem:[#allocation55_spill] sm:$0xff] %v5004_v7 }
 0x612   : > { %v1529_v38 = vpop.permute.xlu1 %1528 }
 0x613   : > { %v1559_v54 = vmul.f32 %v1553_v5, %v1529_v38  ;;  %v1558_v34 = vmul.f32 %v1549_v41, %v1529_v38  ;;  %v1560_v59 = vmul.f32 %v1557_v55, %v1529_v38  ;;  %v1595_v5 = vrot.slane %v5023_v29, %v4501_v48 }
 0x614   : > { %v1602_v41 = vrot.slane %v1587_v50, %v4501_v48  ;;  %v1606_v38 = vrot.slane %v1591_v4, %v4501_v48  ;;  %v1637_v50 = vrot.slane %v5015_v19, %v4495_v45  ;;  %v1641_v4 = vrot.slane %v5015_v19, %v4525_v63 }
 0x615   : > { %1566 = vrot.lane.b32.xlu1 %v1559_v54, %s4242_s5  ;;  %1564 = vrot.lane.b32.xlu0 %v1558_v34, %s4242_s5 }
 0x619   : > { %1579 = vperm.xlu1 %4024, %v4934_v36   ;;  %1568 = vrot.lane.b32.xlu0 %v1560_v59, %s4242_s5  ;;  %v1610_v59 = vrot.slane %v1595_v5, %v4501_v48  ;;  %v1645_v5 = vrot.slane %v5023_v29, %v4495_v45 }
 0x61d   : > { %4025 = vset.pattern.permute.xlu1 %v4246_v31 }
 0x687   : > { %v5021_v58 = vpop.permute.xlu1 %1566 }
 0x688   : > { %6269 = vst [vmem:[#allocation56_spill] sm:$0xff] %v5021_v58  ;;  %v4248_v58 = vmov 30  }
 0x698   : > { %v1580_v54 = vpop.permute.xlu1 %1579 }
 0x699   : > { %v1611_v34 = vmul.f32 %v1602_v41, %v1580_v54  ;;  %v1612_v55 = vmul.f32 %v1606_v38, %v1580_v54  ;;  %v1613_v31 = vmul.f32 %v1610_v59, %v1580_v54  ;;  %v1652_v38 = vrot.slane %v1637_v50, %v4495_v45 }
 0x69a   : > { %v1656_v54 = vrot.slane %v1641_v4, %v4495_v45  ;;  %v1686_v50 = vrot.slane %v5015_v19, %v4511_v53  ;;  %v1690_v4 = vrot.slane %v5015_v19, %v4548_v10 }
 0x69b   : > { %1619 = vrot.lane.b32.xlu1 %v1612_v55, %s4247_s6  ;;  %1617 = vrot.lane.b32.xlu0 %v1611_v34, %s4247_s6 }
 0x69f   : > { %1631 = vperm.xlu1 %4025, %v4934_v36   ;;  %1621 = vrot.lane.b32.xlu0 %v1613_v31, %s4247_s6 }
 0x6a3   : > { %4026 = vset.pattern.permute.xlu1 %v4248_v58  ;;  %v1660_v58 = vrot.slane %v1645_v5, %v4495_v45  ;;  %v1694_v5 = vrot.slane %v5023_v29, %v4511_v53 }
 0x70d   : > { %v5038_v41 = vpop.permute.xlu1 %1619 }
 0x70e   : > { %6270 = vst [vmem:[#allocation57_spill] sm:$0xff] %v5038_v41  ;;  %v4249_v41 = vmov 31  }
 0x71e   : > { %v1632_v34 = vpop.permute.xlu1 %1631 }
 0x71f   : > { %v1661_v55 = vmul.f32 %v1652_v38, %v1632_v34  ;;  %v1662_v59 = vmul.f32 %v1656_v54, %v1632_v34  ;;  %v1663_v31 = vmul.f32 %v1660_v58, %v1632_v34  ;;  %v1701_v54 = vrot.slane %v1686_v50, %v4511_v53 }
 0x720   : > { %v1705_v34 = vrot.slane %v1690_v4, %v4511_v53  ;;  %v1735_v50 = vrot.slane %v5015_v19, %v4527_v0  ;;  %v1739_v4 = vrot.slane %v5015_v19, %v4559_v16 }
 0x721   : > { %1669 = vrot.lane.b32.xlu1 %v1662_v59, %s4247_s6  ;;  %1667 = vrot.lane.b32.xlu0 %v1661_v55, %s4247_s6 }
 0x725   : > { %1680 = vperm.xlu1 %4026, %v4934_v36   ;;  %1671 = vrot.lane.b32.xlu0 %v1663_v31, %s4247_s6 }
 0x729   : > { %4027 = vset.pattern.permute.xlu1 %v4249_v41  ;;  %v1709_v41 = vrot.slane %v1694_v5, %v4511_v53  ;;  %v1743_v5 = vrot.slane %v5023_v29, %v4527_v0 }
 0x793   : > { %v5053_v38 = vpop.permute.xlu1 %1669 }
 0x794   : > { %6271 = vst [vmem:[#allocation58_spill] sm:$0xff] %v5053_v38  ;;  %v4250_v38 = vmov 32  }
 0x795   : > { %4028 = vset.pattern.permute.xlu0 %v4250_v38  ;;  %v1758_v38 = vrot.slane %v1743_v5, %v4527_v0 }
 0x7a4   : > { %v1681_v55 = vpop.permute.xlu1 %1680 }
 0x7a5   : > { %v1710_v59 = vmul.f32 %v1701_v54, %v1681_v55  ;;  %v1711_v58 = vmul.f32 %v1705_v34, %v1681_v55  ;;  %v1712_v31 = vmul.f32 %v1709_v41, %v1681_v55  ;;  %v1750_v34 = vrot.slane %v1735_v50, %v4527_v0 }
 0x7a6   : > { %v1754_v55 = vrot.slane %v1739_v4, %v4527_v0  ;;  %v4252_v50 = vmov 33   ;;  %v5082_v4 = vpop.permute.xlu0 %1420 }
 0x7a7   : > { %1718 = vrot.lane.b32.xlu1 %v1711_v58, %s4247_s6  ;;  %1716 = vrot.lane.b32.xlu0 %v1710_v59, %s4247_s6 }
 0x7ab   : > { %1729 = vperm.xlu1 %4027, %v4934_v36   ;;  %1720 = vrot.lane.b32.xlu0 %v1712_v31, %s4247_s6  ;;  %v5079_v31 = vld [vmem:[#allocation6] sm:$0xf] }
 0x7af   : > { %4029 = vset.pattern.permute.xlu1 %v4252_v50 }
 0x819   : > { %v5068_v54 = vpop.permute.xlu1 %1718 }
 0x81a   : > { %6272 = vst [vmem:[#allocation59_spill] sm:$0xff] %v5068_v54 }
 0x82a   : > { %v1730_v36 = vpop.permute.xlu1 %1729 }
 0x82b   : > { %v1759_v59 = vmul.f32 %v1750_v34, %v1730_v36  ;;  %v1760_v58 = vmul.f32 %v1754_v55, %v1730_v36  ;;  %v1761_v41 = vmul.f32 %v1758_v38, %v1730_v36  ;;  %v5084_v34 = vpop.permute.xlu0 %1466 }
 0x82c   : > { %6273 = vst [vmem:[#allocation60_spill] sm:$0xff] %v5084_v34  ;;  %v4257_v34 = vmov 73  }
 0x82d   : > { %1767 = vrot.lane.b32.xlu1 %v1760_v58, %s4247_s6  ;;  %1765 = vrot.lane.b32.xlu0 %v1759_v59, %s4247_s6 }
 0x82f   : > { %v5086_v5 = vpop.permute.xlu0 %1470 }
 0x830   : > { %6274 = vst [vmem:[#allocation61_spill] sm:$0xff] %v5086_v5 }
 0x831   : > { %1777 = vrot.lane.b32.xlu1 %v4470_v24, %s4251_s14  ;;  %1769 = vrot.lane.b32.xlu0 %v1761_v41, %s4247_s6 }
 0x833   : > { %v5088_v55 = vpop.permute.xlu0 %1515 }
 0x834   : > { %6275 = vst [vmem:[#allocation62_spill] sm:$0xff] %v5088_v55 }
 0x835   : > { %1789 = vperm.xlu0 %4028, %v5079_v31  }
 0x837   : > { %v5090_v36 = vpop.permute.xlu0 %1519 }
 0x838   : > { %6276 = vst [vmem:[#allocation63_spill] sm:$0xff] %v5090_v36 }
 0x839   : > { %4032 = vset.pattern.permute.xlu0 %v4257_v34 }
 0x83b   : > { %v5092_v59 = vpop.permute.xlu0 %1564 }
 0x83c   : > { %6277 = vst [vmem:[#allocation64_spill] sm:$0xff] %v5092_v59 }
 0x83f   : > { %v5094_v24 = vpop.permute.xlu0 %1568 }
 0x840   : > { %6278 = vst [vmem:[#allocation65_spill] sm:$0xff] %v5094_v24 }
 0x843   : > { %v5096_v58 = vpop.permute.xlu0 %1617 }
 0x844   : > { %6279 = vst [vmem:[#allocation66_spill] sm:$0xff] %v5096_v58 }
 0x847   : > { %v5098_v38 = vpop.permute.xlu0 %1621 }
 0x848   : > { %6280 = vst [vmem:[#allocation67_spill] sm:$0xff] %v5098_v38 }
 0x84b   : > { %v5100_v41 = vpop.permute.xlu0 %1667 }
 0x84c   : > { %6281 = vst [vmem:[#allocation68_spill] sm:$0xff] %v5100_v41 }
 0x84f   : > { %v5102_v50 = vpop.permute.xlu0 %1671 }
 0x850   : > { %6282 = vst [vmem:[#allocation69_spill] sm:$0xff] %v5102_v50 }
 0x853   : > { %v5106_v7 = vpop.permute.xlu0 %1716 }
 0x854   : > { %6284 = vst [vmem:[#allocation71_spill] sm:$0xff] %v5106_v7 }
 0x857   : > { %v5110_v36 = vpop.permute.xlu0 %1720 }
 0x858   : > { %6286 = vst [vmem:[#allocation73_spill] sm:$0xff] %v5110_v36 }
 0x89f   : > { %v5104_v54 = vpop.permute.xlu1 %1767  ;;  %v5115_v58 = vpop.permute.xlu0 %1765 }
 0x8a0   : > { %6283 = vst [vmem:[#allocation70_spill] sm:$0xff] %v5104_v54  ;;  %6288 = vst [vmem:[#allocation75_spill] sm:$0xff] %v5115_v58 }
 0x8a3   : > { %v1778_v5 = vpop.permute.xlu1 %1777  ;;  %v5129_v36 = vpop.permute.xlu0 %1769 }
 0x8a4   : > { %v5108_v55 = vrot.slane %v1778_v5, 4  ;;  %6289 = vst [vmem:[#allocation76_spill] sm:$0xff] %v5129_v36  ;;  %v4254_v36 = vmov 34  }
 0x8a6   : > { %6285 = vst [vmem:[#allocation72_spill] sm:$0xff] %v5108_v55  ;;  %v5113_v24 = vsel %vm1780_vm14, %v5108_v55, %v1778_v5  ;;  %v5123_v54 = vmul.f32 %v5108_v55, %v5023_v29 }
 0x8a7   : > { %6287 = vst [vmem:[#allocation74_spill] sm:$0xff] %v5113_v24  ;;  %v5119_v41 = vmul.f32 %v5113_v24, %v5015_v19 }
 0x8a8   : > { %v1805_v50 = vrot.slane %v5123_v54, %v4501_v48 }
 0x8a9   : > { %v1797_v7 = vrot.slane %v5119_v41, %v4501_v48  ;;  %v1801_v5 = vrot.slane %v5119_v41, %v4588_v35 }
 0x8aa   : > { %v1820_v19 = vrot.slane %v1805_v50, %v4501_v48  ;;  %v1851_v50 = vrot.slane %v5119_v41, %v4525_v63 }
 0x8ab   : > { %v1812_v58 = vrot.slane %v1797_v7, %v4501_v48  ;;  %v1816_v29 = vrot.slane %v1801_v5, %v4501_v48 }
 0x8b4   : > { %v1790_v24 = vpop.permute.xlu0 %1789 }
 0x8b5   : > { %v1821_v38 = vmul.f32 %v1812_v58, %v1790_v24  ;;  %v1823_v59 = vmul.f32 %v1820_v19, %v1790_v24  ;;  %v1822_v55 = vmul.f32 %v1816_v29, %v1790_v24  ;;  %v1847_v58 = vrot.slane %v5119_v41, %v4495_v45 }
 0x8b7   : > { %1831 = vrot.lane.b32.xlu0 %v1823_v59, %s4253_s18  ;;  %1827 = vrot.lane.b32.xlu1 %v1821_v38, %s4253_s18  ;;  %v1855_v59 = vrot.slane %v5123_v54, %v4495_v45  ;;  %v1862_v24 = vrot.slane %v1847_v58, %v4495_v45  ;;  %v1896_v58 = vrot.slane %v5119_v41, %v4511_v53 }
 0x8b9   : > { %v1870_v29 = vrot.slane %v1855_v59, %v4495_v45  ;;  %v1904_v59 = vrot.slane %v5123_v54, %v4511_v53 }
 0x8bb   : > { %1829 = vrot.lane.b32.xlu1 %v1822_v55, %s4253_s18  ;;  %v1866_v55 = vrot.slane %v1851_v50, %v4495_v45  ;;  %v1900_v50 = vrot.slane %v5119_v41, %v4548_v10 }
 0x8bf   : > { %1841 = vperm.xlu1 %4029, %v5079_v31  }
 0x8c3   : > { %4030 = vset.pattern.permute.xlu1 %v4254_v36 }
 0x929   : > { %v5140_v7 = vpop.permute.xlu1 %1827 }
 0x92a   : > { %6290 = vst [vmem:[#allocation77_spill] sm:$0xff] %v5140_v7 }
 0x92d   : > { %v5146_v5 = vpop.permute.xlu1 %1829 }
 0x92e   : > { %6291 = vst [vmem:[#allocation78_spill] sm:$0xff] %v5146_v5  ;;  %v4255_v5 = vmov 35  }
 0x93e   : > { %v1842_v38 = vpop.permute.xlu1 %1841 }
 0x93f   : > { %v1871_v19 = vmul.f32 %v1862_v24, %v1842_v38  ;;  %v1872_v36 = vmul.f32 %v1866_v55, %v1842_v38  ;;  %v1873_v7 = vmul.f32 %v1870_v29, %v1842_v38  ;;  %v1911_v55 = vrot.slane %v1896_v58, %v4511_v53 }
 0x940   : > { %v1915_v38 = vrot.slane %v1900_v50, %v4511_v53  ;;  %v1945_v58 = vrot.slane %v5119_v41, %v4527_v0  ;;  %v1949_v50 = vrot.slane %v5119_v41, %v4559_v16 }
 0x941   : > { %1879 = vrot.lane.b32.xlu1 %v1872_v36, %s4253_s18  ;;  %1877 = vrot.lane.b32.xlu0 %v1871_v19, %s4253_s18 }
 0x945   : > { %1890 = vperm.xlu1 %4030, %v5079_v31   ;;  %1881 = vrot.lane.b32.xlu0 %v1873_v7, %s4253_s18 }
 0x949   : > { %4031 = vset.pattern.permute.xlu1 %v4255_v5  ;;  %v1919_v5 = vrot.slane %v1904_v59, %v4511_v53 }
 0x9b3   : > { %v5161_v24 = vpop.permute.xlu1 %1879 }
 0x9b4   : > { %6292 = vst [vmem:[#allocation79_spill] sm:$0xff] %v5161_v24  ;;  %v4256_v24 = vmov 37  }
 0x9c4   : > { %v1891_v19 = vpop.permute.xlu1 %1890 }
 0x9c5   : > { %v1920_v36 = vmul.f32 %v1911_v55, %v1891_v19  ;;  %v1921_v7 = vmul.f32 %v1915_v38, %v1891_v19  ;;  %v1922_v29 = vmul.f32 %v1919_v5, %v1891_v19  ;;  %v1953_v55 = vrot.slane %v5123_v54, %v4527_v0  ;;  %v1998_v5 = vld [vmem:[#allocation6] sm:$0xf] }
 0x9c6   : > { %v1960_v38 = vrot.slane %v1945_v58, %v4527_v0  ;;  %v4258_v54 = vmov 38   ;;  %v4260_v58 = vmov 40  }
 0x9c7   : > { %1928 = vrot.lane.b32.xlu1 %v1921_v7, %s4253_s18  ;;  %1926 = vrot.lane.b32.xlu0 %v1920_v36, %s4253_s18  ;;  %v1968_v34 = vrot.slane %v1953_v55, %v4527_v0  ;;  %v2006_v7 = vld [vmem:[#allocation6] sm:$0xf] }
 0x9cb   : > { %1939 = vperm.xlu1 %4031, %v5079_v31   ;;  %1930 = vrot.lane.b32.xlu0 %v1922_v29, %s4253_s18  ;;  %v1964_v31 = vrot.slane %v1949_v50, %v4527_v0  ;;  %v4259_v29 = vmov 39   ;;  %v4070_v50 = vld [vmem:[#allocation2] sm:$0xff] }
 0x9cc   : > { %v219_v55 = vmul.f32 %v4070_v50, %v4473_v30 }
 0x9cf   : > { %4033 = vset.pattern.permute.xlu1 %v4256_v24 }
 0xa39   : > { %v5176_v59 = vpop.permute.xlu1 %1928 }
 0xa3a   : > { %6293 = vst [vmem:[#allocation80_spill] sm:$0xff] %v5176_v59  ;;  %v312_v59 = vrot.slane %v219_v55, %v4559_v16 }
 0xa4a   : > { %v1940_v19 = vpop.permute.xlu1 %1939 }
 0xa4b   : > { %v1969_v36 = vmul.f32 %v1960_v38, %v1940_v19  ;;  %v1970_v24 = vmul.f32 %v1964_v31, %v1940_v19  ;;  %v1971_v41 = vmul.f32 %v1968_v34, %v1940_v19  ;;  %v5187_v38 = vld [vmem:[#allocation6] sm:$0xf]  ;;  %v4261_v31 = vmov 58  }
 0xa4c   : > { %6294 = vst [vmem:[#allocation81_spill] sm:$0xff] %v5187_v38  ;;  %v230_v19 = vrot.slane %v219_v55, %v4501_v48 }
 0xa4d   : > { %1977 = vrot.lane.b32.xlu1 %v1970_v24, %s4253_s18  ;;  %1975 = vrot.lane.b32.xlu0 %v1969_v36, %s4253_s18  ;;  %v4262_v36 = vmov 41   ;;  %v5191_v24 = vld [vmem:[#allocation6] sm:$0xf] }
 0xa4e   : > { %6295 = vst [vmem:[#allocation82_spill] sm:$0xff] %v5191_v24  ;;  %v240_v34 = vrot.slane %v230_v19, %v4501_v48  ;;  %v260_v19 = vrot.slane %v219_v55, %v4525_v63 }
 0xa50   : > { %v245_v50 = vmul.f32 %v240_v34, %v4490_v42 }
 0xa51   : > { %1979 = vrot.lane.b32.xlu0 %v1971_v41, %s4253_s18  ;;  %2009 = vperm.xlu1 %4033, %v2006_v7   ;;  %v256_v41 = vrot.slane %v219_v55, %v4495_v45 }
 0xa55   : > { %4034 = vset.pattern.permute.xlu1 %v4258_v54  ;;  %2001 = vperm.xlu0 %4032, %v1998_v5   ;;  %v4263_v5 = vmov 61   ;;  %v4264_v54 = vmov 42  }
 0xa56   : > { %2036 = vperm.xlu1 %4034, %v2006_v7  }
 0xa59   : > { %4035 = vset.pattern.permute.xlu0 %v4259_v29  ;;  %v234_v29 = vrot.slane %v219_v55, %v4588_v35 }
 0xa5a   : > { %4036 = vset.pattern.permute.xlu1 %v4260_v58  ;;  %2062 = vperm.xlu0 %4035, %v2006_v7   ;;  %v282_v58 = vrot.slane %v219_v55, %v4511_v53 }
 0xa5b   : > { %2088 = vperm.xlu1 %4036, %v2006_v7  }
 0xa5c   : > { %v292_v30 = vrot.slane %v282_v58, %v4511_v53  ;;  %v4266_v58 = vmov 44  }
 0xa5e   : > { %4054 = vset.pattern.permute.xlu0 %v4261_v31  ;;  %v266_v31 = vrot.slane %v256_v41, %v4495_v45  ;;  %v270_v41 = vrot.slane %v260_v19, %v4495_v45  ;;  %v4267_v19 = vmov 45  }
 0xa5f   : > { %4037 = vset.pattern.permute.xlu1 %v4262_v36  ;;  %2975 = vperm.xlu0 %4054, %v5187_v38   ;;  %v244_v36 = vrot.slane %v234_v29, %v4501_v48  ;;  %v286_v38 = vrot.slane %v219_v55, %v4548_v10  ;;  %v297_v29 = vmul.f32 %v292_v30, %v4509_v52 }
 0xa60   : > { %2116 = vperm.xlu1 %4037, %v2006_v7   ;;  %v271_v35 = vmul.f32 %v266_v31, %v4497_v46  ;;  %v322_v30 = vrot.slane %v312_v59, %v4527_v0 }
 0xa61   : > { %v246_v34 = vmul.f32 %v244_v36, %v4490_v42 }
 0xa63   : > { %4057 = vset.pattern.permute.xlu0 %v4263_v5  ;;  %v308_v5 = vrot.slane %v219_v55, %v4527_v0  ;;  %v248_v31 = vadd.f32 %v246_v34, %v4499_v47 }
 0xa64   : > { %4038 = vset.pattern.permute.xlu1 %v4264_v54  ;;  %3128 = vperm.xlu0 %4057, %v5191_v24   ;;  %v4265_v54 = vmov 43   ;;  %v247_v24 = vadd.f32 %v245_v50, %v4499_v47  ;;  %v272_v50 = vmul.f32 %v270_v41, %v4497_v46  ;;  %v324_v46 = vmul.f32 %v322_v30, %v4507_v51  ;;  %v6298_v30 = vld [vmem:[#allocation31_spill] sm:$0xff] }
 0xa65   : > { %2167 = vperm.xlu1 %4038, %v2006_v7   ;;  %v318_v63 = vrot.slane %v308_v5, %v4527_v0 }
 0xa66   : > { %v273_v48 = vadd.f32 %v271_v35, %v247_v24  ;;  %v375_v35 = vsel %vm374_vm15, %v4763_v43, %v4818_v26  ;;  %v274_v55 = vadd.f32 %v272_v50, %v248_v31  ;;  %v473_v43 = vsel %vm374_vm15, %v4824_v28, %v4771_v1 }
 0xa67   : > { %v323_v42 = vmul.f32 %v318_v63, %v4507_v51  ;;  %v522_v51 = vsel %vm374_vm15, %v4827_v25, %v4773_v3  ;;  %v637_v28 = vsel %vm587_vm1, %v4851_v56, %v4785_v6  ;;  %v899_v31 = vsel %vm799_vm2, %v4803_v17, %v4847_v39 }
 0xa68   : > { %v299_v10 = vadd.f32 %v297_v29, %v273_v48  ;;  %v424_v48 = vsel %vm374_vm15, %v4767_v33, %v4769_v62  ;;  %v425_v33 = vsel %vm374_vm15, %v4769_v62, %v4793_v11  ;;  %v686_v62 = vsel %vm587_vm1, %v4853_v57, %v4787_v12 }
 0xa69   : > { %4039 = vset.pattern.permute.xlu1 %v4265_v54  ;;  %v296_v54 = vrot.slane %v286_v38, %v4511_v53  ;;  %v523_v29 = vsel %vm374_vm15, %v4773_v3, %v4801_v22  ;;  %v687_v3 = vsel %vm587_vm1, %v4787_v12, %v4839_v49  ;;  %v850_v49 = vsel %vm799_vm2, %v4799_v20, %v4845_v37 }
 0xa6a   : > { %2216 = vperm.xlu1 %4039, %v2006_v7  }
 0xa6b   : > { %v298_v36 = vmul.f32 %v296_v54, %v4509_v52  ;;  %v376_v52 = vsel %vm374_vm15, %v4818_v26, %v4754_v44  ;;  %v588_v44 = vsel %vm587_vm1, %v4781_v60, %v4783_v8  ;;  %v474_v26 = vsel %vm374_vm15, %v4771_v1, %v4797_v18 }
 0xa6c   : > { %v589_v60 = vsel %vm587_vm1, %v4783_v8, %v4835_v2  ;;  %v735_v1 = vsel %vm587_vm1, %v4855_v61, %v4789_v13  ;;  %v800_v8 = vsel %vm799_vm2, %v4791_v9, %v4795_v14  ;;  %v736_v2 = vsel %vm587_vm1, %v4789_v13, %v4841_v15 }
 0xa6d   : > { %v300_v38 = vadd.f32 %v298_v36, %v274_v55  ;;  %v898_v9 = vsel %vm799_vm2, %v4859_v40, %v4803_v17  ;;  %v6300_v55 = vld [vmem:[#allocation28_spill] sm:$0xff]  ;;  %v6301_v17 = vld [vmem:[#allocation25_spill] sm:$0xff] }
 0xa6e   : > { %4040 = vset.pattern.permute.xlu1 %v4266_v58  ;;  %v638_v58 = vsel %vm587_vm1, %v4785_v6, %v4837_v32  ;;  %v801_v6 = vsel %vm799_vm2, %v4795_v14, %v4843_v27  ;;  %v849_v32 = vsel %vm799_vm2, %v4857_v23, %v4799_v20  ;;  %v6296_v14 = vld [vmem:[#allocation26_spill] sm:$0xff]  ;;  %v6297_v27 = vld [vmem:[#allocation33_spill] sm:$0xff] }
 0xa6f   : > { %2265 = vperm.xlu1 %4040, %v2006_v7   ;;  %v325_v7 = vadd.f32 %v323_v42, %v299_v10  ;;  %v326_v63 = vadd.f32 %v324_v46, %v300_v38  ;;  %v947_v42 = vsel %vm799_vm2, %v6297_v27, %v6296_v14  ;;  %v948_v20 = vsel %vm799_vm2, %v6296_v14, %v6298_v30  ;;  %v6320_v14 = vld [vmem:[#allocation46_spill] sm:$0xff]  ;;  %v6321_v27 = vld [vmem:[#allocation51_spill] sm:$0xff] }
 0xa71   : > { %v379_v47 = vadd.f32 %v375_v35, %v325_v7  ;;  %v380_v24 = vadd.f32 %v376_v52, %v326_v63  ;;  %v6299_v35 = vld [vmem:[#allocation22_spill] sm:$0xff] }
 0xa72   : > { %v1001_v7 = vsel %vm1000_vm3, %v6300_v55, %v6299_v35  ;;  %v1002_v39 = vsel %vm1000_vm3, %v6299_v35, %v6301_v17  ;;  %v6325_v17 = vld [vmem:[#allocation60_spill] sm:$0xff] }
 0xa73   : > { %4041 = vset.pattern.permute.xlu1 %v4267_v19  ;;  %v428_v59 = vadd.f32 %v424_v48, %v379_v47  ;;  %v429_v5 = vadd.f32 %v425_v33, %v380_v24  ;;  %v6302_v47 = vld [vmem:[#allocation23_spill] sm:$0xff]  ;;  %v6303_v48 = vld [vmem:[#allocation29_spill] sm:$0xff] }
 0xa74   : > { %v1050_v52 = vsel %vm1000_vm3, %v6303_v48, %v6302_v47  ;;  %v6305_v24 = vld [vmem:[#allocation35_spill] sm:$0xff] }
 0xa75   : > { %v477_v10 = vadd.f32 %v473_v43, %v428_v59  ;;  %v478_v41 = vadd.f32 %v474_v26, %v429_v5  ;;  %v6304_v59 = vld [vmem:[#allocation27_spill] sm:$0xff]  ;;  %v6307_v5 = vld [vmem:[#allocation30_spill] sm:$0xff]  ;;  %v6309_v26 = vld [vmem:[#allocation37_spill] sm:$0xff] }
 0xa76   : > { %v1051_v43 = vsel %vm1000_vm3, %v6302_v47, %v6304_v59 }
 0xa77   : > { %v526_v34 = vadd.f32 %v522_v51, %v477_v10  ;;  %v527_v18 = vadd.f32 %v523_v29, %v478_v41  ;;  %v6306_v51 = vld [vmem:[#allocation24_spill] sm:$0xff] }
 0xa78   : > { %v1100_v10 = vsel %vm1000_vm3, %v6306_v51, %v6305_v24  ;;  %v6311_v29 = vld [vmem:[#allocation40_spill] sm:$0xff] }
 0xa79   : > { %v592_v25 = vadd.f32 %v588_v44, %v526_v34  ;;  %v593_v57 = vadd.f32 %v589_v60, %v527_v18  ;;  %v1099_v34 = vsel %vm1000_vm3, %v6307_v5, %v6306_v51  ;;  %v6308_v44 = vld [vmem:[#allocation32_spill] sm:$0xff]  ;;  %v6312_v60 = vld [vmem:[#allocation39_spill] sm:$0xff] }
 0xa7a   : > { %v6313_v18 = vld [vmem:[#allocation43_spill] sm:$0xff]  ;;  %v6331_v5 = vld [vmem:[#allocation64_spill] sm:$0xff] }
 0xa7b   : > { %v641_v11 = vadd.f32 %v637_v28, %v592_v25  ;;  %v642_v22 = vadd.f32 %v638_v58, %v593_v57  ;;  %v1148_v28 = vsel %vm1000_vm3, %v6309_v26, %v6308_v44  ;;  %v6310_v25 = vld [vmem:[#allocation38_spill] sm:$0xff] }
 0xa7c   : > { %v1149_v41 = vsel %vm1000_vm3, %v6308_v44, %v6310_v25  ;;  %v6332_v44 = vld [vmem:[#allocation65_spill] sm:$0xff] }
 0xa7d   : > { %v690_v56 = vadd.f32 %v686_v62, %v641_v11  ;;  %v691_v61 = vadd.f32 %v687_v3, %v642_v22  ;;  %v6315_v3 = vld [vmem:[#allocation44_spill] sm:$0xff] }
 0xa7f   : > { %v739_v54 = vadd.f32 %v735_v1, %v690_v56  ;;  %v740_v12 = vadd.f32 %v736_v2, %v691_v61  ;;  %v1211_v1 = vsel %vm1210_vm4, %v6312_v60, %v6311_v29  ;;  %v1212_v56 = vsel %vm1210_vm4, %v6311_v29, %v6313_v18  ;;  %v6335_v29 = vld [vmem:[#allocation67_spill] sm:$0xff] }
 0xa81   : > { %v804_v50 = vadd.f32 %v800_v8, %v739_v54  ;;  %v805_v13 = vadd.f32 %v801_v6, %v740_v12  ;;  %v6314_v54 = vld [vmem:[#allocation41_spill] sm:$0xff]  ;;  %v1832_v6 = vpop.permute.xlu0 %1831  ;;  %v6318_v12 = vld [vmem:[#allocation47_spill] sm:$0xff] }
 0xa82   : > { %v1260_v22 = vsel %vm1210_vm4, %v6315_v3, %v6314_v54  ;;  %v6316_v8 = vld [vmem:[#allocation45_spill] sm:$0xff] }
 0xa83   : > { %v853_v15 = vadd.f32 %v849_v32, %v804_v50  ;;  %v854_v23 = vadd.f32 %v850_v49, %v805_v13  ;;  %v1261_v2 = vsel %vm1210_vm4, %v6314_v54, %v6316_v8  ;;  %v6317_v32 = vld [vmem:[#allocation42_spill] sm:$0xff]  ;;  %v6338_v3 = vld [vmem:[#allocation69_spill] sm:$0xff] }
 0xa84   : > { %v1309_v49 = vsel %vm1210_vm4, %v6318_v12, %v6317_v32  ;;  %v6341_v12 = vld [vmem:[#allocation73_spill] sm:$0xff] }
 0xa85   : > { %v902_v36 = vadd.f32 %v898_v9, %v853_v15  ;;  %v903_v37 = vadd.f32 %v899_v31, %v854_v23  ;;  %v6319_v9 = vld [vmem:[#allocation49_spill] sm:$0xff]  ;;  %v1359_v23 = vsel %vm1210_vm4, %v6320_v14, %v4964_v21 }
 0xa86   : > { %v1310_v13 = vsel %vm1210_vm4, %v6317_v32, %v6319_v9 }
 0xa87   : > { %v951_v19 = vadd.f32 %v947_v42, %v902_v36  ;;  %v952_v40 = vadd.f32 %v948_v20, %v903_v37  ;;  %v1358_v42 = vsel %vm1210_vm4, %v6321_v27, %v6320_v14  ;;  %v1878_v20 = vpop.permute.xlu0 %1877  ;;  %v6322_v37 = vld [vmem:[#allocation53_spill] sm:$0xff]  ;;  %v6344_v27 = vld [vmem:[#allocation76_spill] sm:$0xff] }
 0xa88   : > { %v1424_v35 = vsel %vm1422_vm5, %v6322_v37, %v5082_v4 }
 0xa89   : > { %v1005_v38 = vadd.f32 %v1001_v7, %v951_v19  ;;  %v1006_v46 = vadd.f32 %v1002_v39, %v952_v40  ;;  %v6323_v19 = vld [vmem:[#allocation52_spill] sm:$0xff] }
 0xa8a   : > { %v1423_v40 = vsel %vm1422_vm5, %v6323_v19, %v6322_v37  ;;  %v6345_v37 = vld [vmem:[#allocation78_spill] sm:$0xff]  ;;  %v6346_v19 = vld [vmem:[#allocation77_spill] sm:$0xff] }
 0xa8b   : > { %v1054_v63 = vadd.f32 %v1050_v52, %v1005_v38  ;;  %v1055_v33 = vadd.f32 %v1051_v43, %v1006_v46  ;;  %v6324_v38 = vld [vmem:[#allocation54_spill] sm:$0xff]  ;;  %v6326_v46 = vld [vmem:[#allocation61_spill] sm:$0xff]  ;;  %v6327_v52 = vld [vmem:[#allocation55_spill] sm:$0xff] }
 0xa8c   : > { %v1472_v39 = vsel %vm1422_vm5, %v6325_v17, %v6324_v38  ;;  %v1473_v21 = vsel %vm1422_vm5, %v6324_v38, %v6326_v46  ;;  %v6329_v43 = vld [vmem:[#allocation63_spill] sm:$0xff] }
 0xa8d   : > { %v1104_v62 = vadd.f32 %v1100_v10, %v1055_v33  ;;  %v1103_v11 = vadd.f32 %v1099_v34, %v1054_v63  ;;  %v6328_v63 = vld [vmem:[#allocation62_spill] sm:$0xff]  ;;  %v1522_v4 = vsel %vm1422_vm5, %v6327_v52, %v6329_v43  ;;  %v1882_v10 = vpop.permute.xlu0 %1881  ;;  %v6330_v33 = vld [vmem:[#allocation56_spill] sm:$0xff]  ;;  %v6347_v38 = vld [vmem:[#allocation79_spill] sm:$0xff] }
 0xa8e   : > { %v1521_v59 = vsel %vm1422_vm5, %v6328_v63, %v6327_v52  ;;  %v1570_v34 = vsel %vm1422_vm5, %v6331_v5, %v6330_v33  ;;  %v1571_v26 = vsel %vm1422_vm5, %v6330_v33, %v6332_v44  ;;  %v1883_v17 = vsel %vm1833_vm7, %v1878_v20, %v6347_v38  ;;  %v6348_v52 = vld [vmem:[#allocation80_spill] sm:$0xff]  ;;  %v2315_v44 = vld [vmem:[#allocation6] sm:$0xf] }
 0xa8f   : > { %v1152_v58 = vadd.f32 %v1148_v28, %v1103_v11  ;;  %v1153_v57 = vadd.f32 %v1149_v41, %v1104_v62  ;;  %v6333_v41 = vld [vmem:[#allocation57_spill] sm:$0xff]  ;;  %v6334_v62 = vld [vmem:[#allocation66_spill] sm:$0xff] }
 0xa90   : > { %v1624_v11 = vsel %vm1623_vm6, %v6334_v62, %v6333_v41  ;;  %v1625_v60 = vsel %vm1623_vm6, %v6333_v41, %v6335_v29  ;;  %v2519_v41 = vld [vmem:[#allocation6] sm:$0xf]  ;;  %v4271_v62 = vmov 49   ;;  %v4273_v29 = vmov 51  }
 0xa91   : > { %v1215_v61 = vadd.f32 %v1211_v1, %v1152_v58  ;;  %v1216_v50 = vadd.f32 %v1212_v56, %v1153_v57  ;;  %v1927_v56 = vpop.permute.xlu0 %1926  ;;  %v6336_v58 = vld [vmem:[#allocation58_spill] sm:$0xff]  ;;  %v6337_v57 = vld [vmem:[#allocation68_spill] sm:$0xff] }
 0xa92   : > { %v1673_v54 = vsel %vm1623_vm6, %v6337_v57, %v6336_v58  ;;  %v1932_v63 = vsel %vm1833_vm7, %v1927_v56, %v6348_v52  ;;  %v4277_v56 = vmov 55   ;;  %v4279_v57 = vmov 57  }
 0xa93   : > { %v1264_v15 = vadd.f32 %v1260_v22, %v1215_v61  ;;  %v1265_v31 = vadd.f32 %v1261_v2, %v1216_v50  ;;  %v1674_v22 = vsel %vm1623_vm6, %v6336_v58, %v6338_v3  ;;  %v6339_v61 = vld [vmem:[#allocation59_spill] sm:$0xff]  ;;  %v4278_v58 = vmov 56  }
 0xa94   : > { %v6340_v50 = vld [vmem:[#allocation71_spill] sm:$0xff]  ;;  %v4280_v3 = vmov 59  }
 0xa95   : > { %v1313_v36 = vadd.f32 %v1309_v49, %v1264_v15  ;;  %v1314_v30 = vadd.f32 %v1310_v13, %v1265_v31  ;;  %v1722_v32 = vsel %vm1623_vm6, %v6340_v50, %v6339_v61  ;;  %v1723_v49 = vsel %vm1623_vm6, %v6339_v61, %v6341_v12  ;;  %v6342_v15 = vld [vmem:[#allocation70_spill] sm:$0xff]  ;;  %v6343_v31 = vld [vmem:[#allocation75_spill] sm:$0xff] }
 0xa96   : > { %v1771_v14 = vsel %vm1623_vm6, %v6343_v31, %v6342_v15  ;;  %v6350_v50 = vld [vmem:[#allocation82_spill] sm:$0xff] }
 0xa97   : > { %v1362_v55 = vadd.f32 %v1358_v42, %v1313_v36  ;;  %v1363_v7 = vadd.f32 %v1359_v23, %v1314_v30  ;;  %v1772_v42 = vsel %vm1623_vm6, %v6342_v15, %v6344_v27  ;;  %v1931_v30 = vpop.permute.xlu0 %1930 }
 0xa99   : > { %v1427_v47 = vadd.f32 %v1423_v40, %v1362_v55  ;;  %v1428_v48 = vadd.f32 %v1424_v35, %v1363_v7  ;;  %v1834_v40 = vsel %vm1833_vm7, %v6346_v19, %v6345_v37  ;;  %v1835_v35 = vsel %vm1833_vm7, %v6345_v37, %v1832_v6 }
 0xa9b   : > { %v1476_v24 = vadd.f32 %v1472_v39, %v1427_v47  ;;  %v1477_v51 = vadd.f32 %v1473_v21, %v1428_v48  ;;  %v1884_v39 = vsel %vm1833_vm7, %v6347_v38, %v1882_v10  ;;  %v6353_v38 = vld [vmem:[#allocation17_spill] sm:$0xff] }
 0xa9d   : > { %v1525_v28 = vadd.f32 %v1521_v59, %v1476_v24  ;;  %v1526_v25 = vadd.f32 %v1522_v4, %v1477_v51  ;;  %v1933_v59 = vsel %vm1833_vm7, %v6348_v52, %v1931_v30  ;;  %v6352_v30 = vld [vmem:[#allocation14_spill] sm:$0xff] }
 0xa9f   : > { %v1574_v1 = vadd.f32 %v1570_v34, %v1525_v28  ;;  %v1575_v18 = vadd.f32 %v1571_v26, %v1526_v25  ;;  %v4268_v26 = vmov 46   ;;  %v4269_v28 = vmov 47  }
 0xaa0   : > { %v4270_v25 = vmov 48  }
 0xaa1   : > { %v1628_v8 = vadd.f32 %v1624_v11, %v1574_v1  ;;  %v1629_v2 = vadd.f32 %v1625_v60, %v1575_v18  ;;  %v4272_v11 = vmov 50   ;;  %v4274_v60 = vmov 52  }
 0xaa2   : > { %v4275_v1 = vmov 53   ;;  %v4276_v18 = vmov 54  }
 0xaa3   : > { %v1677_v9 = vadd.f32 %v1673_v54, %v1628_v8  ;;  %v1678_v13 = vadd.f32 %v1674_v22, %v1629_v2  ;;  %v6349_v54 = vld [vmem:[#allocation81_spill] sm:$0xff]  ;;  %v4281_v8 = vmov 60   ;;  %v4282_v2 = vmov 62  }
 0xaa5   : > { %v1726_v23 = vadd.f32 %v1722_v32, %v1677_v9  ;;  %v1727_v36 = vadd.f32 %v1723_v49, %v1678_v13  ;;  %v4283_v32 = vmov 63   ;;  %v4284_v9 = vmov 65  }
 0xaa7   : > { %v1775_v55 = vadd.f32 %v1771_v14, %v1726_v23  ;;  %v1776_v7 = vadd.f32 %v1772_v42, %v1727_v36  ;;  %v6356_v23 = vld [vmem:[#allocation19_spill] sm:$0xff] }
 0xaa9   : > { %v1838_v46 = vadd.f32 %v1834_v40, %v1775_v55  ;;  %v1839_v21 = vadd.f32 %v1835_v35, %v1776_v7 }
 0xaab   : > { %v1887_v43 = vadd.f32 %v1883_v17, %v1838_v46  ;;  %v1888_v6 = vadd.f32 %v1884_v39, %v1839_v21  ;;  %v6354_v46 = vld [vmem:[#allocation15_spill] sm:$0xff] }
 0xaad   : > { %v1936_v24 = vadd.f32 %v1932_v63, %v1887_v43  ;;  %v1937_v51 = vadd.f32 %v1933_v59, %v1888_v6  ;;  %v6355_v6 = vld [vmem:[#allocation16_spill] sm:$0xff] }
 0xabf   : > { %v1978_v47 = vpop.permute.xlu1 %1977  ;;  %v1976_v48 = vpop.permute.xlu0 %1975 }
 0xac0   : > { %v1981_v4 = vsel %vm1833_vm7, %v1976_v48, %v1978_v47 }
 0xac1   : > { %v1985_v10 = vadd.f32 %v1981_v4, %v1936_v24 }
 0xac3   : > { %v1980_v20 = vpop.permute.xlu0 %1979 }
 0xac4   : > { %v1982_v33 = vsel %vm1833_vm7, %v1978_v47, %v1980_v20 }
 0xac5   : > { %v1986_v5 = vadd.f32 %v1982_v33, %v1937_v51 }
 0xac7   : > { %v1989_v34 = vcombine.low %v1985_v10, %v1986_v5 }
 0xac9   : > { %1990 = vrot.lane.b32.xlu1 %v1989_v34, %s4206_s17 }
 0xacd   : > { %2318 = vperm.xlu1 %4041, %v2315_v44  }
 0xad0   : > { %v5405_v22 = vpop.permute.xlu1 %2009 }
 0xad1   : > { %4042 = vset.pattern.permute.xlu1 %v4268_v26 }
 0xad2   : > { %2369 = vperm.xlu1 %4042, %v2315_v44  }
 0xad5   : > { %v5408_v61 = vpop.permute.xlu1 %2036 }
 0xad6   : > { %4043 = vset.pattern.permute.xlu1 %v4269_v28 }
 0xad7   : > { %2418 = vperm.xlu1 %4043, %v2315_v44  }
 0xada   : > { %v5412_v12 = vpop.permute.xlu1 %2088 }
 0xadb   : > { %4044 = vset.pattern.permute.xlu1 %v4270_v25 }
 0xadc   : > { %2467 = vperm.xlu1 %4044, %v2315_v44  }
 0xadf   : > { %v5414_v49 = vpop.permute.xlu1 %2116 }
 0xae0   : > { %4045 = vset.pattern.permute.xlu1 %v4271_v62 }
 0xae1   : > { %2522 = vperm.xlu1 %4045, %v2519_v41  }
 0xae4   : > { %v5416_v13 = vpop.permute.xlu1 %2167 }
 0xae5   : > { %4046 = vset.pattern.permute.xlu1 %v4272_v11 }
 0xae6   : > { %2573 = vperm.xlu1 %4046, %v2519_v41  }
 0xae9   : > { %v5418_v15 = vpop.permute.xlu1 %2216 }
 0xaea   : > { %4047 = vset.pattern.permute.xlu1 %v4273_v29 }
 0xaeb   : > { %2622 = vperm.xlu1 %4047, %v2519_v41  }
 0xaee   : > { %v5420_v31 = vpop.permute.xlu1 %2265 }
 0xaef   : > { %4048 = vset.pattern.permute.xlu1 %v4274_v60 }
 0xaf0   : > { %2671 = vperm.xlu1 %4048, %v2519_v41  }
 0xaf4   : > { %4049 = vset.pattern.permute.xlu1 %v4275_v1 }
 0xaf5   : > { %2722 = vperm.xlu1 %4049, %v2519_v41  }
 0xaf9   : > { %4050 = vset.pattern.permute.xlu1 %v4276_v18 }
 0xafa   : > { %2773 = vperm.xlu1 %4050, %v2519_v41  }
 0xafe   : > { %4051 = vset.pattern.permute.xlu1 %v4277_v56 }
 0xaff   : > { %2822 = vperm.xlu1 %4051, %v2519_v41  }
 0xb03   : > { %4052 = vset.pattern.permute.xlu1 %v4278_v58 }
 0xb04   : > { %2871 = vperm.xlu1 %4052, %v2519_v41  }
 0xb08   : > { %4053 = vset.pattern.permute.xlu1 %v4279_v57 }
 0xb09   : > { %2924 = vperm.xlu1 %4053, %v6349_v54  }
 0xb0d   : > { %4055 = vset.pattern.permute.xlu1 %v4280_v3 }
 0xb0e   : > { %3024 = vperm.xlu1 %4055, %v6349_v54  }
 0xb12   : > { %4056 = vset.pattern.permute.xlu1 %v4281_v8 }
 0xb13   : > { %3073 = vperm.xlu1 %4056, %v6349_v54  }
 0xb17   : > { %4058 = vset.pattern.permute.xlu1 %v4282_v2 }
 0xb18   : > { %3179 = vperm.xlu1 %4058, %v6350_v50  }
 0xb1c   : > { %4059 = vset.pattern.permute.xlu1 %v4283_v32  ;;  %v4285_v32 = vmov 64  }
 0xb1d   : > { %3228 = vperm.xlu1 %4059, %v6350_v50   ;;  %4060 = vset.pattern.permute.xlu0 %v4285_v32 }
 0xb21   : > { %4061 = vset.pattern.permute.xlu1 %v4284_v9 }
 0xb3b   : > { %v1991_v14 = vpop.permute.xlu1 %1990 }
 0xb3c   : > { %v1992_v27 = vrot.slane %v1991_v14, 4 }
 0xb3e   : > { %v1993_v42 = vsel %vm199_vm8, %v1992_v27, %v1991_v14  ;;  %1997 = vst.msk [vmem:[#allocation2 + $0x8] sm:$0xf] %vm190_vm0, %v1992_v27 }
 0xb3f   : > { %1996 = vst.msk [vmem:[#allocation2] sm:$0xff] %vm4482_vm9, %v1993_v42 }
 0xb45   : > { %v5426_v36 = vld [vmem:[#allocation2 + $0x8] sm:$0xf] }
 0xb46   : > { %v2132_v37 = vrot.slane %v5426_v36, %v6352_v30  ;;  %v5434_v55 = vld [vmem:[#allocation2] sm:$0xff]  ;;  %v2181_v39 = vrot.slane %v5426_v36, %v4495_v45  ;;  %v2230_v63 = vrot.slane %v5426_v36, %v4511_v53  ;;  %v2279_v20 = vrot.slane %v5426_v36, %v4527_v0  ;;  %v5496_v1 = vld [vmem:[#allocation2 + $0x8] sm:$0xf] }
 0xb47   : > { %v2128_v17 = vrot.slane %v5434_v55, %v6353_v38  ;;  %v2177_v21 = vrot.slane %v5434_v55, %v6354_v46  ;;  %v2226_v4 = vrot.slane %v5434_v55, %v6355_v6  ;;  %v2275_v34 = vrot.slane %v5434_v55, %v4559_v16 }
 0xb48   : > { %v2147_v19 = vrot.slane %v2132_v37, %v6352_v30  ;;  %v2196_v52 = vrot.slane %v2181_v39, %v4495_v45  ;;  %v2245_v51 = vrot.slane %v2230_v63, %v4511_v53  ;;  %v2294_v26 = vrot.slane %v2279_v20, %v4527_v0 }
 0xb49   : > { %v5446_v47 = vrot.slane %v2128_v17, %v6352_v30  ;;  %v5456_v43 = vrot.slane %v2177_v21, %v4495_v45  ;;  %v5471_v5 = vrot.slane %v2226_v4, %v4511_v53  ;;  %v5482_v25 = vrot.slane %v2275_v34, %v4527_v0 }
 0xb4a   : > { %v2150_v35 = vmul.f32 %v2147_v19, %v5414_v49  ;;  %v2199_v24 = vmul.f32 %v2196_v52, %v5416_v13  ;;  %v2248_v44 = vmul.f32 %v2245_v51, %v5418_v15  ;;  %v2297_v62 = vmul.f32 %v2294_v26, %v5420_v31 }
 0xb4b   : > { %v2149_v59 = vmul.f32 %v5446_v47, %v5414_v49  ;;  %v2198_v10 = vmul.f32 %v5456_v43, %v5416_v13  ;;  %v2247_v28 = vmul.f32 %v5471_v5, %v5418_v15  ;;  %v2296_v11 = vmul.f32 %v5482_v25, %v5420_v31 }
 0xb4c   : > { %v5431_v40 = vpop.permute.xlu1 %2318  ;;  %2158 = vrot.lane.b32.xlu0 %v2150_v35, %s4229_s24  ;;  %v2738_v56 = vrot.slane %v5496_v1, %v6352_v30  ;;  %v2787_v54 = vrot.slane %v5496_v1, %v4495_v45  ;;  %v2836_v14 = vrot.slane %v5496_v1, %v4511_v53  ;;  %v5522_v37 = vmul.f32 %v5434_v55, %v6356_v23 }
 0xb4d   : > { %2156 = vrot.lane.b32.xlu1 %v2149_v59, %s4229_s24  ;;  %v2885_v17 = vrot.slane %v5496_v1, %v4527_v0  ;;  %v2730_v63 = vrot.slane %v5434_v55, %v6352_v30  ;;  %v2779_v20 = vrot.slane %v5434_v55, %v4495_v45 }
 0xb4e   : > { %v2753_v58 = vrot.slane %v2738_v56, %v6352_v30  ;;  %v2802_v2 = vrot.slane %v2787_v54, %v4495_v45  ;;  %v2851_v19 = vrot.slane %v2836_v14, %v4511_v53  ;;  %v2330_v39 = vrot.slane %v5522_v37, %v6353_v38  ;;  %v6357_v14 = vld [vmem:[#allocation21_spill] sm:$0xff] }
 0xb4f   : > { %v2900_v59 = vrot.slane %v2885_v17, %v4527_v0  ;;  %v5539_v51 = vrot.slane %v2730_v63, %v6352_v30  ;;  %v2477_v32 = vrot.slane %v5522_v37, %v4559_v16 }
 0xb50   : > { %2207 = vrot.lane.b32.xlu0 %v2199_v24, %s4229_s24  ;;  %v2345_v4 = vrot.slane %v2330_v39, %v6352_v30 }
 0xb51   : > { %v5436_v7 = vpop.permute.xlu1 %2369  ;;  %2205 = vrot.lane.b32.xlu1 %v2198_v10, %s4229_s24 }
 0xb52   : > { %v2351_v26 = vmul.f32 %v2345_v4, %v5431_v40 }
 0xb54   : > { %2256 = vrot.lane.b32.xlu0 %v2248_v44, %s4229_s24  ;;  %v2379_v44 = vrot.slane %v5522_v37, %v6354_v46 }
 0xb55   : > { %2254 = vrot.lane.b32.xlu1 %v2247_v28, %s4229_s24  ;;  %v5550_v28 = vrot.slane %v2779_v20, %v4495_v45 }
 0xb56   : > { %v5448_v48 = vpop.permute.xlu1 %2418  ;;  %v2394_v56 = vrot.slane %v2379_v44, %v4495_v45 }
 0xb58   : > { %2305 = vrot.lane.b32.xlu0 %v2297_v62, %s4229_s24  ;;  %v2828_v62 = vrot.slane %v5434_v55, %v4511_v53  ;;  %v2400_v54 = vmul.f32 %v2394_v56, %v5436_v7 }
 0xb59   : > { %2303 = vrot.lane.b32.xlu1 %v2296_v11, %s4229_s24  ;;  %v2148_v11 = vmul.f32 %v5539_v51, %v5414_v49  ;;  %v2197_v49 = vmul.f32 %v5550_v28, %v5416_v13 }
 0xb5b   : > { %v5466_v33 = vpop.permute.xlu1 %2467 }
 0xb60   : > { %v5484_v41 = vpop.permute.xlu1 %2522 }
 0xb65   : > { %v5491_v29 = vpop.permute.xlu1 %2573 }
 0xb6a   : > { %v5494_v60 = vpop.permute.xlu1 %2622 }
 0xb6f   : > { %v5498_v18 = vpop.permute.xlu1 %2671 }
 0xb74   : > { %v5503_v57 = vpop.permute.xlu1 %2722 }
 0xb75   : > { %v2755_v3 = vmul.f32 %v5503_v57, %v5446_v47  ;;  %v2756_v8 = vmul.f32 %v2753_v58, %v5503_v57  ;;  %v2428_v58 = vrot.slane %v5522_v37, %v6355_v6 }
 0xb77   : > { %2764 = vrot.lane.b32.xlu0 %v2756_v8, %s4230_s26  ;;  %2762 = vrot.lane.b32.xlu1 %v2755_v3, %s4230_s26  ;;  %v5563_v3 = vrot.slane %v2828_v62, %v4511_v53  ;;  %v2877_v8 = vrot.slane %v5434_v55, %v4527_v0 }
 0xb79   : > { %v5513_v9 = vpop.permute.xlu1 %2773  ;;  %v5580_v23 = vrot.slane %v2877_v8, %v4527_v0  ;;  %v2246_v13 = vmul.f32 %v5563_v3, %v5418_v15 }
 0xb7a   : > { %v2804_v27 = vmul.f32 %v5513_v9, %v5456_v43  ;;  %v2805_v42 = vmul.f32 %v2802_v2, %v5513_v9  ;;  %v2443_v2 = vrot.slane %v2428_v58, %v4511_v53  ;;  %v2803_v44 = vmul.f32 %v5550_v28, %v5513_v9 }
 0xb7c   : > { %2813 = vrot.lane.b32.xlu0 %v2805_v42, %s4230_s26  ;;  %2811 = vrot.lane.b32.xlu1 %v2804_v27, %s4230_s26  ;;  %v5574_v27 = vmul.f32 %v5434_v55, %v6357_v14  ;;  %v2449_v42 = vmul.f32 %v2443_v2, %v5448_v48 }
 0xb7e   : > { %v2823_v35 = vpop.permute.xlu1 %2822  ;;  %v2534_v17 = vrot.slane %v5574_v27, %v6353_v38  ;;  %v2583_v63 = vrot.slane %v5574_v27, %v6354_v46  ;;  %v2632_v20 = vrot.slane %v5574_v27, %v6355_v6 }
 0xb7f   : > { %v2853_v21 = vmul.f32 %v2823_v35, %v5471_v5  ;;  %v2854_v52 = vmul.f32 %v2851_v19, %v2823_v35  ;;  %v2492_v19 = vrot.slane %v2477_v32, %v4527_v0  ;;  %v4286_v32 = vmov 66  }
 0xb80   : > { %v2598_v4 = vrot.slane %v2583_v63, %v4495_v45 }
 0xb81   : > { %2862 = vrot.lane.b32.xlu0 %v2854_v52, %s4230_s26  ;;  %2860 = vrot.lane.b32.xlu1 %v2853_v21, %s4230_s26  ;;  %v2498_v39 = vmul.f32 %v2492_v19, %v5466_v33  ;;  %v2295_v21 = vmul.f32 %v5580_v23, %v5420_v31  ;;  %v2549_v52 = vrot.slane %v2534_v17, %v6352_v30  ;;  %v6358_v31 = vld [vmem:[#allocation18_spill] sm:$0xff]  ;;  %v6359_v19 = vld [vmem:[#allocation20_spill] sm:$0xff] }
 0xb83   : > { %v2872_v24 = vpop.permute.xlu1 %2871  ;;  %v2555_v15 = vmul.f32 %v2549_v52, %v5484_v41 }
 0xb84   : > { %v2902_v10 = vmul.f32 %v2872_v24, %v5482_v25  ;;  %v2903_v34 = vmul.f32 %v2900_v59, %v2872_v24  ;;  %v2754_v59 = vmul.f32 %v5539_v51, %v5503_v57  ;;  %v2901_v56 = vmul.f32 %v5580_v23, %v2872_v24  ;;  %v2516_v24 = vld [vmem:[#allocation2 + $0x8] sm:$0xf] }
 0xb85   : > { %v2518_v17 = vmul.f32 %v2516_v24, %v6359_v19  ;;  %v4289_v24 = vmov 71  }
 0xb86   : > { %2911 = vrot.lane.b32.xlu0 %v2903_v34, %s4230_s26  ;;  %2909 = vrot.lane.b32.xlu1 %v2902_v10, %s4230_s26  ;;  %v2314_v10 = vmul.f32 %v5426_v36, %v6358_v31  ;;  %v2604_v34 = vmul.f32 %v2598_v4, %v5491_v29  ;;  %v2681_v36 = vrot.slane %v5574_v27, %v4559_v16 }
 0xb87   : > { %v2538_v4 = vrot.slane %v2518_v17, %v6352_v30  ;;  %v2685_v19 = vrot.slane %v2518_v17, %v4527_v0 }
 0xb88   : > { %v2334_v57 = vrot.slane %v2314_v10, %v6352_v30  ;;  %v2383_v58 = vrot.slane %v2314_v10, %v4495_v45  ;;  %v2432_v2 = vrot.slane %v2314_v10, %v4511_v53  ;;  %v5643_v63 = vpop.permute.xlu1 %2924 }
 0xb8a   : > { %2154 = vrot.lane.b32.xlu0 %v2148_v11, %s4229_s24  ;;  %2358 = vrot.lane.b32.xlu1 %v2351_v26, %s4231_s27  ;;  %v2647_v26 = vrot.slane %v2632_v20, %v4511_v53  ;;  %v2852_v11 = vmul.f32 %v5563_v3, %v2823_v35  ;;  %v2349_v9 = vrot.slane %v2334_v57, %v6352_v30  ;;  %v4287_v20 = vmov 68  }
 0xb8c   : > { %v2653_v62 = vmul.f32 %v2647_v26, %v5494_v60  ;;  %v2352_v35 = vmul.f32 %v2349_v9, %v5431_v40  ;;  %v2587_v26 = vrot.slane %v2518_v17, %v4495_v45 }
 0xb8d   : > { %v5658_v57 = vpop.permute.xlu1 %3024 }
 0xb8e   : > { %2203 = vrot.lane.b32.xlu0 %v2197_v49, %s4229_s24  ;;  %2407 = vrot.lane.b32.xlu1 %v2400_v54, %s4231_s27  ;;  %v2696_v54 = vrot.slane %v2681_v36, %v4527_v0  ;;  %v2398_v49 = vrot.slane %v2383_v58, %v4495_v45 }
 0xb90   : > { %v2702_v8 = vmul.f32 %v2696_v54, %v5498_v18  ;;  %v2401_v14 = vmul.f32 %v2398_v49, %v5436_v7  ;;  %v2602_v54 = vrot.slane %v2587_v26, %v4495_v45  ;;  %v4290_v26 = vmov 72  }
 0xb92   : > { %2252 = vrot.lane.b32.xlu0 %v2246_v13, %s4229_s24  ;;  %2456 = vrot.lane.b32.xlu1 %v2449_v42, %s4231_s27  ;;  %v2447_v42 = vrot.slane %v2432_v2, %v4511_v53  ;;  %v2481_v13 = vrot.slane %v2314_v10, %v4527_v0  ;;  %v2605_v49 = vmul.f32 %v2602_v54, %v5491_v29  ;;  %v5677_v2 = vpop.permute.xlu1 %3073 }
 0xb94   : > { %v2450_v52 = vmul.f32 %v2447_v42, %v5448_v48 }
 0xb96   : > { %2301 = vrot.lane.b32.xlu0 %v2295_v21, %s4229_s24  ;;  %2505 = vrot.lane.b32.xlu1 %v2498_v39, %s4231_s27  ;;  %v6360_v39 = vld [vmem:[#allocation12_spill] sm:$0xff]  ;;  %s3733_s24 = scalar_lea.sflag [#allocation5], %s4450_s22 }
 0xb97   : > { %v5640_v21 = vmul.f32 %v5434_v55, %v6360_v39 }
 0xb99   : > { %v2020_v31 = vrot.slane %v5640_v21, %v6353_v38  ;;  %v2046_v9 = vrot.slane %v5640_v21, %v6354_v46 }
 0xb9a   : > { %2760 = vrot.lane.b32.xlu0 %v2754_v59, %s4230_s26  ;;  %2562 = vrot.lane.b32.xlu1 %v2555_v15, %s4232_s29  ;;  %v5645_v15 = vpop.permute.xlu0 %2001  ;;  %v2496_v59 = vrot.slane %v2481_v13, %v4527_v0 }
 0xb9c   : > { %v2499_v10 = vmul.f32 %v2496_v59, %v5466_v33 }
 0xb9e   : > { %2809 = vrot.lane.b32.xlu0 %v2803_v44, %s4230_s26  ;;  %2611 = vrot.lane.b32.xlu1 %v2604_v34, %s4232_s29  ;;  %v5654_v34 = vld [vmem:[#allocation6] sm:$0xf]  ;;  %v2553_v44 = vrot.slane %v2538_v4, %v6352_v30 }
 0xba0   : > { %v2556_v36 = vmul.f32 %v2553_v44, %v5484_v41 }
 0xba2   : > { %2858 = vrot.lane.b32.xlu0 %v2852_v11, %s4230_s26  ;;  %2660 = vrot.lane.b32.xlu1 %v2653_v62, %s4232_s29  ;;  %v5661_v62 = vpop.permute.xlu0 %2062  ;;  %v4288_v11 = vmov 69  }
 0xba6   : > { %3328 = vperm.xlu1 %4061, %v6350_v50   ;;  %2907 = vrot.lane.b32.xlu0 %v2901_v56, %s4230_s26  ;;  %v6361_v56 = vld [vmem:[#allocation36_spill] sm:$0xff]  ;;  %v5682_v42 = vpop.permute.xlu0 %2975  ;;  %s4130_s26 = scalar_lea.vmem %s6116_s28, 128 }
 0xba7   : > { %v5670_v58 = vmul.f32 %v5434_v55, %v6361_v56  ;;  %p4131_p6 = scmp.ne.s32.totalorder %s6116_s28, %s4130_s26 }
 0xba9   : > { %v2936_v39 = vrot.slane %v5670_v58, %v6353_v38  ;;  %v2981_v4 = vrot.slane %v5670_v58, %v4495_v45  ;;  %p4132_p9 = pnand %p4131_p6, %p4401_p8 }
 0xbaa   : > { %2709 = vrot.lane.b32.xlu1 %v2702_v8, %s4232_s29  ;;  %2360 = vrot.lane.b32.xlu0 %v2352_v35, %s4231_s27  ;;  %v2636_v35 = vrot.slane %v2518_v17, %v4511_v53  ;;  %v5714_v54 = vpop.permute.xlu0 %3128 }
 0xbab   : > { %4062 = vset.pattern.permute.xlu1 %v4286_v32  ;;  %v2056_v32 = vrot.slane %v2046_v9, %v4495_v45  ;;  %v2996_v56 = vrot.slane %v2981_v4, %v4495_v45  ;;  %p4133_p12 = pneg %p4132_p9 }
 0xbac   : > { %v2651_v13 = vrot.slane %v2636_v35, %v4511_v53 }
 0xbad   : > { %v2058_v17 = vmul.f32 %v2056_v32, %v5408_v61  ;;  %v3005_v4 = vmul.f32 %v2996_v56, %v5682_v42 }
 0xbae   : > { %3379 = vperm.xlu1 %4062, %v6350_v50   ;;  %2409 = vrot.lane.b32.xlu0 %v2401_v14, %s4231_s27  ;;  %v2072_v14 = vrot.slane %v5640_v21, %v6355_v6 }
 0xbb0   : > { %v2082_v44 = vrot.slane %v2072_v14, %v4511_v53  ;;  %v2375_v14 = vrot.slane %v5522_v37, %v4495_v45 }
 0xbb2   : > { %4064 = vset.pattern.permute.xlu1 %v4287_v20  ;;  %2458 = vrot.lane.b32.xlu0 %v2450_v52, %s4231_s27  ;;  %v6362_v52 = vld [vmem:[#allocation34_spill] sm:$0xff]  ;;  %v2084_v32 = vmul.f32 %v2082_v44, %v5661_v62  ;;  %v3034_v44 = vrot.slane %v5670_v58, %v6355_v6 }
 0xbb3   : > { %3477 = vperm.xlu1 %4064, %v6350_v50   ;;  %v2030_v50 = vrot.slane %v2020_v31, %v6352_v30  ;;  %v5692_v59 = vmul.f32 %v5496_v1, %v6362_v52  ;;  %v2326_v31 = vrot.slane %v5522_v37, %v6352_v30  ;;  %v2700_v1 = vrot.slane %v2685_v19, %v4527_v0 }
 0xbb5   : > { %v2032_v8 = vmul.f32 %v2030_v50, %v5405_v22  ;;  %v5705_v50 = vpop.permute.xlu1 %3179  ;;  %v2989_v9 = vrot.slane %v5692_v59, %v4495_v45 }
 0xbb6   : > { %2507 = vrot.lane.b32.xlu0 %v2499_v10, %s4231_s27  ;;  %v2654_v10 = vmul.f32 %v2651_v13, %v5494_v60 }
 0xbb7   : > { %4065 = vset.pattern.permute.xlu1 %v4288_v11  ;;  %v2034_v20 = vadd.f32 %v2032_v8, %v5645_v15  ;;  %v2951_v11 = vrot.slane %v2936_v39, %v6352_v30  ;;  %v2341_v8 = vrot.slane %v2326_v31, %v6352_v30  ;;  %v3004_v52 = vrot.slane %v2989_v9, %v4495_v45 }
 0xbb8   : > { %3530 = vperm.xlu1 %4065, %v5654_v34  }
 0xbb9   : > { %v2060_v35 = vadd.f32 %v2058_v17, %v2034_v20  ;;  %v2350_v20 = vmul.f32 %v2341_v8, %v5431_v40  ;;  %v5728_v31 = vpop.permute.xlu1 %3228  ;;  %v2390_v17 = vrot.slane %v2375_v14, %v4495_v45 }
 0xbba   : > { %2564 = vrot.lane.b32.xlu0 %v2556_v36, %s4232_s29  ;;  %v2098_v36 = vrot.slane %v5640_v21, %v4559_v16 }
 0xbbb   : > { %v2086_v39 = vadd.f32 %v2084_v32, %v2060_v35  ;;  %v2399_v40 = vmul.f32 %v2390_v17, %v5436_v7  ;;  %v2473_v35 = vrot.slane %v5522_v37, %v4527_v0  ;;  %v3079_v32 = vrot.slane %v5670_v58, %v4527_v0  ;;  %v6363_v7 = vld [vmem:[#allocation50_spill] sm:$0xff] }
 0xbbc   : > { %4067 = vset.pattern.permute.xlu1 %v4289_v24  ;;  %v2957_v24 = vmul.f32 %v2951_v11, %v5643_v63  ;;  %v2108_v13 = vrot.slane %v2098_v36, %v4527_v0  ;;  %v3007_v11 = vmul.f32 %v3004_v52, %v5682_v42  ;;  %v3087_v17 = vrot.slane %v5692_v59, %v4527_v0 }
 0xbbd   : > { %3630 = vperm.xlu1 %4067, %v5654_v34   ;;  %v2488_v52 = vrot.slane %v2473_v35, %v4527_v0 }
 0xbbe   : > { %2613 = vrot.lane.b32.xlu0 %v2605_v49, %s4232_s29  ;;  %v2703_v49 = vmul.f32 %v2700_v1, %v5498_v18  ;;  %v2159_v19 = vpop.permute.xlu0 %2158  ;;  %v2110_v1 = vmul.f32 %v2108_v13, %v5412_v12  ;;  %v5754_v13 = vmul.f32 %v5434_v55, %v6363_v7 }
 0xbbf   : > { %v5740_v9 = vpop.permute.xlu1 %2156 }
 0xbc0   : > { %v2112_v36 = vadd.f32 %v2110_v1, %v2086_v39  ;;  %v2161_v8 = vsel %vm374_vm15, %v5740_v9, %v2159_v19 }
 0xbc1   : > { %4068 = vset.pattern.permute.xlu1 %v4290_v26 }
 0xbc2   : > { %3679 = vperm.xlu1 %4068, %v5654_v34   ;;  %2662 = vrot.lane.b32.xlu0 %v2654_v10, %s4232_s29  ;;  %v2424_v10 = vrot.slane %v5522_v37, %v4511_v53  ;;  %v2165_v14 = vadd.f32 %v2161_v8, %v2112_v36  ;;  %v3122_v8 = vld [vmem:[#allocation2 + $0x8] sm:$0xf] }
 0xbc3   : > { %v5758_v19 = vpop.permute.xlu1 %2205 }
 0xbc4   : > { %v2439_v56 = vrot.slane %v2424_v10, %v4511_v53 }
 0xbc6   : > { %2711 = vrot.lane.b32.xlu0 %v2703_v49, %s4232_s29  ;;  %2964 = vrot.lane.b32.xlu1 %v2957_v24, %s4236_s3  ;;  %v2208_v49 = vpop.permute.xlu0 %2207  ;;  %v3049_v24 = vrot.slane %v3034_v44, %v4511_v53  ;;  %v2448_v37 = vmul.f32 %v2439_v56, %v5448_v48  ;;  %v3094_v44 = vrot.slane %v3079_v32, %v4527_v0 }
 0xbc7   : > { %v3140_v48 = vrot.slane %v5754_v13, %v6353_v38  ;;  %v5774_v36 = vpop.permute.xlu1 %2254  ;;  %v2579_v56 = vrot.slane %v5574_v27, %v4495_v45 }
 0xbc8   : > { %v3055_v39 = vmul.f32 %v3049_v24, %v5658_v57  ;;  %v3102_v24 = vrot.slane %v3087_v17, %v4527_v0 }
 0xbc9   : > { %v2594_v17 = vrot.slane %v2579_v56, %v4495_v45 }
 0xbca   : > { %2356 = vrot.lane.b32.xlu0 %v2350_v20, %s4231_s27  ;;  %3011 = vrot.lane.b32.xlu1 %v3005_v4, %s4236_s3  ;;  %v2530_v4 = vrot.slane %v5574_v27, %v6352_v30  ;;  %v2210_v20 = vsel %vm374_vm15, %v5758_v19, %v2208_v49  ;;  %v2257_v10 = vpop.permute.xlu0 %2256 }
 0xbcb   : > { %v2214_v1 = vadd.f32 %v2210_v20, %v2165_v14  ;;  %v2259_v35 = vsel %vm374_vm15, %v5774_v36, %v2257_v10 }
 0xbcc   : > { %v2545_v49 = vrot.slane %v2530_v4, %v6352_v30  ;;  %v2628_v4 = vrot.slane %v5574_v27, %v4511_v53 }
 0xbcd   : > { %v2263_v32 = vadd.f32 %v2259_v35, %v2214_v1 }
 0xbce   : > { %2405 = vrot.lane.b32.xlu0 %v2399_v40, %s4231_s27  ;;  %3015 = vrot.lane.b32.xlu1 %v3007_v11, %s4236_s3  ;;  %v2497_v11 = vmul.f32 %v2488_v52, %v5466_v33  ;;  %v3103_v40 = vmul.f32 %v3094_v44, %v5677_v2  ;;  %v2306_v14 = vpop.permute.xlu0 %2305  ;;  %v3155_v33 = vrot.slane %v3140_v48, %v6352_v30  ;;  %v6364_v52 = vld [vmem:[#allocation48_spill] sm:$0xff] }
 0xbcf   : > { %v2554_v7 = vmul.f32 %v2545_v49, %v5484_v41  ;;  %v5790_v20 = vmul.f32 %v3122_v8, %v6364_v52  ;;  %v3185_v44 = vrot.slane %v5754_v13, %v4495_v45  ;;  %v2603_v48 = vmul.f32 %v2594_v17, %v5491_v29 }
 0xbd0   : > { %v3161_v41 = vmul.f32 %v3155_v33, %v5714_v54 }
 0xbd1   : > { %v3193_v56 = vrot.slane %v5790_v20, %v4495_v45  ;;  %v3200_v35 = vrot.slane %v3185_v44, %v4495_v45  ;;  %v2068_v44 = vrot.slane %v5640_v21, %v4511_v53 }
 0xbd2   : > { %2454 = vrot.lane.b32.xlu0 %v2448_v37, %s4231_s27  ;;  %3062 = vrot.lane.b32.xlu1 %v3055_v39, %s4236_s3  ;;  %v3105_v37 = vmul.f32 %v3102_v24, %v5677_v2  ;;  %v5787_v39 = vpop.permute.xlu1 %2303 }
 0xbd3   : > { %v2308_v10 = vsel %vm374_vm15, %v5787_v39, %v2306_v14  ;;  %v3209_v49 = vmul.f32 %v3200_v35, %v5705_v50  ;;  %v3208_v24 = vrot.slane %v3193_v56, %v4495_v45  ;;  %v2078_v35 = vrot.slane %v2068_v44, %v4511_v53 }
 0xbd4   : > { %v5799_v1 = vadd.f32 %v2308_v10, %v2263_v32  ;;  %v2016_v32 = vrot.slane %v5640_v21, %v6352_v30  ;;  %v4071_v10 = vld [vmem:[#allocation6] sm:$0xf] }
 0xbd6   : > { %2503 = vrot.lane.b32.xlu0 %v2497_v11, %s4231_s27  ;;  %3109 = vrot.lane.b32.xlu1 %v3103_v40, %s4236_s3  ;;  %v2643_v11 = vrot.slane %v2628_v4, %v4511_v53  ;;  %v2677_v40 = vrot.slane %v5574_v27, %v4527_v0  ;;  %v3238_v27 = vrot.slane %v5754_v13, %v6355_v6  ;;  %s4136_s27 = scalar_lea.vmem %s4135_s25, 256 }
 0xbd7   : > { %v2042_v4 = vrot.slane %v5640_v21, %v4495_v45  ;;  %p4138_p0 = scmp.lt.s32.totalorder %s4136_s27, %s4130_s26 }
 0xbd8   : > { %v2652_v8 = vmul.f32 %v2643_v11, %v5494_v60  ;;  %v2692_v29 = vrot.slane %v2677_v40, %v4527_v0  ;;  %v3211_v60 = vmul.f32 %v3208_v24, %v5705_v50  ;;  %v3253_v33 = vrot.slane %v3238_v27, %v4511_v53 }
 0xbd9   : > { %v2052_v17 = vrot.slane %v2042_v4, %v4495_v45  ;;  %v2932_v40 = vrot.slane %v5670_v58, %v6352_v30  ;;  %p4139_p5 = por %p4138_p0, %p4137_p13 }
 0xbda   : > { %2560 = vrot.lane.b32.xlu0 %v2554_v7, %s4232_s29  ;;  %3113 = vrot.lane.b32.xlu1 %v3105_v37, %s4236_s3  ;;  %v2701_v14 = vmul.f32 %v2692_v29, %v5498_v18  ;;  %v2026_v7 = vrot.slane %v2016_v32, %v6352_v30  ;;  %v3259_v37 = vmul.f32 %v3253_v33, %v5728_v31  ;;  %v4292_v29 = vmov 70  }
 0xbdb   : > { %v2057_v56 = vmul.f32 %v2052_v17, %v5408_v61  ;;  %v2947_v27 = vrot.slane %v2932_v40, %v6352_v30  ;;  %v2083_v61 = vmul.f32 %v2078_v35, %v5661_v62  ;;  %v2985_v32 = vrot.slane %v5670_v58, %v6354_v46  ;;  %p4140_p10 = pnand %p4139_p5, %p4133_p12 }
 0xbdc   : > { %v2031_v18 = vmul.f32 %v2026_v7, %v5405_v22 }
 0xbde   : > { %2609 = vrot.lane.b32.xlu0 %v2603_v48, %s4232_s29  ;;  %3168 = vrot.lane.b32.xlu1 %v3161_v41, %s4242_s5  ;;  %v4291_v48 = vmov 67   ;;  %v2033_v11 = vadd.f32 %v2031_v18, %v5645_v15  ;;  %v2940_v15 = vrot.slane %v5692_v59, %v6352_v30 }
 0xbe0   : > { %v2059_v24 = vadd.f32 %v2057_v56, %v2033_v11  ;;  %v2955_v33 = vrot.slane %v2940_v15, %v6352_v30  ;;  %v3136_v15 = vrot.slane %v5754_v13, %v6352_v30 }
 0xbe2   : > { %2658 = vrot.lane.b32.xlu0 %v2652_v8, %s4232_s29  ;;  %3215 = vrot.lane.b32.xlu1 %v3209_v49, %s4242_s5  ;;  %v2094_v8 = vrot.slane %v5640_v21, %v4527_v0  ;;  %v2958_v62 = vmul.f32 %v2955_v33, %v5643_v63 }
 0xbe4   : > { %v2104_v21 = vrot.slane %v2094_v8, %v4527_v0 }
 0xbe6   : > { %2707 = vrot.lane.b32.xlu0 %v2701_v14, %s4232_s29  ;;  %3219 = vrot.lane.b32.xlu1 %v3211_v60, %s4242_s5  ;;  %v2956_v14 = vmul.f32 %v2947_v27, %v5643_v63  ;;  %v2085_v60 = vadd.f32 %v2083_v61, %v2059_v24  ;;  %v2109_v4 = vmul.f32 %v2104_v21, %v5412_v12 }
 0xbe7   : > { %v3038_v63 = vrot.slane %v5692_v59, %v4511_v53  ;;  %v3151_v21 = vrot.slane %v3136_v15, %v6352_v30 }
 0xbe8   : > { %v2111_v18 = vadd.f32 %v2109_v4, %v2085_v60  ;;  %v3189_v4 = vrot.slane %v5754_v13, %v6354_v46 }
 0xbe9   : > { %v5830_v52 = vpop.permute.xlu0 %2764  ;;  %v5846_v22 = vpop.permute.xlu1 %2762 }
 0xbea   : > { %3277 = vperm.xlu0 %4060, %v4071_v10   ;;  %3266 = vrot.lane.b32.xlu1 %v3259_v37, %s4242_s5 }
 0xbee   : > { %v5839_v41 = vpop.permute.xlu0 %2813  ;;  %4063 = vset.pattern.permute.xlu0 %v4291_v48  ;;  %v5862_v7 = vpop.permute.xlu1 %2811 }
 0xbef   : > { %3428 = vperm.xlu0 %4063, %v4071_v10   ;;  %v3030_v10 = vrot.slane %v5670_v58, %v4511_v53 }
 0xbf1   : > { %v3045_v12 = vrot.slane %v3030_v10, %v4511_v53 }
 0xbf3   : > { %v5850_v49 = vpop.permute.xlu0 %2862  ;;  %4066 = vset.pattern.permute.xlu0 %v4292_v29  ;;  %v5877_v11 = vpop.permute.xlu1 %2860  ;;  %v3054_v35 = vmul.f32 %v3045_v12, %v5658_v57 }
 0xbf4   : > { %3581 = vperm.xlu0 %4066, %v5654_v34   ;;  %v3000_v34 = vrot.slane %v2985_v32, %v4495_v45 }
 0xbf6   : > { %v3006_v48 = vmul.f32 %v3000_v34, %v5682_v42  ;;  %v3083_v42 = vrot.slane %v5670_v58, %v4559_v16 }
 0xbf8   : > { %v5864_v37 = vpop.permute.xlu0 %2911  ;;  %2962 = vrot.lane.b32.xlu0 %v2956_v14, %s4236_s3  ;;  %v5889_v29 = vpop.permute.xlu1 %2909  ;;  %v3098_v61 = vrot.slane %v3083_v42, %v4527_v0  ;;  %v3144_v14 = vrot.slane %v5790_v20, %v6352_v30 }
 0xbf9   : > { %4069 = vset.pattern.permute.xlu0 %v4290_v26 }
 0xbfc   : > { %v2155_v17 = vpop.permute.xlu0 %2154  ;;  %2966 = vrot.lane.b32.xlu0 %v2958_v62, %s4236_s3  ;;  %v5905_v60 = vpop.permute.xlu1 %2358  ;;  %v3160_v62 = vmul.f32 %v3151_v21, %v5714_v54 }
 0xbfd   : > { %v2160_v44 = vsel %vm374_vm15, %v2155_v17, %v5740_v9  ;;  %v3053_v9 = vrot.slane %v3038_v63, %v4511_v53 }
 0xbfe   : > { %v2164_v26 = vadd.f32 %v2160_v44, %v2111_v18  ;;  %v3204_v44 = vrot.slane %v3189_v4, %v4495_v45 }
 0xc00   : > { %v2204_v40 = vpop.permute.xlu0 %2203  ;;  %3013 = vrot.lane.b32.xlu0 %v3006_v48, %s4236_s3  ;;  %v5918_v10 = vpop.permute.xlu1 %2407  ;;  %v3234_v48 = vrot.slane %v5754_v13, %v4511_v53  ;;  %v3210_v12 = vmul.f32 %v3204_v44, %v5705_v50 }
 0xc01   : > { %v2209_v56 = vsel %vm374_vm15, %v2204_v40, %v5758_v19  ;;  %v3056_v19 = vmul.f32 %v3053_v9, %v5658_v57 }
 0xc02   : > { %v2213_v8 = vadd.f32 %v2209_v56, %v2164_v26  ;;  %v3242_v56 = vrot.slane %v5790_v20, %v4511_v53 }
 0xc04   : > { %v2253_v24 = vpop.permute.xlu0 %2252  ;;  %3060 = vrot.lane.b32.xlu0 %v3054_v35, %s4236_s3  ;;  %v2457_v40 = vpop.permute.xlu1 %2456  ;;  %v3257_v42 = vrot.slane %v3242_v56, %v4511_v53 }
 0xc05   : > { %v2258_v59 = vsel %vm374_vm15, %v2253_v24, %v5774_v36  ;;  %v3104_v36 = vmul.f32 %v3098_v61, %v5677_v2 }
 0xc06   : > { %v2262_v27 = vadd.f32 %v2258_v59, %v2213_v8  ;;  %v3260_v15 = vmul.f32 %v3257_v42, %v5728_v31 }
 0xc08   : > { %v2302_v32 = vpop.permute.xlu0 %2301  ;;  %3064 = vrot.lane.b32.xlu0 %v3056_v19, %s4236_s3  ;;  %v2506_v24 = vpop.permute.xlu1 %2505 }
 0xc09   : > { %v2307_v58 = vsel %vm374_vm15, %v2302_v32, %v5787_v39  ;;  %v3159_v39 = vrot.slane %v3144_v14, %v6352_v30 }
 0xc0a   : > { %v5907_v33 = vadd.f32 %v2307_v58, %v2262_v27 }
 0xc0b   : > { %v3162_v17 = vmul.f32 %v3159_v39, %v5714_v54  ;;  %v3249_v54 = vrot.slane %v3234_v48, %v4511_v53 }
 0xc0c   : > { %v2761_v57 = vpop.permute.xlu0 %2760  ;;  %3111 = vrot.lane.b32.xlu0 %v3104_v36, %s4236_s3  ;;  %v2563_v32 = vpop.permute.xlu1 %2562 }
 0xc0d   : > { %v5912_v34 = vsel %vm1000_vm3, %v2761_v57, %v5846_v22  ;;  %v3258_v9 = vmul.f32 %v3249_v54, %v5728_v31 }
 0xc10   : > { %v2810_v2 = vpop.permute.xlu0 %2809  ;;  %3166 = vrot.lane.b32.xlu0 %v3160_v62, %s4242_s5  ;;  %v2612_v57 = vpop.permute.xlu1 %2611 }
 0xc11   : > { %v5923_v18 = vsel %vm1000_vm3, %v2810_v2, %v5862_v7 }
 0xc14   : > { %v2859_v26 = vpop.permute.xlu0 %2858  ;;  %3170 = vrot.lane.b32.xlu0 %v3162_v17, %s4242_s5  ;;  %v2661_v2 = vpop.permute.xlu1 %2660 }
 0xc15   : > { %v5932_v63 = vsel %vm1000_vm3, %v2859_v26, %v5877_v11 }
 0xc18   : > { %v2908_v35 = vpop.permute.xlu0 %2907  ;;  %3217 = vrot.lane.b32.xlu0 %v3210_v12, %s4242_s5 }
 0xc19   : > { %v5941_v8 = vsel %vm1000_vm3, %v2908_v35, %v5889_v29 }
 0xc1c   : > { %v2361_v59 = vpop.permute.xlu0 %2360  ;;  %3264 = vrot.lane.b32.xlu0 %v3258_v9, %s4242_s5 }
 0xc1d   : > { %v2363_v50 = vsel %vm587_vm1, %v5905_v60, %v2361_v59 }
 0xc1e   : > { %v2367_v19 = vadd.f32 %v2363_v50, %v5799_v1 }
 0xc20   : > { %v2410_v27 = vpop.permute.xlu0 %2409  ;;  %3268 = vrot.lane.b32.xlu0 %v3260_v15, %s4242_s5  ;;  %v2767_v15 = vsel %vm1000_vm3, %v5846_v22, %v5830_v52  ;;  %v2914_v22 = vsel %vm1000_vm3, %v5889_v29, %v5864_v37 }
 0xc21   : > { %v2412_v61 = vsel %vm587_vm1, %v5918_v10, %v2410_v27 }
 0xc22   : > { %v2416_v58 = vadd.f32 %v2412_v61, %v2367_v19  ;;  %v2816_v61 = vsel %vm1000_vm3, %v5862_v7, %v5839_v41 }
 0xc24   : > { %v2459_v14 = vpop.permute.xlu0 %2458 }
 0xc25   : > { %v2461_v21 = vsel %vm587_vm1, %v2457_v40, %v2459_v14  ;;  %v5957_v26 = vpop.permute.xlu1 %3328 }
 0xc26   : > { %v2465_v36 = vadd.f32 %v2461_v21, %v2416_v58 }
 0xc28   : > { %v2508_v39 = vpop.permute.xlu0 %2507 }
 0xc29   : > { %v2510_v62 = vsel %vm587_vm1, %v2506_v24, %v2508_v39  ;;  %v2710_v9 = vpop.permute.xlu1 %2709 }
 0xc2a   : > { %v2514_v4 = vadd.f32 %v2510_v62, %v2465_v36  ;;  %v2865_v36 = vsel %vm1000_vm3, %v5877_v11, %v5850_v49 }
 0xc2c   : > { %v2565_v31 = vpop.permute.xlu0 %2564 }
 0xc2d   : > { %v2567_v1 = vsel %vm799_vm2, %v2563_v32, %v2565_v31 }
 0xc2e   : > { %v2571_v17 = vadd.f32 %v2567_v1, %v2514_v4 }
 0xc30   : > { %v2614_v44 = vpop.permute.xlu0 %2613 }
 0xc31   : > { %v2616_v48 = vsel %vm799_vm2, %v2612_v57, %v2614_v44 }
 0xc32   : > { %v2620_v12 = vadd.f32 %v2616_v48, %v2571_v17 }
 0xc34   : > { %v2663_v56 = vpop.permute.xlu0 %2662 }
 0xc35   : > { %v2665_v54 = vsel %vm799_vm2, %v2661_v2, %v2663_v56 }
 0xc36   : > { %v2669_v35 = vadd.f32 %v2665_v54, %v2620_v12 }
 0xc38   : > { %v2712_v42 = vpop.permute.xlu0 %2711 }
 0xc39   : > { %v2714_v59 = vsel %vm799_vm2, %v2710_v9, %v2712_v42 }
 0xc3a   : > { %v2718_v50 = vadd.f32 %v2714_v59, %v2669_v35 }
 0xc3c   : > { %v2771_v19 = vadd.f32 %v2767_v15, %v2718_v50  ;;  %v2357_v27 = vpop.permute.xlu0 %2356  ;;  %v3291_v50 = vrot.slane %v5790_v20, %v4527_v0  ;;  %v3326_v15 = vld [vmem:[#allocation2 + $0x8] sm:$0xf] }
 0xc3d   : > { %v2362_v58 = vsel %vm587_vm1, %v2357_v27, %v5905_v60 }
 0xc3e   : > { %v2820_v14 = vadd.f32 %v2816_v61, %v2771_v19  ;;  %v2366_v21 = vadd.f32 %v2362_v58, %v5907_v33  ;;  %v3306_v27 = vrot.slane %v3291_v50, %v4527_v0  ;;  %v3361_v58 = vmul.f32 %v5957_v26, %v5446_v47 }
 0xc40   : > { %v2406_v39 = vpop.permute.xlu0 %2405  ;;  %v2869_v62 = vadd.f32 %v2865_v36, %v2820_v14  ;;  %v3393_v36 = vrot.slane %v3326_v15, %v4495_v45 }
 0xc41   : > { %v2411_v52 = vsel %vm587_vm1, %v2406_v39, %v5918_v10 }
 0xc42   : > { %v2415_v41 = vadd.f32 %v2411_v52, %v2366_v21  ;;  %v5978_v7 = vadd.f32 %v2914_v22, %v2869_v62  ;;  %v3380_v21 = vpop.permute.xlu1 %3379  ;;  %v3408_v52 = vrot.slane %v3393_v36, %v4495_v45  ;;  %v3442_v22 = vrot.slane %v3326_v15, %v4511_v53 }
 0xc43   : > { %v3410_v39 = vmul.f32 %v3380_v21, %v5456_v43 }
 0xc44   : > { %v2455_v60 = vpop.permute.xlu0 %2454  ;;  %v3411_v47 = vmul.f32 %v3408_v52, %v3380_v21 }
 0xc45   : > { %v2460_v4 = vsel %vm587_vm1, %v2455_v60, %v2457_v40 }
 0xc46   : > { %v2464_v33 = vadd.f32 %v2460_v4, %v2415_v41  ;;  %v6365_v41 = vld [vmem:[#allocation74_spill] sm:$0xff]  ;;  %v3457_v4 = vrot.slane %v3442_v22, %v4511_v53  ;;  %v3478_v43 = vpop.permute.xlu1 %3477 }
 0xc47   : > { %v3525_v60 = vmul.f32 %v5434_v55, %v6365_v41  ;;  %v3507_v55 = vmul.f32 %v3478_v43, %v5580_v23 }
 0xc48   : > { %v2504_v31 = vpop.permute.xlu0 %2503 }
 0xc49   : > { %v2509_v1 = vsel %vm587_vm1, %v2504_v31, %v2506_v24  ;;  %v3491_v31 = vrot.slane %v3326_v15, %v4527_v0 }
 0xc4a   : > { %v2513_v49 = vadd.f32 %v2509_v1, %v2464_v33  ;;  %v6366_v1 = vld [vmem:[#allocation72_spill] sm:$0xff] }
 0xc4c   : > { %v2561_v11 = vpop.permute.xlu0 %2560 }
 0xc4d   : > { %v2566_v17 = vsel %vm799_vm2, %v2561_v11, %v2563_v32  ;;  %v3538_v11 = vrot.slane %v3525_v60, %v6352_v30 }
 0xc4e   : > { %v2570_v44 = vadd.f32 %v2566_v17, %v2513_v49  ;;  %v3526_v49 = vmul.f32 %v3326_v15, %v6366_v1  ;;  %v3542_v17 = vrot.slane %v3525_v60, %v6353_v38  ;;  %v3591_v38 = vrot.slane %v3525_v60, %v6354_v46 }
 0xc50   : > { %v2610_v10 = vpop.permute.xlu0 %2609  ;;  %v3644_v50 = vrot.slane %v3526_v49, %v4511_v53 }
 0xc51   : > { %v2615_v48 = vsel %vm799_vm2, %v2610_v10, %v2612_v57  ;;  %v3283_v57 = vrot.slane %v5754_v13, %v4527_v0  ;;  %v3546_v10 = vrot.slane %v3526_v49, %v6352_v30 }
 0xc52   : > { %v2619_v12 = vadd.f32 %v2615_v48, %v2570_v44  ;;  %v3531_v44 = vpop.permute.xlu1 %3530  ;;  %v3553_v48 = vrot.slane %v3538_v11, %v6352_v30 }
 0xc53   : > { %v3561_v23 = vrot.slane %v3546_v10, %v6352_v30 }
 0xc54   : > { %v2659_v37 = vpop.permute.xlu0 %2658 }
 0xc55   : > { %v2664_v29 = vsel %vm799_vm2, %v2659_v37, %v2661_v2  ;;  %v3287_v2 = vrot.slane %v5754_v13, %v4559_v16  ;;  %v3360_v13 = vmul.f32 %v5957_v26, %v5539_v51  ;;  %v3409_v51 = vmul.f32 %v3380_v21, %v5550_v28 }
 0xc56   : > { %v2668_v56 = vadd.f32 %v2664_v29, %v2619_v12  ;;  %v3562_v37 = vmul.f32 %v3553_v48, %v3531_v44  ;;  %v3557_v29 = vrot.slane %v3542_v17, %v6352_v30 }
 0xc58   : > { %v2708_v54 = vpop.permute.xlu0 %2707 }
 0xc59   : > { %v2713_v40 = vsel %vm799_vm2, %v2708_v54, %v2710_v9  ;;  %v3298_v9 = vrot.slane %v3283_v57, %v4527_v0  ;;  %v3564_v54 = vmul.f32 %v3561_v23, %v3531_v44  ;;  %v3640_v57 = vrot.slane %v3525_v60, %v6355_v6 }
 0xc5a   : > { %v2717_v35 = vadd.f32 %v2713_v40, %v2668_v56  ;;  %v3563_v56 = vmul.f32 %v3557_v29, %v3531_v44  ;;  %v3636_v40 = vrot.slane %v3525_v60, %v4511_v53  ;;  %v3689_v6 = vrot.slane %v3525_v60, %v4559_v16 }
 0xc5c   : > { %v2770_v42 = vadd.f32 %v5912_v34, %v2717_v35  ;;  %v3302_v34 = vrot.slane %v3287_v2, %v4527_v0  ;;  %v3631_v2 = vpop.permute.xlu1 %3630 }
 0xc5e   : > { %v2819_v24 = vadd.f32 %v5923_v18, %v2770_v42  ;;  %v3595_v42 = vrot.slane %v3526_v49, %v4495_v45 }
 0xc60   : > { %v2868_v59 = vadd.f32 %v5932_v63, %v2819_v24 }
 0xc62   : > { %v5990_v32 = vadd.f32 %v5941_v8, %v2868_v59  ;;  %v3344_v8 = vrot.slane %v3326_v15, %v6352_v30  ;;  %v3606_v59 = vrot.slane %v3591_v38, %v4495_v45 }
 0xc64   : > { %v3359_v61 = vrot.slane %v3344_v8, %v6352_v30  ;;  %v3659_v8 = vrot.slane %v3644_v50, %v4511_v53 }
 0xc66   : > { %v3362_v14 = vmul.f32 %v3359_v61, %v5957_v26 }
 0xc69   : > { %v3278_v18 = vpop.permute.xlu0 %3277 }
 0xc6a   : > { %v3307_v19 = vmul.f32 %v3298_v9, %v3278_v18  ;;  %v3308_v63 = vmul.f32 %v3302_v34, %v3278_v18  ;;  %v3309_v20 = vmul.f32 %v3306_v27, %v3278_v18  ;;  %v3651_v9 = vrot.slane %v3636_v40, %v4511_v53 }
 0xc6b   : > { %v3610_v34 = vrot.slane %v3595_v42, %v4495_v45 }
 0xc6c   : > { %3313 = vrot.lane.b32.xlu1 %v3307_v19, %s4242_s5  ;;  %3315 = vrot.lane.b32.xlu0 %v3308_v63, %s4242_s5  ;;  %v3660_v15 = vmul.f32 %v3651_v9, %v3631_v2  ;;  %v3685_v19 = vrot.slane %v3525_v60, %v4527_v0  ;;  %v3655_v63 = vrot.slane %v3640_v57, %v4511_v53 }
 0xc6e   : > { %v3429_v62 = vpop.permute.xlu0 %3428  ;;  %v3661_v27 = vmul.f32 %v3655_v63, %v3631_v2  ;;  %v3700_v61 = vrot.slane %v3685_v19, %v4527_v0 }
 0xc6f   : > { %v3458_v26 = vmul.f32 %v3429_v62, %v5563_v3  ;;  %v3459_v28 = vmul.f32 %v3429_v62, %v5471_v5  ;;  %v3460_v33 = vmul.f32 %v3457_v4, %v3429_v62  ;;  %v3508_v3 = vmul.f32 %v3478_v43, %v5482_v25 }
 0xc70   : > { %3317 = vrot.lane.b32.xlu1 %v3309_v20, %s4242_s5  ;;  %3366 = vrot.lane.b32.xlu0 %v3360_v13, %s4247_s6  ;;  %v3506_v5 = vrot.slane %v3491_v31, %v4527_v0  ;;  %v3587_v25 = vrot.slane %v3525_v60, %v4495_v45  ;;  %v3680_v13 = vpop.permute.xlu1 %3679  ;;  %v3693_v20 = vrot.slane %v3526_v49, %v4527_v0 }
 0xc71   : > { %v3709_v53 = vmul.f32 %v3700_v61, %v3680_v13 }
 0xc72   : > { %v3509_v12 = vmul.f32 %v3506_v5, %v3478_v43  ;;  %v3602_v24 = vrot.slane %v3587_v25, %v4495_v45  ;;  %v3662_v45 = vmul.f32 %v3659_v8, %v3631_v2  ;;  %v3708_v16 = vrot.slane %v3693_v20, %v4527_v0 }
 0xc73   : > { %v3582_v35 = vpop.permute.xlu0 %3581 }
 0xc74   : > { %3368 = vrot.lane.b32.xlu1 %v3361_v58, %s4247_s6  ;;  %3370 = vrot.lane.b32.xlu0 %v3362_v14, %s4247_s6  ;;  %v3611_v30 = vmul.f32 %v3602_v24, %v3582_v35  ;;  %v3612_v46 = vmul.f32 %v3606_v59, %v3582_v35  ;;  %v3613_v18 = vmul.f32 %v3610_v34, %v3582_v35 }
 0xc75   : > { %v3704_v58 = vrot.slane %v3689_v6, %v4527_v0  ;;  %v3711_v21 = vmul.f32 %v3708_v16, %v3680_v13 }
 0xc77   : > { %v3710_v14 = vmul.f32 %v3704_v58, %v3680_v13  ;;  %v2963_v36 = vpop.permute.xlu0 %2962 }
 0xc78   : > { %3417 = vrot.lane.b32.xlu0 %v3410_v39, %s4247_s6  ;;  %3415 = vrot.lane.b32.xlu1 %v3409_v51, %s4247_s6  ;;  %v2965_v51 = vpop.permute.xlu1 %2964 }
 0xc7b   : > { %v2967_v39 = vpop.permute.xlu0 %2966 }
 0xc7c   : > { %3464 = vrot.lane.b32.xlu0 %v3458_v26, %s4247_s6  ;;  %3419 = vrot.lane.b32.xlu1 %v3411_v47, %s4247_s6  ;;  %v3012_v62 = vpop.permute.xlu1 %3011  ;;  %v2969_v40 = vsel %vm1210_vm4, %v2965_v51, %v2967_v39 }
 0xc7d   : > { %v2973_v59 = vadd.f32 %v2969_v40, %v5978_v7 }
 0xc7f   : > { %v3014_v52 = vpop.permute.xlu0 %3013 }
 0xc80   : > { %3468 = vrot.lane.b32.xlu0 %v3460_v33, %s4247_s6  ;;  %3466 = vrot.lane.b32.xlu1 %v3459_v28, %s4247_s6  ;;  %v3016_v22 = vpop.permute.xlu1 %3015  ;;  %v3017_v35 = vsel %vm1210_vm4, %v3012_v62, %v3014_v52 }
 0xc81   : > { %v3018_v42 = vsel %vm1210_vm4, %v3014_v52, %v3016_v22 }
 0xc82   : > { %v3022_v9 = vadd.f32 %v3018_v42, %v2973_v59 }
 0xc83   : > { %v3061_v47 = vpop.permute.xlu0 %3060 }
 0xc84   : > { %3515 = vrot.lane.b32.xlu0 %v3508_v3, %s4247_s6  ;;  %3513 = vrot.lane.b32.xlu1 %v3507_v55, %s4247_s6  ;;  %v3063_v26 = vpop.permute.xlu1 %3062 }
 0xc85   : > { %v3066_v57 = vsel %vm1210_vm4, %v3061_v47, %v3063_v26 }
 0xc87   : > { %v3065_v41 = vpop.permute.xlu0 %3064 }
 0xc88   : > { %3517 = vrot.lane.b32.xlu1 %v3509_v12, %s4247_s6  ;;  %3568 = vrot.lane.b32.xlu0 %v3562_v37, %s4253_s18  ;;  %v3110_v60 = vpop.permute.xlu1 %3109  ;;  %v3067_v2 = vsel %vm1210_vm4, %v3063_v26, %v3065_v41 }
 0xc89   : > { %v3071_v19 = vadd.f32 %v3067_v2, %v3022_v9 }
 0xc8b   : > { %v3112_v4 = vpop.permute.xlu0 %3111 }
 0xc8c   : > { %3570 = vrot.lane.b32.xlu1 %v3563_v56, %s4253_s18  ;;  %3572 = vrot.lane.b32.xlu0 %v3564_v54, %s4253_s18  ;;  %v3114_v43 = vpop.permute.xlu1 %3113  ;;  %v2968_v54 = vsel %vm1210_vm4, %v2963_v36, %v2965_v51  ;;  %v3115_v34 = vsel %vm1210_vm4, %v3110_v60, %v3112_v4 }
 0xc8d   : > { %v2972_v24 = vadd.f32 %v2968_v54, %v5990_v32 }
 0xc8f   : > { %v3167_v0 = vpop.permute.xlu0 %3166  ;;  %v3021_v50 = vadd.f32 %v3017_v35, %v2972_v24 }
 0xc90   : > { %3617 = vrot.lane.b32.xlu1 %v3611_v30, %s4253_s18  ;;  %3619 = vrot.lane.b32.xlu0 %v3612_v46, %s4253_s18  ;;  %v3169_v28 = vpop.permute.xlu1 %3168 }
 0xc91   : > { %v3172_v32 = vsel %vm1422_vm5, %v3167_v0, %v3169_v28 }
 0xc93   : > { %v3171_v33 = vpop.permute.xlu0 %3170 }
 0xc94   : > { %3621 = vrot.lane.b32.xlu1 %v3613_v18, %s4253_s18  ;;  %3666 = vrot.lane.b32.xlu0 %v3660_v15, %s4253_s18  ;;  %v3216_v31 = vpop.permute.xlu1 %3215  ;;  %v3116_v15 = vsel %vm1210_vm4, %v3112_v4, %v3114_v43  ;;  %v3070_v18 = vadd.f32 %v3066_v57, %v3021_v50  ;;  %v3173_v7 = vsel %vm1422_vm5, %v3169_v28, %v3171_v33 }
 0xc96   : > { %v3119_v6 = vadd.f32 %v3115_v34, %v3070_v18 }
 0xc97   : > { %v3218_v1 = vpop.permute.xlu0 %3217 }
 0xc98   : > { %3668 = vrot.lane.b32.xlu1 %v3661_v27, %s4253_s18  ;;  %3670 = vrot.lane.b32.xlu0 %v3662_v45, %s4253_s18  ;;  %v3220_v49 = vpop.permute.xlu1 %3219  ;;  %v3120_v27 = vadd.f32 %v3116_v15, %v3071_v19  ;;  %v3221_v45 = vsel %vm1422_vm5, %v3216_v31, %v3218_v1  ;;  %v3176_v20 = vadd.f32 %v3172_v32, %v3119_v6 }
 0xc99   : > { %v3222_v13 = vsel %vm1422_vm5, %v3218_v1, %v3220_v49 }
 0xc9a   : > { %v3177_v61 = vadd.f32 %v3173_v7, %v3120_v27 }
 0xc9b   : > { %v3265_v11 = vpop.permute.xlu0 %3264 }
 0xc9c   : > { %3717 = vrot.lane.b32.xlu0 %v3710_v14, %s4253_s18  ;;  %3715 = vrot.lane.b32.xlu1 %v3709_v53, %s4253_s18  ;;  %v3267_v55 = vpop.permute.xlu1 %3266  ;;  %v3226_v36 = vadd.f32 %v3222_v13, %v3177_v61 }
 0xc9d   : > { %v3270_v14 = vsel %vm1422_vm5, %v3265_v11, %v3267_v55 }
 0xc9f   : > { %v3269_v3 = vpop.permute.xlu0 %3268 }
 0xca0   : > { %3719 = vrot.lane.b32.xlu1 %v3711_v21, %s4253_s18  ;;  %v3271_v16 = vsel %vm1422_vm5, %v3267_v55, %v3269_v3  ;;  %v3225_v21 = vadd.f32 %v3221_v45, %v3176_v20 }
 0xca1   : > { %v3275_v52 = vadd.f32 %v3271_v16, %v3226_v36 }
 0xca2   : > { %v3274_v62 = vadd.f32 %v3270_v14, %v3225_v21 }
 0xcde   : > { %v3316_v17 = vpop.permute.xlu0 %3315  ;;  %v3314_v44 = vpop.permute.xlu1 %3313 }
 0xcdf   : > { %v3319_v51 = vsel %vm1422_vm5, %v3314_v44, %v3316_v17 }
 0xce0   : > { %v3323_v60 = vadd.f32 %v3319_v51, %v3274_v62 }
 0xce2   : > { %v3367_v5 = vpop.permute.xlu0 %3366  ;;  %v3318_v10 = vpop.permute.xlu1 %3317 }
 0xce3   : > { %v3320_v39 = vsel %vm1422_vm5, %v3316_v17, %v3318_v10 }
 0xce4   : > { %v3324_v4 = vadd.f32 %v3320_v39, %v3275_v52 }
 0xce6   : > { %v3371_v48 = vpop.permute.xlu0 %3370  ;;  %v3369_v12 = vpop.permute.xlu1 %3368 }
 0xce7   : > { %v3372_v26 = vsel %vm1623_vm6, %v3367_v5, %v3369_v12  ;;  %v3373_v41 = vsel %vm1623_vm6, %v3369_v12, %v3371_v48 }
 0xce8   : > { %v3376_v28 = vadd.f32 %v3372_v26, %v3323_v60  ;;  %v3377_v33 = vadd.f32 %v3373_v41, %v3324_v4 }
 0xcea   : > { %v3418_v37 = vpop.permute.xlu0 %3417  ;;  %v3416_v29 = vpop.permute.xlu1 %3415 }
 0xceb   : > { %v3421_v43 = vsel %vm1623_vm6, %v3416_v29, %v3418_v37 }
 0xcec   : > { %v3425_v55 = vadd.f32 %v3421_v43, %v3376_v28 }
 0xcee   : > { %v3465_v23 = vpop.permute.xlu0 %3464  ;;  %v3420_v25 = vpop.permute.xlu1 %3419 }
 0xcef   : > { %v3422_v0 = vsel %vm1623_vm6, %v3418_v37, %v3420_v25 }
 0xcf0   : > { %v3426_v3 = vadd.f32 %v3422_v0, %v3377_v33 }
 0xcf2   : > { %v3469_v38 = vpop.permute.xlu0 %3468  ;;  %v3467_v56 = vpop.permute.xlu1 %3466 }
 0xcf3   : > { %v3470_v49 = vsel %vm1623_vm6, %v3465_v23, %v3467_v56  ;;  %v3471_v11 = vsel %vm1623_vm6, %v3467_v56, %v3469_v38 }
 0xcf4   : > { %v3474_v5 = vadd.f32 %v3470_v49, %v3425_v55  ;;  %v3475_v10 = vadd.f32 %v3471_v11, %v3426_v3 }
 0xcf6   : > { %v3516_v30 = vpop.permute.xlu0 %3515  ;;  %v3514_v46 = vpop.permute.xlu1 %3513 }
 0xcf7   : > { %v3519_v17 = vsel %vm1623_vm6, %v3514_v46, %v3516_v30 }
 0xcf8   : > { %v3523_v25 = vadd.f32 %v3519_v17, %v3474_v5 }
 0xcfa   : > { %v3569_v63 = vpop.permute.xlu0 %3568  ;;  %v3518_v8 = vpop.permute.xlu1 %3517 }
 0xcfb   : > { %v3520_v44 = vsel %vm1623_vm6, %v3516_v30, %v3518_v8 }
 0xcfc   : > { %v3524_v54 = vadd.f32 %v3520_v44, %v3475_v10 }
 0xcfe   : > { %v3573_v58 = vpop.permute.xlu0 %3572  ;;  %v3571_v53 = vpop.permute.xlu1 %3570 }
 0xcff   : > { %v3574_v37 = vsel %vm1833_vm7, %v3569_v63, %v3571_v53  ;;  %v3575_v29 = vsel %vm1833_vm7, %v3571_v53, %v3573_v58 }
 0xd00   : > { %v3578_v56 = vadd.f32 %v3574_v37, %v3523_v25  ;;  %v3579_v40 = vadd.f32 %v3575_v29, %v3524_v54 }
 0xd02   : > { %v3620_v22 = vpop.permute.xlu0 %3619  ;;  %v3618_v47 = vpop.permute.xlu1 %3617 }
 0xd03   : > { %v3623_v23 = vsel %vm1833_vm7, %v3618_v47, %v3620_v22 }
 0xd04   : > { %v3627_v30 = vadd.f32 %v3623_v23, %v3578_v56 }
 0xd06   : > { %v3667_v31 = vpop.permute.xlu0 %3666  ;;  %v3622_v1 = vpop.permute.xlu1 %3621 }
 0xd07   : > { %v3624_v38 = vsel %vm1833_vm7, %v3620_v22, %v3622_v1 }
 0xd08   : > { %v3628_v46 = vadd.f32 %v3624_v38, %v3579_v40 }
 0xd0a   : > { %v3671_v48 = vpop.permute.xlu0 %3670  ;;  %v3669_v12 = vpop.permute.xlu1 %3668 }
 0xd0b   : > { %v3672_v24 = vsel %vm1833_vm7, %v3667_v31, %v3669_v12  ;;  %v3673_v59 = vsel %vm1833_vm7, %v3669_v12, %v3671_v48 }
 0xd0c   : > { %v3676_v2 = vadd.f32 %v3672_v24, %v3627_v30  ;;  %v3677_v50 = vadd.f32 %v3673_v59, %v3628_v46 }
 0xd0e   : > { %v3718_v35 = vpop.permute.xlu0 %3717  ;;  %v3716_v42 = vpop.permute.xlu1 %3715 }
 0xd0f   : > { %v3721_v57 = vsel %vm1833_vm7, %v3716_v42, %v3718_v35 }
 0xd10   : > { %v3725_v15 = vadd.f32 %v3721_v57, %v3676_v2 }
 0xd12   : > { %v3720_v9 = vpop.permute.xlu1 %3719 }
 0xd13   : > { %v3722_v34 = vsel %vm1833_vm7, %v3718_v35, %v3720_v9 }
 0xd14   : > { %v3726_v18 = vadd.f32 %v3722_v34, %v3677_v50 }
 0xd16   : > { %v3729_v19 = vcombine.low %v3725_v15, %v3726_v18 }
 0xd18   : > { %3731 = vst [vmem:[%s172_s23] sm:$0xff] %v3729_v19 }
 0xd19   : > { %4143 = shalt.err (!%p4140_p10)
}
 0xd1a   : > { %s4144_s22 = scalar_lea.hbm %s6114_s19, 128  ;;  %s4148_s3 = scalar_lea.hbm %s6160_s2, 256 }
 0xd1b   : > { %p4145_p1 = scmp.ne.s32.totalorder %s6114_s19, %s4144_s22  ;;  %p4149_p3 = scmp.lt.u32.totalorder %s6114_s19, %s6160_s2 }
 0xd1c   : > { %p4150_p11 = scmp.lt.u32.totalorder %s4148_s3, %s4144_s22  ;;  %p4152_p6 = scmp.lt.u32.totalorder %s4144_s22, %s6114_s19 }
 0xd1d   : > { %p4146_p2 = pnand %p4145_p1, %p4401_p8 }
 0xd1e   : > { %p4151_p4 = por %p4150_p11, %p4149_p3 }
 0xd1f   : > { %p4147_p7 = pneg %p4146_p2 }
 0xd20   : > { %p4153_p9 = por %p4152_p6, %p4151_p4 }
 0xd22   : > { %p4154_p12 = pnand %p4153_p9, %p4147_p7 }
 0xd24   : > { %4157 = shalt.err (!%p4154_p12)
}
 0xd25   : > { %3855 = dma.vmem_to_hbm [thread:$0]  (%p4401_p8), %s6116_s28, 128, %s6114_s19, %s3733_s24  }
 0xd26 PF: > { %s3759_s6 = sand.u32 1, %s4188_s9   ;;  %p6367_p13 = scmp.ne.s32.totalorder %s6209_s16, 0 }
 0xd27   : > { %p6368_p0 = scmp.ge.s32.totalorder %s4200_s12, 2  ;;  %s3760_s14 = scalar_lea.sflag [#allocation5], %s3759_s6 }
 0xd29   : > { %p3866_p5 = pnand %p6368_p0, %p6367_p13 }
 0xd2b   : > { %4183 = dma.done.wait (!%p3866_p5), %s3760_s14, 128  }
 0xd2c   : > { %4185 = vsyncadd (!%p3866_p5), %s3760_s14, 4294967168  ;;  %p16_p10 = scmp.ge.s32.totalorder %s4357_s20, 4   ;;  %s6369_s9 = smov %s4192_s10 }
 0xd2d   : > { %s6370_s10 = smov %s4196_s11  ;;  %s6371_s11 = smov %s4393_s7 }
 0xd2e   : > { %s6372_s12 = smov %s4357_s20  ;;  %18 = sbr.rel (!%p16_p10) target bundleno = 6 (0x6), region = 77 }
 0xd35   :  { %3765 = vsyncpa [#allocation4], 1 }
 0xd36   :  { %3767 = vsyncpa [#allocation4 + $0x1], 1 }
 0xd37   :  { %3768 = vsyncpa [#allocation7], 1 }
 0xd38   :  { %3769 = vsyncpa [#allocation5], 1 }
 0xd39   :  { %3771 = vsyncpa [#allocation5 + $0x1], 1 }

</bundles_post_ra>
